<compile_context>
chip_gen: v6e
topology: v6e:2x2x1
jax: 0.10.0
libtpu: 0.0.40
codegen_flags: <defaults>
</compile_context>

<pallas_src>
import functools

import jax
import jax.numpy as jnp
from jax.experimental import pallas as pl
from jax.experimental.pallas import tpu as pltpu


def _sae_kernel(x_ref,
                w1_ref, b1_ref,
                w2_ref, b2_ref,
                w3_ref, b3_ref,
                w4_ref, b4_ref,
                o_ref):
    """Fused 4-layer MLP (sigmoid/sigmoid/sigmoid/linear) on one batch tile.

    Everything is f32: the kernel is HBM-bound, so the only thing that matters
    is the bytes of x read and out written; compute precision stays identical
    to the PyTorch module.  On a trailing partial batch tile the out-of-bounds
    rows hold garbage (possibly NaN after sigmoid) but Pallas masks them on
    writeback -- do not "fix" this by reading o_ref back.
    """
    x = x_ref[...]                                                  # [bb, F]

    h = jnp.dot(x, w1_ref[...], preferred_element_type=jnp.float32) + b1_ref[...]
    h = jax.nn.sigmoid(h)                                           # [bb, 10]

    h = jnp.dot(h, w2_ref[...], preferred_element_type=jnp.float32) + b2_ref[...]
    h = jax.nn.sigmoid(h)                                           # [bb, 5]

    h = jnp.dot(h, w3_ref[...], preferred_element_type=jnp.float32) + b3_ref[...]
    h = jax.nn.sigmoid(h)                                           # [bb, 10]

    out = jnp.dot(h, w4_ref[...], preferred_element_type=jnp.float32) + b4_ref[...]
    o_ref[...] = out.astype(o_ref.dtype)                            # [bb, F]


def _pick_block_b(B, F, in_bytes, out_bytes):
    """Batch-tile rows sized by per-step DMA volume, capped by a safe VMEM budget."""
    row_bytes = F * (in_bytes + out_bytes)
    # Target ~2 MiB of x+out traffic per grid step (amortizes the ~0.35 us
    # fixed per-step overhead; measured sweeps reach ~85% of HBM roofline
    # once tiles carry >= ~1 MiB).
    bb = max(8, (2 << 20) // row_bytes)
    # Keep double-buffered x + out tiles under ~12 MiB so the kernel fits the
    # default scoped-VMEM limit on every generation (v5e 16 MiB is the floor).
    bb = min(bb, max(8, (12 << 20) // (2 * row_bytes)))
    bb = min(bb, B)
    if bb < B:
        bb = max(8, (bb // 8) * 8)   # sublane-aligned partial tiles
    return int(bb)


@functools.partial(jax.jit, static_argnames=("block_b", "out_dtype"))
def sae_forward(x, params, *, block_b=None, out_dtype=None):
    """Run the SAE forward pass.

    x:        [B, F] float32 (F == nb_candidate)
    params:   dict with transposed weights w{i}_t: [in, out] and biases
              b{i}: [1, out], all float32
    block_b:  optional override for rows per batch tile (auto-sized otherwise)
    out_dtype: optional output dtype (e.g. jnp.bfloat16 to halve the largest
               HBM stream); defaults to x.dtype to match PyTorch semantics.
    """
    B, F = x.shape
    out_dtype = x.dtype if out_dtype is None else out_dtype

    w1_t, b1 = params["w1_t"], params["b1"]
    w2_t, b2 = params["w2_t"], params["b2"]
    w3_t, b3 = params["w3_t"], params["b3"]
    w4_t, b4 = params["w4_t"], params["b4"]

    in_bytes = x.dtype.itemsize
    out_bytes = jnp.dtype(out_dtype).itemsize
    bb = _pick_block_b(B, F, in_bytes, out_bytes) if block_b is None \
        else min(int(block_b), B)
    if bb < B:
        bb = max(8, (bb // 8) * 8)
    grid = (pl.cdiv(B, bb),)

    # Weights / biases are tiny; full-array blocks replicated to every step.
    def full_spec(shape):
        return pl.BlockSpec(shape, lambda i: (0, 0))

    weight_bytes = sum(int(w.size) * w.dtype.itemsize
                       for w in (w1_t, b1, w2_t, b2, w3_t, b3, w4_t, b4))
    cost = pl.CostEstimate(
        flops=2 * B * (F * 10 + 10 * 5 + 5 * 10 + 10 * F),
        transcendentals=B * (10 + 5 + 10),          # sigmoid -> exp on the EUP
        bytes_accessed=B * F * (in_bytes + out_bytes) + weight_bytes,
    )

    return pl.pallas_call(
        _sae_kernel,
        out_shape=jax.ShapeDtypeStruct((B, F), out_dtype),
        grid_spec=pltpu.PrefetchScalarGridSpec(
            num_scalar_prefetch=0,
            grid=grid,
            in_specs=[
                pl.BlockSpec((bb, F), lambda i: (i, 0)),     # x tile (f32)
                full_spec(w1_t.shape), full_spec(b1.shape),
                full_spec(w2_t.shape), full_spec(b2.shape),
                full_spec(w3_t.shape), full_spec(b3.shape),
                full_spec(w4_t.shape), full_spec(b4.shape),
            ],
            out_specs=pl.BlockSpec((bb, F), lambda i: (i, 0)),
        ),
        compiler_params=pltpu.CompilerParams(
            dimension_semantics=("parallel",)),
        cost_estimate=cost,
    )(x, w1_t, b1, w2_t, b2, w3_t, b3, w4_t, b4)


def init_sae_params(key, nb_candidate):
    """Deterministic init mimicking nn.Linear's U(-1/sqrt(fan_in), 1/sqrt(fan_in))."""
    dims = [(nb_candidate, 10), (10, 5), (5, 10), (10, nb_candidate)]
    params = {}
    for idx, (fan_in, fan_out) in enumerate(dims, start=1):
        key, kw, kb = jax.random.split(key, 3)
        bound = 1.0 / jnp.sqrt(jnp.float32(fan_in))
        w = jax.random.uniform(kw, (fan_out, fan_in), jnp.float32, -bound, bound)
        b = jax.random.uniform(kb, (fan_out,), jnp.float32, -bound, bound)
        params[f"w{idx}_t"] = jnp.transpose(w)          # [in, out] for x @ W_t
        params[f"b{idx}"] = b.reshape(1, fan_out)       # 2-D for TPU broadcast
    return params


def sae_reference(x, params):
    """Pure-JAX reference matching the PyTorch forward (all f32)."""
    h = jax.nn.sigmoid(x @ params["w1_t"] + params["b1"])
    h = jax.nn.sigmoid(h @ params["w2_t"] + params["b2"])
    h = jax.nn.sigmoid(h @ params["w3_t"] + params["b3"])
    return h @ params["w4_t"] + params["b4"]


if __name__ == "__main__":
    key = jax.random.PRNGKey(0)
    nb_candidate = 32          # stand-in for len(matrizTrain[0])
    batch = 1024               # small demo batch

    key, k_x, k_p = jax.random.split(key, 3)
    # MinMaxScaler(feature_range=(0, 1)) output -> values in [0, 1]
    x = jax.random.uniform(k_x, (batch, nb_candidate), jnp.float32, 0.0, 1.0)
    params = init_sae_params(k_p, nb_candidate)

    out = sae_forward(x, params)
    out = jax.block_until_ready(out)
    assert out.shape == (batch, nb_candidate)
    assert out.dtype == x.dtype

    ref = sae_reference(x, params)
    # Tolerance covers possible bf16-pass MXU accumulation differences between
    # the in-kernel dot lowering and XLA's reference matmul.
    assert jnp.allclose(out, ref, atol=5e-3, rtol=5e-3), "mismatch vs f32 reference"

    # Exercise a multi-step grid (partial trailing tile path) as well.
    out_tiled = jax.block_until_ready(sae_forward(x, params, block_b=256))
    assert jnp.allclose(out_tiled, ref, atol=5e-3, rtol=5e-3), "mismatch (tiled)"

    print("KERNEL_OK")
</pallas_src>

<mosaic_0001>
module attributes {stable_mosaic.version = 11 : i64} {
  func.func @_sae_kernel(%arg0: i32, %arg1: memref<1024x32xf32, #tpu.memory_space<vmem>>, %arg2: memref<32x10xf32, #tpu.memory_space<vmem>>, %arg3: memref<1x10xf32, #tpu.memory_space<vmem>>, %arg4: memref<10x5xf32, #tpu.memory_space<vmem>>, %arg5: memref<1x5xf32, #tpu.memory_space<vmem>>, %arg6: memref<5x10xf32, #tpu.memory_space<vmem>>, %arg7: memref<1x10xf32, #tpu.memory_space<vmem>>, %arg8: memref<10x32xf32, #tpu.memory_space<vmem>>, %arg9: memref<1x32xf32, #tpu.memory_space<vmem>>, %arg10: memref<1024x32xf32, #tpu.memory_space<vmem>>) attributes {dimension_semantics = [#tpu.dimension_semantics<parallel>], iteration_bounds = array<i64: 1>, scalar_prefetch = 0 : i64, scratch_operands = 0 : i64, tpu.core_type = #tpu.core_type<tc>, window_params = [{transform_indices = @transform_0, window_bounds = array<i64: 1024, 32>}, {pipeline_mode = #tpu.pipeline_mode<synchronous>, transform_indices = @transform_1, window_bounds = array<i64: 32, 10>}, {pipeline_mode = #tpu.pipeline_mode<synchronous>, transform_indices = @transform_2, window_bounds = array<i64: 1, 10>}, {pipeline_mode = #tpu.pipeline_mode<synchronous>, transform_indices = @transform_3, window_bounds = array<i64: 10, 5>}, {pipeline_mode = #tpu.pipeline_mode<synchronous>, transform_indices = @transform_4, window_bounds = array<i64: 1, 5>}, {pipeline_mode = #tpu.pipeline_mode<synchronous>, transform_indices = @transform_5, window_bounds = array<i64: 5, 10>}, {pipeline_mode = #tpu.pipeline_mode<synchronous>, transform_indices = @transform_6, window_bounds = array<i64: 1, 10>}, {pipeline_mode = #tpu.pipeline_mode<synchronous>, transform_indices = @transform_7, window_bounds = array<i64: 10, 32>}, {pipeline_mode = #tpu.pipeline_mode<synchronous>, transform_indices = @transform_8, window_bounds = array<i64: 1, 32>}, {transform_indices = @transform_9, window_bounds = array<i64: 1024, 32>}]} {
    %c0 = arith.constant 0 : index
    %c0_0 = arith.constant 0 : index
    %0 = vector.load %arg1[%c0, %c0_0] : memref<1024x32xf32, #tpu.memory_space<vmem>>, vector<1024x32xf32>
    %c0_1 = arith.constant 0 : index
    %c0_2 = arith.constant 0 : index
    %1 = vector.load %arg2[%c0_1, %c0_2] : memref<32x10xf32, #tpu.memory_space<vmem>>, vector<32x10xf32>
    %cst = arith.constant dense<0.000000e+00> : vector<1024x10xf32>
    %2 = tpu.matmul %0, %1, %cst {dimension_numbers = #tpu.dot_dimension_numbers<[1], [0], [0], [1], [0, 0, 1, 1], [], []>} : vector<1024x32xf32>, vector<32x10xf32>, vector<1024x10xf32> -> vector<1024x10xf32>
    %c0_3 = arith.constant 0 : index
    %c0_4 = arith.constant 0 : index
    %3 = vector.load %arg3[%c0_3, %c0_4] : memref<1x10xf32, #tpu.memory_space<vmem>>, vector<1x10xf32>
    %4 = vector.broadcast %3 : vector<1x10xf32> to vector<1024x10xf32>
    %5 = arith.addf %2, %4 : vector<1024x10xf32>
    %6 = arith.negf %5 : vector<1024x10xf32>
    %7 = math.exp %6 : vector<1024x10xf32>
    %cst_5 = arith.constant 1.000000e+00 : f32
    %8 = vector.broadcast %cst_5 : f32 to vector<1024x10xf32>
    %9 = arith.addf %8, %7 : vector<1024x10xf32>
    %10 = arith.divf %8, %9 : vector<1024x10xf32>
    %c0_6 = arith.constant 0 : index
    %c0_7 = arith.constant 0 : index
    %11 = vector.load %arg4[%c0_6, %c0_7] : memref<10x5xf32, #tpu.memory_space<vmem>>, vector<10x5xf32>
    %cst_8 = arith.constant dense<0.000000e+00> : vector<1024x5xf32>
    %12 = tpu.matmul %10, %11, %cst_8 {dimension_numbers = #tpu.dot_dimension_numbers<[1], [0], [0], [1], [0, 0, 1, 1], [], []>} : vector<1024x10xf32>, vector<10x5xf32>, vector<1024x5xf32> -> vector<1024x5xf32>
    %c0_9 = arith.constant 0 : index
    %c0_10 = arith.constant 0 : index
    %13 = vector.load %arg5[%c0_9, %c0_10] : memref<1x5xf32, #tpu.memory_space<vmem>>, vector<1x5xf32>
    %14 = vector.broadcast %13 : vector<1x5xf32> to vector<1024x5xf32>
    %15 = arith.addf %12, %14 : vector<1024x5xf32>
    %16 = arith.negf %15 : vector<1024x5xf32>
    %17 = math.exp %16 : vector<1024x5xf32>
    %cst_11 = arith.constant 1.000000e+00 : f32
    %18 = vector.broadcast %cst_11 : f32 to vector<1024x5xf32>
    %19 = arith.addf %18, %17 : vector<1024x5xf32>
    %20 = arith.divf %18, %19 : vector<1024x5xf32>
    %c0_12 = arith.constant 0 : index
    %c0_13 = arith.constant 0 : index
    %21 = vector.load %arg6[%c0_12, %c0_13] : memref<5x10xf32, #tpu.memory_space<vmem>>, vector<5x10xf32>
    %cst_14 = arith.constant dense<0.000000e+00> : vector<1024x10xf32>
    %22 = tpu.matmul %20, %21, %cst_14 {dimension_numbers = #tpu.dot_dimension_numbers<[1], [0], [0], [1], [0, 0, 1, 1], [], []>} : vector<1024x5xf32>, vector<5x10xf32>, vector<1024x10xf32> -> vector<1024x10xf32>
    %c0_15 = arith.constant 0 : index
    %c0_16 = arith.constant 0 : index
    %23 = vector.load %arg7[%c0_15, %c0_16] : memref<1x10xf32, #tpu.memory_space<vmem>>, vector<1x10xf32>
    %24 = vector.broadcast %23 : vector<1x10xf32> to vector<1024x10xf32>
    %25 = arith.addf %22, %24 : vector<1024x10xf32>
    %26 = arith.negf %25 : vector<1024x10xf32>
    %27 = math.exp %26 : vector<1024x10xf32>
    %cst_17 = arith.constant 1.000000e+00 : f32
    %28 = vector.broadcast %cst_17 : f32 to vector<1024x10xf32>
    %29 = arith.addf %28, %27 : vector<1024x10xf32>
    %30 = arith.divf %28, %29 : vector<1024x10xf32>
    %c0_18 = arith.constant 0 : index
    %c0_19 = arith.constant 0 : index
    %31 = vector.load %arg8[%c0_18, %c0_19] : memref<10x32xf32, #tpu.memory_space<vmem>>, vector<10x32xf32>
    %cst_20 = arith.constant dense<0.000000e+00> : vector<1024x32xf32>
    %32 = tpu.matmul %30, %31, %cst_20 {dimension_numbers = #tpu.dot_dimension_numbers<[1], [0], [0], [1], [0, 0, 1, 1], [], []>} : vector<1024x10xf32>, vector<10x32xf32>, vector<1024x32xf32> -> vector<1024x32xf32>
    %c0_21 = arith.constant 0 : index
    %c0_22 = arith.constant 0 : index
    %33 = vector.load %arg9[%c0_21, %c0_22] : memref<1x32xf32, #tpu.memory_space<vmem>>, vector<1x32xf32>
    %34 = vector.broadcast %33 : vector<1x32xf32> to vector<1024x32xf32>
    %35 = arith.addf %32, %34 : vector<1024x32xf32>
    %c0_23 = arith.constant 0 : index
    %c0_24 = arith.constant 0 : index
    %36 = vector.load %arg10[%c0_23, %c0_24] : memref<1024x32xf32, #tpu.memory_space<vmem>>, vector<1024x32xf32>
    tpu.vector_store %arg10[%c0_23, %c0_24], %35 {strides = array<i32>} : memref<1024x32xf32, #tpu.memory_space<vmem>>, vector<1024x32xf32>,
    return
  }
  func.func @transform_0(%arg0: i32) -> (i32, i32) {
    %c0_i32 = arith.constant 0 : i32
    %c0_i32_0 = arith.constant 0 : i32
    return %arg0, %c0_i32 : i32, i32
  }
  func.func @transform_1(%arg0: i32) -> (i32, i32) {
    %c0_i32 = arith.constant 0 : i32
    %c0_i32_0 = arith.constant 0 : i32
    %c0_i32_1 = arith.constant 0 : i32
    return %c0_i32, %c0_i32_0 : i32, i32
  }
  func.func @transform_2(%arg0: i32) -> (i32, i32) {
    %c0_i32 = arith.constant 0 : i32
    %c0_i32_0 = arith.constant 0 : i32
    %c0_i32_1 = arith.constant 0 : i32
    return %c0_i32, %c0_i32_0 : i32, i32
  }
  func.func @transform_3(%arg0: i32) -> (i32, i32) {
    %c0_i32 = arith.constant 0 : i32
    %c0_i32_0 = arith.constant 0 : i32
    %c0_i32_1 = arith.constant 0 : i32
    return %c0_i32, %c0_i32_0 : i32, i32
  }
  func.func @transform_4(%arg0: i32) -> (i32, i32) {
    %c0_i32 = arith.constant 0 : i32
    %c0_i32_0 = arith.constant 0 : i32
    %c0_i32_1 = arith.constant 0 : i32
    return %c0_i32, %c0_i32_0 : i32, i32
  }
  func.func @transform_5(%arg0: i32) -> (i32, i32) {
    %c0_i32 = arith.constant 0 : i32
    %c0_i32_0 = arith.constant 0 : i32
    %c0_i32_1 = arith.constant 0 : i32
    return %c0_i32, %c0_i32_0 : i32, i32
  }
  func.func @transform_6(%arg0: i32) -> (i32, i32) {
    %c0_i32 = arith.constant 0 : i32
    %c0_i32_0 = arith.constant 0 : i32
    %c0_i32_1 = arith.constant 0 : i32
    return %c0_i32, %c0_i32_0 : i32, i32
  }
  func.func @transform_7(%arg0: i32) -> (i32, i32) {
    %c0_i32 = arith.constant 0 : i32
    %c0_i32_0 = arith.constant 0 : i32
    %c0_i32_1 = arith.constant 0 : i32
    return %c0_i32, %c0_i32_0 : i32, i32
  }
  func.func @transform_8(%arg0: i32) -> (i32, i32) {
    %c0_i32 = arith.constant 0 : i32
    %c0_i32_0 = arith.constant 0 : i32
    %c0_i32_1 = arith.constant 0 : i32
    return %c0_i32, %c0_i32_0 : i32, i32
  }
  func.func @transform_9(%arg0: i32) -> (i32, i32) {
    %c0_i32 = arith.constant 0 : i32
    %c0_i32_0 = arith.constant 0 : i32
    return %arg0, %c0_i32 : i32, i32
  }
}

</mosaic_0001>

<bundles_post_ra>
// kernel: sae_forward.1
= control target key start
LH: loop header
LB: loop body
LE: loop exit
PB: predicated region body
PF: predicated region fallthrough
CT: control target
= control target key end

     0   :  { %vm171_vm0 = vcmask 261120   ;;  %vm2423_vm1 = vcmask 1041408   ;;  %vm4293_vm2 = vcmask 1044480   ;;  %vm2038_vm3 = vcmask 80896   ;;  %s13509_s1 = inlined_call_operand.vmem [shape: f32[32,10], index: 1, kind: input, shape index: {}]   ;;  %s13510_s0 = inlined_call_operand.vmem [shape: f32[1024,32], index: 0, kind: input, shape index: {}]   ;;  %s13511_s3 = inlined_call_operand.vmem [shape: f32[10,5], index: 3, kind: input, shape index: {}]   ;;  %s13512_s5 = inlined_call_operand.vmem [shape: f32[5,10], index: 5, kind: input, shape index: {}]   ;;  %s13513_s2 = inlined_call_operand.vmem [shape: f32[1,10], index: 2, kind: input, shape index: {}]   ;;  %s13514_s7 = inlined_call_operand.vmem [shape: f32[10,32], index: 7, kind: input, shape index: {}]   ;;  %s13515_s4 = inlined_call_operand.vmem [shape: f32[1,5], index: 4, kind: input, shape index: {}]   ;;  %s13516_s6 = inlined_call_operand.vmem [shape: f32[1,10], index: 6, kind: input, shape index: {}]   ;;  %s13517_s8 = inlined_call_operand.vmem [shape: f32[1,32], index: 8, kind: input, shape index: {}]   ;;  %s13518_s9 = inlined_call_operand.vmem [shape: f32[1024,32], index: 9, kind: output, shape index: {}]  }
   0x1   :  { %v163_v0 = vld [vmem:[%s13509_s1 + $0x18] sm:$0xff]  ;;  %v162_v1 = vld [vmem:[%s13509_s1 + $0x10] sm:$0xff]  ;;  %v32_v2 = vld [vmem:[%s13510_s0] sm:$0xff]  ;;  %vm3908_vm4 = vcmask 39936  }
   0x2   :  { %8427 = vmatprep.subr.mxu0 %v163_v0  ;;  %v161_v3 = vld [vmem:[%s13509_s1 + $0x8] sm:$0xff]  ;;  %8435 = vmatprep.mubr.msk.f32.mxu0 %vm171_vm0, %v32_v2  ;;  %v160_v4 = vld [vmem:[%s13509_s1] sm:$0xff]  ;;  %v34_v6 = vld [vmem:[%s13510_s0 + $0x10] sm:$0xff] }
   0x3   :  { %8428 = vmatpush3.msra.mxu0 %v163_v0  ;;  %v33_v5 = vld [vmem:[%s13510_s0 + $0x8] sm:$0xff]  ;;  %v35_v7 = vld [vmem:[%s13510_s0 + $0x18] sm:$0xff]  ;;  %v36_v8 = vld [vmem:[%s13510_s0 + $0x20] sm:$0xff] }
   0x4   :  { %8429 = vmatprep.subr.mxu0 %v162_v1  ;;  %v37_v9 = vld [vmem:[%s13510_s0 + $0x28] sm:$0xff]  ;;  %v38_v10 = vld [vmem:[%s13510_s0 + $0x30] sm:$0xff]  ;;  %v39_v11 = vld [vmem:[%s13510_s0 + $0x38] sm:$0xff] }
   0x5   :  { %8430 = vmatpush3.msra.mxu0 %v162_v1  ;;  %v40_v12 = vld [vmem:[%s13510_s0 + $0x40] sm:$0xff]  ;;  %v41_v13 = vld [vmem:[%s13510_s0 + $0x48] sm:$0xff]  ;;  %v42_v14 = vld [vmem:[%s13510_s0 + $0x50] sm:$0xff] }
   0x6   :  { %8431 = vmatprep.subr.mxu0 %v161_v3  ;;  %v43_v15 = vld [vmem:[%s13510_s0 + $0x58] sm:$0xff]  ;;  %v44_v16 = vld [vmem:[%s13510_s0 + $0x60] sm:$0xff]  ;;  %v45_v17 = vld [vmem:[%s13510_s0 + $0x68] sm:$0xff] }
   0x7   :  { %8432 = vmatpush3.msra.mxu0 %v161_v3  ;;  %v46_v18 = vld [vmem:[%s13510_s0 + $0x70] sm:$0xff]  ;;  %v47_v19 = vld [vmem:[%s13510_s0 + $0x78] sm:$0xff]  ;;  %v48_v20 = vld [vmem:[%s13510_s0 + $0x80] sm:$0xff] }
   0x8   :  { %8433 = vmatprep.subr.mxu0 %v160_v4  ;;  %v49_v21 = vld [vmem:[%s13510_s0 + $0x88] sm:$0xff]  ;;  %v50_v22 = vld [vmem:[%s13510_s0 + $0x90] sm:$0xff]  ;;  %v51_v23 = vld [vmem:[%s13510_s0 + $0x98] sm:$0xff] }
   0x9   :  { %8434 = vmatpush3.msra.mxu0 %v160_v4  ;;  %v52_v24 = vld [vmem:[%s13510_s0 + $0xa0] sm:$0xff]  ;;  %v53_v25 = vld [vmem:[%s13510_s0 + $0xa8] sm:$0xff]  ;;  %v54_v26 = vld [vmem:[%s13510_s0 + $0xb0] sm:$0xff] }
   0xa   :  { %8436 = vmatmul.mubr.msk.f32.vlgmr.msra.gmra.mxu0 %vm171_vm0, %v33_v5  ;;  %v55_v27 = vld [vmem:[%s13510_s0 + $0xb8] sm:$0xff]  ;;  %v56_v28 = vld [vmem:[%s13510_s0 + $0xc0] sm:$0xff]  ;;  %v57_v29 = vld [vmem:[%s13510_s0 + $0xc8] sm:$0xff] }
   0xb   :  { %8438 = vmatprep.mubr.msk.f32.mxu0 %vm171_vm0, %v34_v6  ;;  %v58_v30 = vld [vmem:[%s13510_s0 + $0xd0] sm:$0xff]  ;;  %v59_v31 = vld [vmem:[%s13510_s0 + $0xd8] sm:$0xff]  ;;  %v60_v32 = vld [vmem:[%s13510_s0 + $0xe0] sm:$0xff] }
   0xc   :  { %v61_v33 = vld [vmem:[%s13510_s0 + $0xe8] sm:$0xff]  ;;  %v62_v34 = vld [vmem:[%s13510_s0 + $0xf0] sm:$0xff]  ;;  %v63_v35 = vld [vmem:[%s13510_s0 + $0xf8] sm:$0xff] }
   0xd   :  { %v64_v36 = vld [vmem:[%s13510_s0 + $0x100] sm:$0xff]  ;;  %v65_v37 = vld [vmem:[%s13510_s0 + $0x108] sm:$0xff]  ;;  %v66_v38 = vld [vmem:[%s13510_s0 + $0x110] sm:$0xff] }
   0xe   :  { %8439 = vmatmul.mubr.msk.f32.gmra.mxu0 %vm171_vm0, %v35_v7  ;;  %v67_v39 = vld [vmem:[%s13510_s0 + $0x118] sm:$0xff]  ;;  %v68_v40 = vld [vmem:[%s13510_s0 + $0x120] sm:$0xff]  ;;  %v69_v41 = vld [vmem:[%s13510_s0 + $0x128] sm:$0xff] }
   0xf   :  { %8441 = vmatprep.mubr.msk.f32.mxu0 %vm171_vm0, %v36_v8  ;;  %v70_v42 = vld [vmem:[%s13510_s0 + $0x130] sm:$0xff]  ;;  %v71_v43 = vld [vmem:[%s13510_s0 + $0x138] sm:$0xff]  ;;  %v72_v44 = vld [vmem:[%s13510_s0 + $0x140] sm:$0xff] }
  0x10   :  { %v73_v45 = vld [vmem:[%s13510_s0 + $0x148] sm:$0xff]  ;;  %v74_v46 = vld [vmem:[%s13510_s0 + $0x150] sm:$0xff]  ;;  %v75_v47 = vld [vmem:[%s13510_s0 + $0x158] sm:$0xff] }
  0x11   :  { %v76_v48 = vld [vmem:[%s13510_s0 + $0x160] sm:$0xff]  ;;  %v77_v49 = vld [vmem:[%s13510_s0 + $0x168] sm:$0xff]  ;;  %v78_v50 = vld [vmem:[%s13510_s0 + $0x170] sm:$0xff] }
  0x12   :  { %8442 = vmatmul.mubr.msk.f32.gmra.mxu0 %vm171_vm0, %v37_v9  ;;  %v79_v51 = vld [vmem:[%s13510_s0 + $0x178] sm:$0xff]  ;;  %v80_v52 = vld [vmem:[%s13510_s0 + $0x180] sm:$0xff]  ;;  %v81_v53 = vld [vmem:[%s13510_s0 + $0x188] sm:$0xff] }
  0x13   :  { %8444 = vmatprep.mubr.msk.f32.mxu0 %vm171_vm0, %v38_v10  ;;  %v82_v54 = vld [vmem:[%s13510_s0 + $0x190] sm:$0xff]  ;;  %v83_v55 = vld [vmem:[%s13510_s0 + $0x198] sm:$0xff]  ;;  %v84_v56 = vld [vmem:[%s13510_s0 + $0x1a0] sm:$0xff] }
  0x14   :  { %v2030_v57 = vld [vmem:[%s13511_s3 + $0x8] sm:$0x3]  ;;  %v2029_v58 = vld [vmem:[%s13511_s3] sm:$0xff]  ;;  %v86_v60 = vld [vmem:[%s13510_s0 + $0x1b0] sm:$0xff] }
  0x15   :  { %8627 = vmatprep.subr.msk.mxu1 %vm2423_vm1, %v2030_v57  ;;  %v85_v59 = vld [vmem:[%s13510_s0 + $0x1a8] sm:$0xff]  ;;  %v87_v61 = vld [vmem:[%s13510_s0 + $0x1b8] sm:$0xff]  ;;  %v88_v62 = vld [vmem:[%s13510_s0 + $0x1c0] sm:$0xff] }
  0x16   :  { %8445 = vmatmul.mubr.msk.f32.gmra.mxu0 %vm171_vm0, %v39_v11  ;;  %8628 = vmatpush3.msk.msra.mxu1 %vm2423_vm1, %v2030_v57  ;;  %v89_v63 = vld [vmem:[%s13510_s0 + $0x1c8] sm:$0xff]  ;;  %v90_v0 = vld [vmem:[%s13510_s0 + $0x1d0] sm:$0xff]  ;;  %v91_v1 = vld [vmem:[%s13510_s0 + $0x1d8] sm:$0xff] }
  0x17   :  { %8447 = vmatprep.mubr.msk.f32.mxu0 %vm171_vm0, %v40_v12  ;;  %8629 = vmatprep.subr.mxu1 %v2029_v58  ;;  %v92_v2 = vld [vmem:[%s13510_s0 + $0x1e0] sm:$0xff]  ;;  %v93_v3 = vld [vmem:[%s13510_s0 + $0x1e8] sm:$0xff]  ;;  %v94_v4 = vld [vmem:[%s13510_s0 + $0x1f0] sm:$0xff] }
  0x18   :  { %8630 = vmatpush3.msra.mxu1 %v2029_v58  ;;  %v95_v5 = vld [vmem:[%s13510_s0 + $0x1f8] sm:$0xff]  ;;  %v96_v6 = vld [vmem:[%s13510_s0 + $0x200] sm:$0xff]  ;;  %v97_v8 = vld [vmem:[%s13510_s0 + $0x208] sm:$0xff] }
  0x19   :  { %v11087_v7 = vld [vmem:[%s13512_s5] sm:$0x1f]  ;;  %v98_v9 = vld [vmem:[%s13510_s0 + $0x210] sm:$0xff]  ;;  %v99_v10 = vld [vmem:[%s13510_s0 + $0x218] sm:$0xff] }
  0x1a   :  { %8448 = vmatmul.mubr.msk.f32.gmra.mxu0 %vm171_vm0, %v41_v13  ;;  %8823 = vmatprep.subr.msk.mxu1 %vm4293_vm2, %v11087_v7  ;;  %v100_v11 = vld [vmem:[%s13510_s0 + $0x220] sm:$0xff]  ;;  %v101_v12 = vld [vmem:[%s13510_s0 + $0x228] sm:$0xff]  ;;  %v102_v13 = vld [vmem:[%s13510_s0 + $0x230] sm:$0xff] }
  0x1b   :  { %8450 = vmatprep.mubr.msk.f32.mxu0 %vm171_vm0, %v42_v14  ;;  %v103_v14 = vld [vmem:[%s13510_s0 + $0x238] sm:$0xff] }
  0x1e   :  { %8451 = vmatmul.mubr.msk.f32.gmra.mxu0 %vm171_vm0, %v43_v15  ;;  %v104_v15 = vld [vmem:[%s13510_s0 + $0x240] sm:$0xff] }
  0x1f   :  { %8453 = vmatprep.mubr.msk.f32.mxu0 %vm171_vm0, %v44_v16  ;;  %v105_v16 = vld [vmem:[%s13510_s0 + $0x248] sm:$0xff] }
  0x22   :  { %8454 = vmatmul.mubr.msk.f32.gmra.mxu0 %vm171_vm0, %v45_v17  ;;  %v106_v17 = vld [vmem:[%s13510_s0 + $0x250] sm:$0xff] }
  0x23   :  { %8456 = vmatprep.mubr.msk.f32.mxu0 %vm171_vm0, %v46_v18  ;;  %v107_v18 = vld [vmem:[%s13510_s0 + $0x258] sm:$0xff] }
  0x26   :  { %8457 = vmatmul.mubr.msk.f32.gmra.mxu0 %vm171_vm0, %v47_v19  ;;  %v108_v19 = vld [vmem:[%s13510_s0 + $0x260] sm:$0xff] }
  0x27   :  { %8459 = vmatprep.mubr.msk.f32.mxu0 %vm171_vm0, %v48_v20  ;;  %v109_v20 = vld [vmem:[%s13510_s0 + $0x268] sm:$0xff] }
  0x2a   :  { %8460 = vmatmul.mubr.msk.f32.gmra.mxu0 %vm171_vm0, %v49_v21  ;;  %v110_v21 = vld [vmem:[%s13510_s0 + $0x270] sm:$0xff] }
  0x2b   :  { %8462 = vmatprep.mubr.msk.f32.mxu0 %vm171_vm0, %v50_v22  ;;  %v111_v22 = vld [vmem:[%s13510_s0 + $0x278] sm:$0xff] }
  0x2e   :  { %8463 = vmatmul.mubr.msk.f32.gmra.mxu0 %vm171_vm0, %v51_v23  ;;  %v112_v23 = vld [vmem:[%s13510_s0 + $0x280] sm:$0xff] }
  0x2f   :  { %8465 = vmatprep.mubr.msk.f32.mxu0 %vm171_vm0, %v52_v24  ;;  %v113_v24 = vld [vmem:[%s13510_s0 + $0x288] sm:$0xff] }
  0x32   :  { %8466 = vmatmul.mubr.msk.f32.gmra.mxu0 %vm171_vm0, %v53_v25  ;;  %v114_v25 = vld [vmem:[%s13510_s0 + $0x290] sm:$0xff] }
  0x33   :  { %8468 = vmatprep.mubr.msk.f32.mxu0 %vm171_vm0, %v54_v26  ;;  %v115_v26 = vld [vmem:[%s13510_s0 + $0x298] sm:$0xff] }
  0x36   :  { %8469 = vmatmul.mubr.msk.f32.gmra.mxu0 %vm171_vm0, %v55_v27  ;;  %v116_v27 = vld [vmem:[%s13510_s0 + $0x2a0] sm:$0xff] }
  0x37   :  { %8471 = vmatprep.mubr.msk.f32.mxu0 %vm171_vm0, %v56_v28  ;;  %v117_v28 = vld [vmem:[%s13510_s0 + $0x2a8] sm:$0xff] }
  0x3a   :  { %8472 = vmatmul.mubr.msk.f32.gmra.mxu0 %vm171_vm0, %v57_v29  ;;  %v118_v29 = vld [vmem:[%s13510_s0 + $0x2b0] sm:$0xff] }
  0x3b   :  { %8474 = vmatprep.mubr.msk.f32.mxu0 %vm171_vm0, %v58_v30  ;;  %v119_v30 = vld [vmem:[%s13510_s0 + $0x2b8] sm:$0xff] }
  0x3e   :  { %8475 = vmatmul.mubr.msk.f32.gmra.mxu0 %vm171_vm0, %v59_v31  ;;  %v120_v31 = vld [vmem:[%s13510_s0 + $0x2c0] sm:$0xff] }
  0x3f   :  { %8477 = vmatprep.mubr.msk.f32.mxu0 %vm171_vm0, %v60_v32  ;;  %v121_v32 = vld [vmem:[%s13510_s0 + $0x2c8] sm:$0xff] }
  0x42   :  { %8478 = vmatmul.mubr.msk.f32.gmra.mxu0 %vm171_vm0, %v61_v33  ;;  %v122_v33 = vld [vmem:[%s13510_s0 + $0x2d0] sm:$0xff] }
  0x43   :  { %8480 = vmatprep.mubr.msk.f32.mxu0 %vm171_vm0, %v62_v34  ;;  %v123_v34 = vld [vmem:[%s13510_s0 + $0x2d8] sm:$0xff] }
  0x46   :  { %8481 = vmatmul.mubr.msk.f32.gmra.mxu0 %vm171_vm0, %v63_v35  ;;  %v124_v35 = vld [vmem:[%s13510_s0 + $0x2e0] sm:$0xff] }
  0x47   :  { %8483 = vmatprep.mubr.msk.f32.mxu0 %vm171_vm0, %v64_v36  ;;  %v125_v36 = vld [vmem:[%s13510_s0 + $0x2e8] sm:$0xff] }
  0x4a   :  { %8484 = vmatmul.mubr.msk.f32.gmra.mxu0 %vm171_vm0, %v65_v37  ;;  %v126_v37 = vld [vmem:[%s13510_s0 + $0x2f0] sm:$0xff] }
  0x4b   :  { %8486 = vmatprep.mubr.msk.f32.mxu0 %vm171_vm0, %v66_v38  ;;  %v127_v38 = vld [vmem:[%s13510_s0 + $0x2f8] sm:$0xff] }
  0x4e   :  { %8487 = vmatmul.mubr.msk.f32.gmra.mxu0 %vm171_vm0, %v67_v39  ;;  %v128_v39 = vld [vmem:[%s13510_s0 + $0x300] sm:$0xff] }
  0x4f   :  { %8489 = vmatprep.mubr.msk.f32.mxu0 %vm171_vm0, %v68_v40  ;;  %v129_v40 = vld [vmem:[%s13510_s0 + $0x308] sm:$0xff] }
  0x52   :  { %8490 = vmatmul.mubr.msk.f32.gmra.mxu0 %vm171_vm0, %v69_v41  ;;  %v11227_v41 = vld [vmem:[%s13513_s2] ss:$0 sm:$0xff] }
  0x53   :  { %8492 = vmatprep.mubr.msk.f32.mxu0 %vm171_vm0, %v70_v42  ;;  %v130_v42 = vld [vmem:[%s13510_s0 + $0x310] sm:$0xff] }
  0x56   :  { %8493 = vmatmul.mubr.msk.f32.gmra.mxu0 %vm171_vm0, %v71_v43 }
  0x57   :  { %8495 = vmatprep.mubr.msk.f32.mxu0 %vm171_vm0, %v72_v44 }
  0x5a   :  { %8496 = vmatmul.mubr.msk.f32.gmra.mxu0 %vm171_vm0, %v73_v45  ;;  %v131_v45 = vld [vmem:[%s13510_s0 + $0x318] sm:$0xff] }
  0x5b   :  { %8498 = vmatprep.mubr.msk.f32.mxu0 %vm171_vm0, %v74_v46 }
  0x5e   :  { %8499 = vmatmul.mubr.msk.f32.gmra.mxu0 %vm171_vm0, %v75_v47  ;;  %v132_v47 = vld [vmem:[%s13510_s0 + $0x320] sm:$0xff] }
  0x5f   :  { %8501 = vmatprep.mubr.msk.f32.mxu0 %vm171_vm0, %v76_v48 }
  0x62   :  { %8502 = vmatmul.mubr.msk.f32.gmra.mxu0 %vm171_vm0, %v77_v49 }
  0x63   :  { %8504 = vmatprep.mubr.msk.f32.mxu0 %vm171_vm0, %v78_v50 }
  0x66   :  { %8505 = vmatmul.mubr.msk.f32.gmra.mxu0 %vm171_vm0, %v79_v51 }
  0x67   :  { %8507 = vmatprep.mubr.msk.f32.mxu0 %vm171_vm0, %v80_v52 }
  0x6a   :  { %8508 = vmatmul.mubr.msk.f32.gmra.mxu0 %vm171_vm0, %v81_v53  ;;  %v133_v53 = vld [vmem:[%s13510_s0 + $0x328] sm:$0xff] }
  0x6b   :  { %8510 = vmatprep.mubr.msk.f32.mxu0 %vm171_vm0, %v82_v54 }
  0x6e   :  { %8511 = vmatmul.mubr.msk.f32.gmra.mxu0 %vm171_vm0, %v83_v55  ;;  %v134_v55 = vld [vmem:[%s13510_s0 + $0x330] sm:$0xff] }
  0x6f   :  { %8513 = vmatprep.mubr.msk.f32.mxu0 %vm171_vm0, %v84_v56 }
  0x72   :  { %8514 = vmatmul.mubr.msk.f32.gmra.mxu0 %vm171_vm0, %v85_v59 }
  0x73   :  { %8516 = vmatprep.mubr.msk.f32.mxu0 %vm171_vm0, %v86_v60 }
  0x76   :  { %8517 = vmatmul.mubr.msk.f32.gmra.mxu0 %vm171_vm0, %v87_v61  ;;  %v135_v61 = vld [vmem:[%s13510_s0 + $0x338] sm:$0xff] }
  0x77   :  { %8519 = vmatprep.mubr.msk.f32.mxu0 %vm171_vm0, %v88_v62 }
  0x7a   :  { %8520 = vmatmul.mubr.msk.f32.gmra.mxu0 %vm171_vm0, %v89_v63  ;;  %v136_v63 = vld [vmem:[%s13510_s0 + $0x340] sm:$0xff] }
  0x7b   :  { %8522 = vmatprep.mubr.msk.f32.mxu0 %vm171_vm0, %v90_v0 }
  0x7e   :  { %8523 = vmatmul.mubr.msk.f32.gmra.mxu0 %vm171_vm0, %v91_v1 }
  0x7f   :  { %8525 = vmatprep.mubr.msk.f32.mxu0 %vm171_vm0, %v92_v2 }
  0x82   :  { %8526 = vmatmul.mubr.msk.f32.gmra.mxu0 %vm171_vm0, %v93_v3 }
  0x83   :  { %8528 = vmatprep.mubr.msk.f32.mxu0 %vm171_vm0, %v94_v4 }
  0x86   :  { %8529 = vmatmul.mubr.msk.f32.gmra.mxu0 %vm171_vm0, %v95_v5  ;;  %v137_v5 = vld [vmem:[%s13510_s0 + $0x348] sm:$0xff] }
  0x87   :  { %8531 = vmatprep.mubr.msk.f32.mxu0 %vm171_vm0, %v96_v6 }
  0x8a   :  { %8532 = vmatmul.mubr.msk.f32.gmra.mxu0 %vm171_vm0, %v97_v8  ;;  %v138_v8 = vld [vmem:[%s13510_s0 + $0x350] sm:$0xff] }
  0x8b   :  { %8534 = vmatprep.mubr.msk.f32.mxu0 %vm171_vm0, %v98_v9 }
  0x8e   :  { %8535 = vmatmul.mubr.msk.f32.gmra.mxu0 %vm171_vm0, %v99_v10 }
  0x8f   :  { %8537 = vmatprep.mubr.msk.f32.mxu0 %vm171_vm0, %v100_v11 }
  0x92   :  { %8538 = vmatmul.mubr.msk.f32.gmra.mxu0 %vm171_vm0, %v101_v12 }
  0x93   :  { %8540 = vmatprep.mubr.msk.f32.mxu0 %vm171_vm0, %v102_v13 }
  0x96   :  { %8541 = vmatmul.mubr.msk.f32.gmra.mxu0 %vm171_vm0, %v103_v14  ;;  %v139_v14 = vld [vmem:[%s13510_s0 + $0x358] sm:$0xff] }
  0x97   :  { %8543 = vmatprep.mubr.msk.f32.mxu0 %vm171_vm0, %v104_v15 }
  0x9a   :  { %8544 = vmatmul.mubr.msk.f32.gmra.mxu0 %vm171_vm0, %v105_v16 }
  0x9b   :  { %8546 = vmatprep.mubr.msk.f32.mxu0 %vm171_vm0, %v106_v17  ;;  %v140_v17 = vld [vmem:[%s13510_s0 + $0x360] sm:$0xff] }
  0x9e   :  { %8547 = vmatmul.mubr.msk.f32.gmra.mxu0 %vm171_vm0, %v107_v18 }
  0x9f   :  { %8549 = vmatprep.mubr.msk.f32.mxu0 %vm171_vm0, %v108_v19 }
  0xa2   :  { %8550 = vmatmul.mubr.msk.f32.gmra.mxu0 %vm171_vm0, %v109_v20 }
  0xa3   :  { %8552 = vmatprep.mubr.msk.f32.mxu0 %vm171_vm0, %v110_v21 }
  0xa6   :  { %8553 = vmatmul.mubr.msk.f32.gmra.mxu0 %vm171_vm0, %v111_v22 }
  0xa7   :  { %8555 = vmatprep.mubr.msk.f32.mxu0 %vm171_vm0, %v112_v23 }
  0xaa   :  { %8556 = vmatmul.mubr.msk.f32.gmra.mxu0 %vm171_vm0, %v113_v24 }
  0xab   :  { %8558 = vmatprep.mubr.msk.f32.mxu0 %vm171_vm0, %v114_v25 }
  0xae   :  { %8559 = vmatmul.mubr.msk.f32.gmra.mxu0 %vm171_vm0, %v115_v26  ;;  %v141_v26 = vld [vmem:[%s13510_s0 + $0x368] sm:$0xff] }
  0xaf   :  { %8561 = vmatprep.mubr.msk.f32.mxu0 %vm171_vm0, %v116_v27 }
  0xb2   :  { %8562 = vmatmul.mubr.msk.f32.gmra.mxu0 %vm171_vm0, %v117_v28 }
  0xb3   :  { %8564 = vmatprep.mubr.msk.f32.mxu0 %vm171_vm0, %v118_v29  ;;  %v142_v29 = vld [vmem:[%s13510_s0 + $0x370] sm:$0xff] }
  0xb6   :  { %8565 = vmatmul.mubr.msk.f32.gmra.mxu0 %vm171_vm0, %v119_v30 }
  0xb7   :  { %8567 = vmatprep.mubr.msk.f32.mxu0 %vm171_vm0, %v120_v31 }
  0xba   :  { %8568 = vmatmul.mubr.msk.f32.gmra.mxu0 %vm171_vm0, %v121_v32 }
  0xbb   :  { %8570 = vmatprep.mubr.msk.f32.mxu0 %vm171_vm0, %v122_v33 }
  0xbe   :  { %8571 = vmatmul.mubr.msk.f32.gmra.mxu0 %vm171_vm0, %v123_v34 }
  0xbf   :  { %8573 = vmatprep.mubr.msk.f32.mxu0 %vm171_vm0, %v124_v35 }
  0xc2   :  { %8574 = vmatmul.mubr.msk.f32.gmra.mxu0 %vm171_vm0, %v125_v36 }
  0xc3   :  { %8576 = vmatprep.mubr.msk.f32.mxu0 %vm171_vm0, %v126_v37 }
  0xc6   :  { %8577 = vmatmul.mubr.msk.f32.gmra.mxu0 %vm171_vm0, %v127_v38  ;;  %v143_v38 = vld [vmem:[%s13510_s0 + $0x378] sm:$0xff] }
  0xc7   :  { %8579 = vmatprep.mubr.msk.f32.mxu0 %vm171_vm0, %v128_v39 }
  0xca   :  { %v8437_v43 = vpop.f32.mrf.mxu0  ;;  %8580 = vmatmul.mubr.msk.f32.gmra.mxu0 %vm171_vm0, %v129_v40 }
  0xcb   :  { %v628_v44 = vadd.f32 %v8437_v43, %v11227_v41  ;;  %8582 = vmatprep.mubr.msk.f32.mxu0 %vm171_vm0, %v130_v42  ;;  %v144_v42 = vld [vmem:[%s13510_s0 + $0x380] sm:$0xff] }
  0xcc   :  { %v622_v46 = vpop.f32.mrf.mxu0 }
  0xcd   :  { %v7133_v48 = vmul.f32 -1.442695, %v628_v44  ;;  %v623_v49 = vadd.f32 %v11227_v41, %v622_v46 }
  0xce   :  { %v8440_v50 = vpop.f32.mrf.mxu0  ;;  %8583 = vmatmul.mubr.msk.f32.gmra.mxu0 %vm171_vm0, %v131_v45 }
  0xcf   :  { %9213 = vpow2.f32 %v7133_v48  ;;  %v7132_v51 = vmul.f32 -1.442695, %v623_v49  ;;  %v638_v52 = vadd.f32 %v8440_v50, %v11227_v41  ;;  %8585 = vmatprep.mubr.msk.f32.mxu0 %vm171_vm0, %v132_v47 }
  0xd0   :  { %v632_v54 = vpop.f32.mrf.mxu0 }
  0xd1   :  { %9215 = vpow2.f32 %v7132_v51  ;;  %v7135_v56 = vmul.f32 -1.442695, %v638_v52  ;;  %v633_v57 = vadd.f32 %v11227_v41, %v632_v54  ;;  %v145_v51 = vld [vmem:[%s13510_s0 + $0x388] sm:$0xff]  ;;  %v146_v54 = vld [vmem:[%s13510_s0 + $0x390] sm:$0xff] }
  0xd2   :  { %v8443_v58 = vpop.f32.mrf.mxu0  ;;  %8586 = vmatmul.mubr.msk.f32.gmra.mxu0 %vm171_vm0, %v133_v53 }
  0xd3   :  { %9217 = vpow2.f32 %v7135_v56  ;;  %v7134_v59 = vmul.f32 -1.442695, %v633_v57  ;;  %v648_v60 = vadd.f32 %v8443_v58, %v11227_v41  ;;  %8588 = vmatprep.mubr.msk.f32.mxu0 %vm171_vm0, %v134_v55 }
  0xd4   :  { %v642_v62 = vpop.f32.mrf.mxu0 }
  0xd5   :  { %9219 = vpow2.f32 %v7134_v59  ;;  %v7137_v0 = vmul.f32 -1.442695, %v648_v60  ;;  %v643_v1 = vadd.f32 %v11227_v41, %v642_v62 }
  0xd6   :  { %v8446_v2 = vpop.f32.mrf.mxu0  ;;  %8589 = vmatmul.mubr.msk.f32.gmra.mxu0 %vm171_vm0, %v135_v61 }
  0xd7   :  { %9221 = vpow2.f32 %v7137_v0  ;;  %v7136_v3 = vmul.f32 -1.442695, %v643_v1  ;;  %v658_v4 = vadd.f32 %v8446_v2, %v11227_v41  ;;  %8591 = vmatprep.mubr.msk.f32.mxu0 %vm171_vm0, %v136_v63  ;;  %v147_v63 = vld [vmem:[%s13510_s0 + $0x398] sm:$0xff]  ;;  %v148_v2 = vld [vmem:[%s13510_s0 + $0x3a0] sm:$0xff] }
  0xd8   :  { %v652_v6 = vpop.f32.mrf.mxu0 }
  0xd9   :  { %9223 = vpow2.f32 %v7136_v3  ;;  %v7139_v9 = vmul.f32 -1.442695, %v658_v4  ;;  %v653_v10 = vadd.f32 %v11227_v41, %v652_v6 }
  0xda   :  { %v8449_v11 = vpop.f32.mrf.mxu0  ;;  %8592 = vmatmul.mubr.msk.f32.gmra.mxu0 %vm171_vm0, %v137_v5 }
  0xdb   :  { %9225 = vpow2.f32 %v7139_v9  ;;  %v7138_v12 = vmul.f32 -1.442695, %v653_v10  ;;  %v668_v13 = vadd.f32 %v8449_v11, %v11227_v41  ;;  %8594 = vmatprep.mubr.msk.f32.mxu0 %vm171_vm0, %v138_v8 }
  0xdc   :  { %v9214_v15 = vpop.eup %9213  ;;  %v662_v16 = vpop.f32.mrf.mxu0 }
  0xdd   :  { %v1646_v18 = vadd.f32 1.0, %v9214_v15  ;;  %9227 = vpow2.f32 %v7138_v12  ;;  %v7141_v19 = vmul.f32 -1.442695, %v668_v13  ;;  %v663_v20 = vadd.f32 %v11227_v41, %v662_v16  ;;  %v149_v13 = vld [vmem:[%s13510_s0 + $0x3a8] sm:$0xff] }
  0xde   :  { %v9216_v21 = vpop.eup %9215  ;;  %v8452_v22 = vpop.f32.mrf.mxu0  ;;  %8595 = vmatmul.mubr.msk.f32.gmra.mxu0 %vm171_vm0, %v139_v14 }
  0xdf   :  { %9229 = vrcp.f32 %v1646_v18  ;;  %v1645_v23 = vadd.f32 1.0, %v9216_v21  ;;  %v7140_v24 = vmul.f32 -1.442695, %v663_v20  ;;  %v678_v25 = vadd.f32 %v8452_v22, %v11227_v41  ;;  %8597 = vmatprep.mubr.msk.f32.mxu0 %vm171_vm0, %v140_v17  ;;  %v150_v17 = vld [vmem:[%s13510_s0 + $0x3b0] sm:$0xff] }
  0xe0   :  { %v9218_v27 = vpop.eup %9217  ;;  %9231 = vpow2.f32 %v7141_v19  ;;  %v672_v28 = vpop.f32.mrf.mxu0 }
  0xe1   :  { %9233 = vrcp.f32 %v1645_v23  ;;  %v1648_v30 = vadd.f32 1.0, %v9218_v27  ;;  %v7143_v31 = vmul.f32 -1.442695, %v678_v25  ;;  %v673_v32 = vadd.f32 %v11227_v41, %v672_v28  ;;  %v151_v27 = vld [vmem:[%s13510_s0 + $0x3b8] sm:$0xff] }
  0xe2   :  { %v9220_v33 = vpop.eup %9219  ;;  %9235 = vpow2.f32 %v7140_v24  ;;  %v8455_v34 = vpop.f32.mrf.mxu0  ;;  %8598 = vmatmul.mubr.msk.f32.gmra.mxu0 %vm171_vm0, %v141_v26 }
  0xe3   :  { %9237 = vrcp.f32 %v1648_v30  ;;  %v1647_v35 = vadd.f32 1.0, %v9220_v33  ;;  %v7142_v36 = vmul.f32 -1.442695, %v673_v32  ;;  %v688_v37 = vadd.f32 %v8455_v34, %v11227_v41  ;;  %8600 = vmatprep.mubr.msk.f32.mxu0 %vm171_vm0, %v142_v29  ;;  %v152_v30 = vld [vmem:[%s13510_s0 + $0x3c0] sm:$0xff] }
  0xe4   :  { %v9222_v39 = vpop.eup %9221  ;;  %9239 = vpow2.f32 %v7143_v31  ;;  %v682_v40 = vpop.f32.mrf.mxu0 }
  0xe5   :  { %9241 = vrcp.f32 %v1647_v35  ;;  %v1650_v43 = vadd.f32 1.0, %v9222_v39  ;;  %v7145_v44 = vmul.f32 -1.442695, %v688_v37  ;;  %v683_v45 = vadd.f32 %v11227_v41, %v682_v40  ;;  %v153_v40 = vld [vmem:[%s13510_s0 + $0x3c8] sm:$0xff] }
  0xe6   :  { %v9224_v46 = vpop.eup %9223  ;;  %9243 = vpow2.f32 %v7142_v36  ;;  %v8458_v47 = vpop.f32.mrf.mxu0  ;;  %8601 = vmatmul.mubr.msk.f32.gmra.mxu0 %vm171_vm0, %v143_v38 }
  0xe7   :  { %9245 = vrcp.f32 %v1650_v43  ;;  %v1649_v48 = vadd.f32 1.0, %v9224_v46  ;;  %v7144_v49 = vmul.f32 -1.442695, %v683_v45  ;;  %v698_v50 = vadd.f32 %v8458_v47, %v11227_v41  ;;  %8603 = vmatprep.mubr.msk.f32.mxu0 %vm171_vm0, %v144_v42  ;;  %v154_v45 = vld [vmem:[%s13510_s0 + $0x3d0] sm:$0xff] }
  0xe8   :  { %v9226_v52 = vpop.eup %9225  ;;  %9247 = vpow2.f32 %v7145_v44  ;;  %v692_v53 = vpop.f32.mrf.mxu0 }
  0xe9   :  { %9249 = vrcp.f32 %v1649_v48  ;;  %v1652_v55 = vadd.f32 1.0, %v9226_v52  ;;  %v7147_v56 = vmul.f32 -1.442695, %v698_v50  ;;  %v693_v57 = vadd.f32 %v11227_v41, %v692_v53 }
  0xea   :  { %v9228_v58 = vpop.eup %9227  ;;  %9251 = vpow2.f32 %v7144_v49  ;;  %v8461_v59 = vpop.f32.mrf.mxu0  ;;  %8604 = vmatmul.mubr.msk.f32.gmra.mxu0 %vm171_vm0, %v145_v51 }
  0xeb   :  { %9253 = vrcp.f32 %v1652_v55  ;;  %v1651_v60 = vadd.f32 1.0, %v9228_v58  ;;  %v7146_v61 = vmul.f32 -1.442695, %v693_v57  ;;  %v708_v62 = vadd.f32 %v8461_v59, %v11227_v41  ;;  %8606 = vmatprep.mubr.msk.f32.mxu0 %vm171_vm0, %v146_v54  ;;  %v155_v55 = vld [vmem:[%s13510_s0 + $0x3d8] sm:$0xff]  ;;  %v156_v59 = vld [vmem:[%s13510_s0 + $0x3e0] sm:$0xff] }
  0xec   :  { %v9230_v0 = vpop.eup %9229  ;;  %9255 = vpow2.f32 %v7147_v56  ;;  %v702_v1 = vpop.f32.mrf.mxu0 }
  0xed   :  { %v9232_v3 = vpop.eup %9231  ;;  %9257 = vrcp.f32 %v1651_v60  ;;  %v7149_v4 = vmul.f32 -1.442695, %v708_v62  ;;  %v703_v5 = vadd.f32 %v11227_v41, %v702_v1 }
  0xee   :  { %v9234_v6 = vpop.eup %9233  ;;  %v1654_v8 = vadd.f32 1.0, %v9232_v3  ;;  %9259 = vpow2.f32 %v7146_v61  ;;  %v8464_v9 = vpop.f32.mrf.mxu0  ;;  %8607 = vmatmul.mubr.msk.f32.gmra.mxu0 %vm171_vm0, %v147_v63 }
  0xef   :  { %v9236_v10 = vpop.eup %9235  ;;  %9261 = vpow2.f32 %v7149_v4  ;;  %v7148_v11 = vmul.f32 -1.442695, %v703_v5  ;;  %v718_v12 = vadd.f32 %v8464_v9, %v11227_v41  ;;  %8631 = vmatprep.mubr.msk.f32.mxu1 %vm2038_vm3, %v9234_v6  ;;  %8609 = vmatprep.mubr.msk.f32.mxu0 %vm171_vm0, %v148_v2  ;;  %v157_v6 = vld [vmem:[%s13510_s0 + $0x3e8] sm:$0xff] }
  0xf0   :  { %v9238_v14 = vpop.eup %9237  ;;  %9263 = vrcp.f32 %v1654_v8  ;;  %v1653_v15 = vadd.f32 1.0, %v9236_v10  ;;  %v712_v16 = vpop.f32.mrf.mxu0  ;;  %8632 = vmatmul.mubr.msk.f32.vlgmr.msra.gmra.mxu1 %vm2038_vm3, %v9230_v0  ;;  %v158_v10 = vld [vmem:[%s13510_s0 + $0x3f0] sm:$0xff] }
  0xf1   :  { %v9240_v18 = vpop.eup %9239  ;;  %9265 = vpow2.f32 %v7148_v11  ;;  %v7151_v19 = vmul.f32 -1.442695, %v718_v12  ;;  %v713_v20 = vadd.f32 %v11227_v41, %v712_v16  ;;  %8824 = vmatpush3.msk.msra.mxu1 %vm4293_vm2, %v11087_v7 }
  0xf2   :  { %v9242_v21 = vpop.eup %9241  ;;  %9267 = vrcp.f32 %v1653_v15  ;;  %v1656_v22 = vadd.f32 1.0, %v9240_v18  ;;  %v8467_v23 = vpop.f32.mrf.mxu0  ;;  %8610 = vmatmul.mubr.msk.f32.gmra.mxu0 %vm171_vm0, %v149_v13 }
  0xf3   :  { %v9244_v24 = vpop.eup %9243  ;;  %9269 = vpow2.f32 %v7151_v19  ;;  %v7150_v25 = vmul.f32 -1.442695, %v713_v20  ;;  %v728_v26 = vadd.f32 %v8467_v23, %v11227_v41  ;;  %8634 = vmatprep.mubr.msk.f32.mxu1 %vm2038_vm3, %v9242_v21  ;;  %8612 = vmatprep.mubr.msk.f32.mxu0 %vm171_vm0, %v150_v17  ;;  %v159_v21 = vld [vmem:[%s13510_s0 + $0x3f8] sm:$0xff] }
  0xf4   :  { %v9246_v7 = vpop.eup %9245  ;;  %9271 = vrcp.f32 %v1656_v22  ;;  %v1655_v28 = vadd.f32 1.0, %v9244_v24  ;;  %v722_v29 = vpop.f32.mrf.mxu0  ;;  %8635 = vmatmul.mubr.msk.f32.gmra.mxu1 %vm2038_vm3, %v9238_v14 }
  0xf5   :  { %v9248_v31 = vpop.eup %9247  ;;  %9273 = vpow2.f32 %v7150_v25  ;;  %v7153_v32 = vmul.f32 -1.442695, %v728_v26  ;;  %v723_v33 = vadd.f32 %v11227_v41, %v722_v29 }
  0xf6   :  { %v9250_v34 = vpop.eup %9249  ;;  %9275 = vrcp.f32 %v1655_v28  ;;  %v1658_v35 = vadd.f32 1.0, %v9248_v31  ;;  %v8470_v36 = vpop.f32.mrf.mxu0  ;;  %8613 = vmatmul.mubr.msk.f32.gmra.mxu0 %vm171_vm0, %v151_v27 }
  0xf7   :  { %v9252_v37 = vpop.eup %9251  ;;  %9277 = vpow2.f32 %v7153_v32  ;;  %v7152_v38 = vmul.f32 -1.442695, %v723_v33  ;;  %v738_v39 = vadd.f32 %v8470_v36, %v11227_v41  ;;  %8637 = vmatprep.mubr.msk.f32.mxu1 %vm2038_vm3, %v9250_v34  ;;  %8615 = vmatprep.mubr.msk.f32.mxu0 %vm171_vm0, %v152_v30 }
  0xf8   :  { %v9254_v42 = vpop.eup %9253  ;;  %9279 = vrcp.f32 %v1658_v35  ;;  %v1657_v43 = vadd.f32 1.0, %v9252_v37  ;;  %v732_v44 = vpop.f32.mrf.mxu0  ;;  %8638 = vmatmul.mubr.msk.f32.gmra.mxu1 %vm2038_vm3, %v9246_v7 }
  0xf9   :  { %v9256_v46 = vpop.eup %9255  ;;  %9281 = vpow2.f32 %v7152_v38  ;;  %v7155_v47 = vmul.f32 -1.442695, %v738_v39  ;;  %v733_v48 = vadd.f32 %v11227_v41, %v732_v44 }
  0xfa   :  { %v9258_v49 = vpop.eup %9257  ;;  %9283 = vrcp.f32 %v1657_v43  ;;  %v1660_v50 = vadd.f32 1.0, %v9256_v46  ;;  %v8473_v51 = vpop.f32.mrf.mxu0  ;;  %8616 = vmatmul.mubr.msk.f32.gmra.mxu0 %vm171_vm0, %v153_v40 }
  0xfb   :  { %v9260_v52 = vpop.eup %9259  ;;  %9285 = vpow2.f32 %v7155_v47  ;;  %v7154_v53 = vmul.f32 -1.442695, %v733_v48  ;;  %v748_v54 = vadd.f32 %v8473_v51, %v11227_v41  ;;  %8640 = vmatprep.mubr.msk.f32.mxu1 %vm2038_vm3, %v9258_v49  ;;  %8618 = vmatprep.mubr.msk.f32.mxu0 %vm171_vm0, %v154_v45 }
  0xfc   :  { %v9262_v56 = vpop.eup %9261  ;;  %9287 = vrcp.f32 %v1660_v50  ;;  %v1659_v57 = vadd.f32 1.0, %v9260_v52  ;;  %v742_v58 = vpop.f32.mrf.mxu0  ;;  %8641 = vmatmul.mubr.msk.f32.gmra.mxu1 %vm2038_vm3, %v9254_v42 }
  0xfd   :  { %v9264_v60 = vpop.eup %9263  ;;  %v1662_v61 = vadd.f32 1.0, %v9262_v56  ;;  %9289 = vpow2.f32 %v7154_v53  ;;  %v7157_v62 = vmul.f32 -1.442695, %v748_v54  ;;  %v743_v63 = vadd.f32 %v11227_v41, %v742_v58 }
  0xfe   :  { %v9266_v0 = vpop.eup %9265  ;;  %9291 = vrcp.f32 %v1659_v57  ;;  %v8476_v1 = vpop.f32.mrf.mxu0  ;;  %8619 = vmatmul.mubr.msk.f32.gmra.mxu0 %vm171_vm0, %v155_v55 }
  0xff   :  { %v9268_v2 = vpop.eup %9267  ;;  %9293 = vrcp.f32 %v1662_v61  ;;  %v1661_v3 = vadd.f32 1.0, %v9266_v0  ;;  %v7156_v4 = vmul.f32 -1.442695, %v743_v63  ;;  %v758_v5 = vadd.f32 %v8476_v1, %v11227_v41  ;;  %8621 = vmatprep.mubr.msk.f32.mxu0 %vm171_vm0, %v156_v59 }
 0x100   :  { %v9270_v8 = vpop.eup %9269  ;;  %9295 = vpow2.f32 %v7157_v62  ;;  %8643 = vmatprep.mubr.msk.f32.mxu1 %vm2038_vm3, %v9268_v2  ;;  %v752_v9 = vpop.f32.mrf.mxu0 }
 0x101   :  { %v9272_v11 = vpop.eup %9271  ;;  %9297 = vrcp.f32 %v1661_v3  ;;  %v1664_v12 = vadd.f32 1.0, %v9270_v8  ;;  %v7159_v13 = vmul.f32 -1.442695, %v758_v5  ;;  %v753_v14 = vadd.f32 %v11227_v41, %v752_v9  ;;  %8644 = vmatmul.mubr.msk.f32.gmra.mxu1 %vm2038_vm3, %v9264_v60 }
 0x102   :  { %v9274_v15 = vpop.eup %9273  ;;  %9299 = vpow2.f32 %v7156_v4  ;;  %v8479_v16 = vpop.f32.mrf.mxu0  ;;  %8622 = vmatmul.mubr.msk.f32.gmra.mxu0 %vm171_vm0, %v157_v6 }
 0x103   :  { %v9276_v17 = vpop.eup %9275  ;;  %9301 = vrcp.f32 %v1664_v12  ;;  %v1663_v18 = vadd.f32 1.0, %v9274_v15  ;;  %v7158_v19 = vmul.f32 -1.442695, %v753_v14  ;;  %v768_v20 = vadd.f32 %v8479_v16, %v11227_v41  ;;  %8624 = vmatprep.mubr.msk.f32.mxu0 %vm171_vm0, %v158_v10 }
 0x104   :  { %v9278_v22 = vpop.eup %9277  ;;  %9303 = vpow2.f32 %v7159_v13  ;;  %8646 = vmatprep.mubr.msk.f32.mxu1 %vm2038_vm3, %v9276_v17  ;;  %v762_v23 = vpop.f32.mrf.mxu0 }
 0x105   :  { %v9280_v24 = vpop.eup %9279  ;;  %9305 = vrcp.f32 %v1663_v18  ;;  %v1666_v25 = vadd.f32 1.0, %v9278_v22  ;;  %v7161_v26 = vmul.f32 -1.442695, %v768_v20  ;;  %v763_v27 = vadd.f32 %v11227_v41, %v762_v23  ;;  %8647 = vmatmul.mubr.msk.f32.gmra.mxu1 %vm2038_vm3, %v9272_v11 }
 0x106   :  { %v9282_v7 = vpop.eup %9281  ;;  %9307 = vpow2.f32 %v7158_v19  ;;  %v8482_v28 = vpop.f32.mrf.mxu0  ;;  %8625 = vmatmul.mubr.msk.f32.gmra.mxu0 %vm171_vm0, %v159_v21 }
 0x107   :  { %v9284_v29 = vpop.eup %9283  ;;  %9309 = vrcp.f32 %v1666_v25  ;;  %v1665_v30 = vadd.f32 1.0, %v9282_v7  ;;  %v7160_v31 = vmul.f32 -1.442695, %v763_v27  ;;  %v778_v32 = vadd.f32 %v8482_v28, %v11227_v41 }
 0x108   :  { %v9286_v33 = vpop.eup %9285  ;;  %9311 = vpow2.f32 %v7161_v26  ;;  %8649 = vmatprep.mubr.msk.f32.mxu1 %vm2038_vm3, %v9284_v29  ;;  %v772_v34 = vpop.f32.mrf.mxu0 }
 0x109   :  { %v9288_v35 = vpop.eup %9287  ;;  %9313 = vrcp.f32 %v1665_v30  ;;  %v1668_v36 = vadd.f32 1.0, %v9286_v33  ;;  %v7163_v37 = vmul.f32 -1.442695, %v778_v32  ;;  %v773_v38 = vadd.f32 %v11227_v41, %v772_v34  ;;  %8650 = vmatmul.mubr.msk.f32.gmra.mxu1 %vm2038_vm3, %v9280_v24 }
 0x10a   :  { %v9290_v39 = vpop.eup %9289  ;;  %9315 = vpow2.f32 %v7160_v31  ;;  %v8485_v40 = vpop.f32.mrf.mxu0 }
 0x10b   :  { %v9292_v42 = vpop.eup %9291  ;;  %9317 = vrcp.f32 %v1668_v36  ;;  %v1667_v43 = vadd.f32 1.0, %v9290_v39  ;;  %v7162_v44 = vmul.f32 -1.442695, %v773_v38  ;;  %v788_v45 = vadd.f32 %v8485_v40, %v11227_v41 }
 0x10c   :  { %v9294_v46 = vpop.eup %9293  ;;  %9319 = vpow2.f32 %v7163_v37  ;;  %8652 = vmatprep.mubr.msk.f32.mxu1 %vm2038_vm3, %v9292_v42  ;;  %v782_v47 = vpop.f32.mrf.mxu0 }
 0x10d   :  { %v9296_v48 = vpop.eup %9295  ;;  %9321 = vrcp.f32 %v1667_v43  ;;  %v7165_v49 = vmul.f32 -1.442695, %v788_v45  ;;  %v783_v50 = vadd.f32 %v11227_v41, %v782_v47  ;;  %8653 = vmatmul.mubr.msk.f32.gmra.mxu1 %vm2038_vm3, %v9288_v35 }
 0x10e   :  { %v9298_v51 = vpop.eup %9297  ;;  %v1670_v52 = vadd.f32 1.0, %v9296_v48  ;;  %9323 = vpow2.f32 %v7162_v44  ;;  %v8488_v53 = vpop.f32.mrf.mxu0 }
 0x10f   :  { %v9300_v54 = vpop.eup %9299  ;;  %9325 = vpow2.f32 %v7165_v49  ;;  %v7164_v55 = vmul.f32 -1.442695, %v783_v50  ;;  %v798_v56 = vadd.f32 %v8488_v53, %v11227_v41  ;;  %8655 = vmatprep.mubr.msk.f32.mxu1 %vm2038_vm3, %v9298_v51 }
 0x110   :  { %v9302_v57 = vpop.eup %9301  ;;  %9327 = vrcp.f32 %v1670_v52  ;;  %v1669_v58 = vadd.f32 1.0, %v9300_v54  ;;  %v792_v59 = vpop.f32.mrf.mxu0 }
 0x111   :  { %v9304_v60 = vpop.eup %9303  ;;  %9329 = vpow2.f32 %v7164_v55  ;;  %v7167_v61 = vmul.f32 -1.442695, %v798_v56  ;;  %v793_v62 = vadd.f32 %v11227_v41, %v792_v59  ;;  %8656 = vmatmul.mubr.msk.f32.gmra.mxu1 %vm2038_vm3, %v9294_v46 }
 0x112   :  { %v9306_v63 = vpop.eup %9305  ;;  %9331 = vrcp.f32 %v1669_v58  ;;  %v1672_v0 = vadd.f32 1.0, %v9304_v60  ;;  %v8491_v1 = vpop.f32.mrf.mxu0 }
 0x113   :  { %v9308_v2 = vpop.eup %9307  ;;  %9333 = vpow2.f32 %v7167_v61  ;;  %v7166_v3 = vmul.f32 -1.442695, %v793_v62  ;;  %v808_v4 = vadd.f32 %v8491_v1, %v11227_v41  ;;  %8658 = vmatprep.mubr.msk.f32.mxu1 %vm2038_vm3, %v9306_v63 }
 0x114   :  { %v9310_v5 = vpop.eup %9309  ;;  %9335 = vrcp.f32 %v1672_v0  ;;  %v1671_v6 = vadd.f32 1.0, %v9308_v2  ;;  %v802_v8 = vpop.f32.mrf.mxu0 }
 0x115   :  { %v9312_v9 = vpop.eup %9311  ;;  %9337 = vpow2.f32 %v7166_v3  ;;  %v7169_v10 = vmul.f32 -1.442695, %v808_v4  ;;  %v803_v11 = vadd.f32 %v11227_v41, %v802_v8  ;;  %8659 = vmatmul.mubr.msk.f32.gmra.mxu1 %vm2038_vm3, %v9302_v57 }
 0x116   :  { %v9314_v12 = vpop.eup %9313  ;;  %9339 = vrcp.f32 %v1671_v6  ;;  %v1674_v13 = vadd.f32 1.0, %v9312_v9  ;;  %v8494_v14 = vpop.f32.mrf.mxu0 }
 0x117   :  { %v9316_v15 = vpop.eup %9315  ;;  %9341 = vpow2.f32 %v7169_v10  ;;  %v7168_v16 = vmul.f32 -1.442695, %v803_v11  ;;  %v818_v17 = vadd.f32 %v8494_v14, %v11227_v41  ;;  %8661 = vmatprep.mubr.msk.f32.mxu1 %vm2038_vm3, %v9314_v12 }
 0x118   :  { %v9318_v18 = vpop.eup %9317  ;;  %9343 = vrcp.f32 %v1674_v13  ;;  %v1673_v19 = vadd.f32 1.0, %v9316_v15  ;;  %v812_v20 = vpop.f32.mrf.mxu0 }
 0x119   :  { %v9320_v21 = vpop.eup %9319  ;;  %9345 = vpow2.f32 %v7168_v16  ;;  %v7171_v22 = vmul.f32 -1.442695, %v818_v17  ;;  %v813_v23 = vadd.f32 %v11227_v41, %v812_v20  ;;  %8662 = vmatmul.mubr.msk.f32.gmra.mxu1 %vm2038_vm3, %v9310_v5 }
 0x11a   :  { %v9322_v24 = vpop.eup %9321  ;;  %9347 = vrcp.f32 %v1673_v19  ;;  %v1676_v25 = vadd.f32 1.0, %v9320_v21  ;;  %v8497_v26 = vpop.f32.mrf.mxu0 }
 0x11b   :  { %v9324_v27 = vpop.eup %9323  ;;  %9349 = vpow2.f32 %v7171_v22  ;;  %v7170_v7 = vmul.f32 -1.442695, %v813_v23  ;;  %v828_v28 = vadd.f32 %v8497_v26, %v11227_v41  ;;  %8664 = vmatprep.mubr.msk.f32.mxu1 %vm2038_vm3, %v9322_v24 }
 0x11c   :  { %v9326_v29 = vpop.eup %9325  ;;  %9351 = vrcp.f32 %v1676_v25  ;;  %v1675_v30 = vadd.f32 1.0, %v9324_v27  ;;  %v822_v31 = vpop.f32.mrf.mxu0 }
 0x11d   :  { %v9328_v32 = vpop.eup %9327  ;;  %v1678_v33 = vadd.f32 1.0, %v9326_v29  ;;  %9353 = vpow2.f32 %v7170_v7  ;;  %v7173_v34 = vmul.f32 -1.442695, %v828_v28  ;;  %v823_v35 = vadd.f32 %v11227_v41, %v822_v31  ;;  %8665 = vmatmul.mubr.msk.f32.gmra.mxu1 %vm2038_vm3, %v9318_v18 }
 0x11e   :  { %v9330_v36 = vpop.eup %9329  ;;  %9355 = vrcp.f32 %v1675_v30  ;;  %v8500_v37 = vpop.f32.mrf.mxu0 }
 0x11f   :  { %v9332_v38 = vpop.eup %9331  ;;  %9357 = vrcp.f32 %v1678_v33  ;;  %v1677_v39 = vadd.f32 1.0, %v9330_v36  ;;  %v7172_v40 = vmul.f32 -1.442695, %v823_v35  ;;  %v838_v42 = vadd.f32 %v8500_v37, %v11227_v41 }
 0x120   :  { %v9334_v43 = vpop.eup %9333  ;;  %9359 = vpow2.f32 %v7173_v34  ;;  %8667 = vmatprep.mubr.msk.f32.mxu1 %vm2038_vm3, %v9332_v38  ;;  %v832_v44 = vpop.f32.mrf.mxu0 }
 0x121   :  { %v9336_v45 = vpop.eup %9335  ;;  %9361 = vrcp.f32 %v1677_v39  ;;  %v1680_v46 = vadd.f32 1.0, %v9334_v43  ;;  %v7175_v47 = vmul.f32 -1.442695, %v838_v42  ;;  %v833_v48 = vadd.f32 %v11227_v41, %v832_v44  ;;  %8668 = vmatmul.mubr.msk.f32.gmra.mxu1 %vm2038_vm3, %v9328_v32 }
 0x122   :  { %v9338_v49 = vpop.eup %9337  ;;  %9363 = vpow2.f32 %v7172_v40  ;;  %v8503_v50 = vpop.f32.mrf.mxu0 }
 0x123   :  { %v9340_v51 = vpop.eup %9339  ;;  %9365 = vrcp.f32 %v1680_v46  ;;  %v1679_v52 = vadd.f32 1.0, %v9338_v49  ;;  %v7174_v53 = vmul.f32 -1.442695, %v833_v48  ;;  %v848_v54 = vadd.f32 %v8503_v50, %v11227_v41 }
 0x124   :  { %v9342_v55 = vpop.eup %9341  ;;  %9367 = vpow2.f32 %v7175_v47  ;;  %8670 = vmatprep.mubr.msk.f32.mxu1 %vm2038_vm3, %v9340_v51  ;;  %v842_v56 = vpop.f32.mrf.mxu0 }
 0x125   :  { %v9344_v57 = vpop.eup %9343  ;;  %9369 = vrcp.f32 %v1679_v52  ;;  %v1682_v58 = vadd.f32 1.0, %v9342_v55  ;;  %v7177_v59 = vmul.f32 -1.442695, %v848_v54  ;;  %v843_v60 = vadd.f32 %v11227_v41, %v842_v56  ;;  %8671 = vmatmul.mubr.msk.f32.gmra.mxu1 %vm2038_vm3, %v9336_v45 }
 0x126   :  { %v9346_v61 = vpop.eup %9345  ;;  %9371 = vpow2.f32 %v7174_v53  ;;  %v8506_v62 = vpop.f32.mrf.mxu0 }
 0x127   :  { %v9348_v63 = vpop.eup %9347  ;;  %9373 = vrcp.f32 %v1682_v58  ;;  %v1681_v0 = vadd.f32 1.0, %v9346_v61  ;;  %v7176_v1 = vmul.f32 -1.442695, %v843_v60  ;;  %v858_v2 = vadd.f32 %v8506_v62, %v11227_v41 }
 0x128   :  { %v9350_v3 = vpop.eup %9349  ;;  %9375 = vpow2.f32 %v7177_v59  ;;  %8673 = vmatprep.mubr.msk.f32.mxu1 %vm2038_vm3, %v9348_v63  ;;  %v852_v4 = vpop.f32.mrf.mxu0 }
 0x129   :  { %v9352_v5 = vpop.eup %9351  ;;  %9377 = vrcp.f32 %v1681_v0  ;;  %v1684_v6 = vadd.f32 1.0, %v9350_v3  ;;  %v7179_v8 = vmul.f32 -1.442695, %v858_v2  ;;  %v853_v9 = vadd.f32 %v11227_v41, %v852_v4  ;;  %8674 = vmatmul.mubr.msk.f32.gmra.mxu1 %vm2038_vm3, %v9344_v57 }
 0x12a   :  { %v9354_v10 = vpop.eup %9353  ;;  %9379 = vpow2.f32 %v7176_v1  ;;  %v8509_v11 = vpop.f32.mrf.mxu0 }
 0x12b   :  { %v9356_v12 = vpop.eup %9355  ;;  %9381 = vrcp.f32 %v1684_v6  ;;  %v1683_v13 = vadd.f32 1.0, %v9354_v10  ;;  %v7178_v14 = vmul.f32 -1.442695, %v853_v9  ;;  %v868_v15 = vadd.f32 %v8509_v11, %v11227_v41 }
 0x12c   :  { %v9358_v16 = vpop.eup %9357  ;;  %9383 = vpow2.f32 %v7179_v8  ;;  %8676 = vmatprep.mubr.msk.f32.mxu1 %vm2038_vm3, %v9356_v12  ;;  %v862_v17 = vpop.f32.mrf.mxu0 }
 0x12d   :  { %v9360_v18 = vpop.eup %9359  ;;  %9385 = vrcp.f32 %v1683_v13  ;;  %v7181_v19 = vmul.f32 -1.442695, %v868_v15  ;;  %v863_v20 = vadd.f32 %v11227_v41, %v862_v17  ;;  %8677 = vmatmul.mubr.msk.f32.gmra.mxu1 %vm2038_vm3, %v9352_v5  ;;  %v11451_v5 = vld [vmem:[%s13513_s2] ss:$0 sm:$0xff] }
 0x12e   :  { %v9362_v21 = vpop.eup %9361  ;;  %v1686_v22 = vadd.f32 1.0, %v9360_v18  ;;  %9387 = vpow2.f32 %v7178_v14  ;;  %v8512_v23 = vpop.f32.mrf.mxu0 }
 0x12f   :  { %v9364_v24 = vpop.eup %9363  ;;  %9389 = vpow2.f32 %v7181_v19  ;;  %v7180_v25 = vmul.f32 -1.442695, %v863_v20  ;;  %v878_v26 = vadd.f32 %v8512_v23, %v11227_v41  ;;  %8679 = vmatprep.mubr.msk.f32.mxu1 %vm2038_vm3, %v9362_v21 }
 0x130   :  { %v9366_v27 = vpop.eup %9365  ;;  %9391 = vrcp.f32 %v1686_v22  ;;  %v1685_v7 = vadd.f32 1.0, %v9364_v24  ;;  %v872_v28 = vpop.f32.mrf.mxu0 }
 0x131   :  { %v9368_v29 = vpop.eup %9367  ;;  %9393 = vpow2.f32 %v7180_v25  ;;  %v7183_v30 = vmul.f32 -1.442695, %v878_v26  ;;  %v873_v31 = vadd.f32 %v11227_v41, %v872_v28  ;;  %8680 = vmatmul.mubr.msk.f32.gmra.mxu1 %vm2038_vm3, %v9358_v16 }
 0x132   :  { %v9370_v32 = vpop.eup %9369  ;;  %9395 = vrcp.f32 %v1685_v7  ;;  %v1688_v33 = vadd.f32 1.0, %v9368_v29  ;;  %v8515_v34 = vpop.f32.mrf.mxu0 }
 0x133   :  { %v9372_v35 = vpop.eup %9371  ;;  %9397 = vpow2.f32 %v7183_v30  ;;  %v7182_v36 = vmul.f32 -1.442695, %v873_v31  ;;  %v888_v37 = vadd.f32 %v8515_v34, %v11227_v41  ;;  %8682 = vmatprep.mubr.msk.f32.mxu1 %vm2038_vm3, %v9370_v32 }
 0x134   :  { %v9374_v38 = vpop.eup %9373  ;;  %9399 = vrcp.f32 %v1688_v33  ;;  %v1687_v39 = vadd.f32 1.0, %v9372_v35  ;;  %v882_v40 = vpop.f32.mrf.mxu0 }
 0x135   :  { %v9376_v42 = vpop.eup %9375  ;;  %9401 = vpow2.f32 %v7182_v36  ;;  %v7185_v43 = vmul.f32 -1.442695, %v888_v37  ;;  %v883_v44 = vadd.f32 %v11227_v41, %v882_v40  ;;  %8683 = vmatmul.mubr.msk.f32.gmra.mxu1 %vm2038_vm3, %v9366_v27 }
 0x136   :  { %v9378_v45 = vpop.eup %9377  ;;  %9403 = vrcp.f32 %v1687_v39  ;;  %v1690_v46 = vadd.f32 1.0, %v9376_v42  ;;  %v8518_v47 = vpop.f32.mrf.mxu0 }
 0x137   :  { %v9380_v48 = vpop.eup %9379  ;;  %9405 = vpow2.f32 %v7185_v43  ;;  %v7184_v49 = vmul.f32 -1.442695, %v883_v44  ;;  %v898_v50 = vadd.f32 %v8518_v47, %v11227_v41  ;;  %8685 = vmatprep.mubr.msk.f32.mxu1 %vm2038_vm3, %v9378_v45 }
 0x138   :  { %v9382_v51 = vpop.eup %9381  ;;  %9407 = vrcp.f32 %v1690_v46  ;;  %v1689_v52 = vadd.f32 1.0, %v9380_v48  ;;  %v892_v53 = vpop.f32.mrf.mxu0 }
 0x139   :  { %v9384_v54 = vpop.eup %9383  ;;  %9409 = vpow2.f32 %v7184_v49  ;;  %v7187_v55 = vmul.f32 -1.442695, %v898_v50  ;;  %v893_v56 = vadd.f32 %v11227_v41, %v892_v53  ;;  %8686 = vmatmul.mubr.msk.f32.gmra.mxu1 %vm2038_vm3, %v9374_v38 }
 0x13a   :  { %v9386_v57 = vpop.eup %9385  ;;  %9411 = vrcp.f32 %v1689_v52  ;;  %v1692_v58 = vadd.f32 1.0, %v9384_v54  ;;  %v8521_v59 = vpop.f32.mrf.mxu0 }
 0x13b   :  { %v9388_v60 = vpop.eup %9387  ;;  %9413 = vpow2.f32 %v7187_v55  ;;  %v7186_v61 = vmul.f32 -1.442695, %v893_v56  ;;  %v908_v62 = vadd.f32 %v8521_v59, %v11227_v41  ;;  %8688 = vmatprep.mubr.msk.f32.mxu1 %vm2038_vm3, %v9386_v57 }
 0x13c   :  { %v9390_v63 = vpop.eup %9389  ;;  %9415 = vrcp.f32 %v1692_v58  ;;  %v1691_v0 = vadd.f32 1.0, %v9388_v60  ;;  %v902_v1 = vpop.f32.mrf.mxu0 }
 0x13d   :  { %v9392_v2 = vpop.eup %9391  ;;  %v1694_v3 = vadd.f32 1.0, %v9390_v63  ;;  %9417 = vpow2.f32 %v7186_v61  ;;  %v7189_v4 = vmul.f32 -1.442695, %v908_v62  ;;  %v903_v6 = vadd.f32 %v11451_v5, %v902_v1  ;;  %8689 = vmatmul.mubr.msk.f32.gmra.mxu1 %vm2038_vm3, %v9382_v51 }
 0x13e   :  { %v9394_v41 = vpop.eup %9393  ;;  %9419 = vrcp.f32 %v1691_v0  ;;  %v8524_v8 = vpop.f32.mrf.mxu0 }
 0x13f   :  { %v9396_v9 = vpop.eup %9395  ;;  %9421 = vrcp.f32 %v1694_v3  ;;  %v1693_v10 = vadd.f32 1.0, %v9394_v41  ;;  %v7188_v11 = vmul.f32 -1.442695, %v903_v6  ;;  %v918_v12 = vadd.f32 %v11451_v5, %v8524_v8 }
 0x140   :  { %v9398_v13 = vpop.eup %9397  ;;  %9423 = vpow2.f32 %v7189_v4  ;;  %8691 = vmatprep.mubr.msk.f32.mxu1 %vm2038_vm3, %v9396_v9  ;;  %v912_v14 = vpop.f32.mrf.mxu0 }
 0x141   :  { %v9400_v15 = vpop.eup %9399  ;;  %9425 = vrcp.f32 %v1693_v10  ;;  %v1696_v16 = vadd.f32 1.0, %v9398_v13  ;;  %v7191_v17 = vmul.f32 -1.442695, %v918_v12  ;;  %v913_v18 = vadd.f32 %v11451_v5, %v912_v14  ;;  %8692 = vmatmul.mubr.msk.f32.gmra.mxu1 %vm2038_vm3, %v9392_v2 }
 0x142   :  { %v9402_v19 = vpop.eup %9401  ;;  %9427 = vpow2.f32 %v7188_v11  ;;  %v8527_v20 = vpop.f32.mrf.mxu0 }
 0x143   :  { %v9404_v21 = vpop.eup %9403  ;;  %9429 = vrcp.f32 %v1696_v16  ;;  %v1695_v22 = vadd.f32 1.0, %v9402_v19  ;;  %v7190_v23 = vmul.f32 -1.442695, %v913_v18  ;;  %v928_v24 = vadd.f32 %v11451_v5, %v8527_v20 }
 0x144   :  { %v9406_v25 = vpop.eup %9405  ;;  %9431 = vpow2.f32 %v7191_v17  ;;  %8694 = vmatprep.mubr.msk.f32.mxu1 %vm2038_vm3, %v9404_v21  ;;  %v922_v26 = vpop.f32.mrf.mxu0 }
 0x145   :  { %v9408_v27 = vpop.eup %9407  ;;  %9433 = vrcp.f32 %v1695_v22  ;;  %v1698_v7 = vadd.f32 1.0, %v9406_v25  ;;  %v7193_v28 = vmul.f32 -1.442695, %v928_v24  ;;  %v923_v29 = vadd.f32 %v11451_v5, %v922_v26  ;;  %8695 = vmatmul.mubr.msk.f32.gmra.mxu1 %vm2038_vm3, %v9400_v15 }
 0x146   :  { %v9410_v30 = vpop.eup %9409  ;;  %9435 = vpow2.f32 %v7190_v23  ;;  %v8530_v31 = vpop.f32.mrf.mxu0 }
 0x147   :  { %v9412_v32 = vpop.eup %9411  ;;  %9437 = vrcp.f32 %v1698_v7  ;;  %v1697_v33 = vadd.f32 1.0, %v9410_v30  ;;  %v7192_v34 = vmul.f32 -1.442695, %v923_v29  ;;  %v938_v35 = vadd.f32 %v11451_v5, %v8530_v31 }
 0x148   :  { %v9414_v36 = vpop.eup %9413  ;;  %9439 = vpow2.f32 %v7193_v28  ;;  %8697 = vmatprep.mubr.msk.f32.mxu1 %vm2038_vm3, %v9412_v32  ;;  %v932_v37 = vpop.f32.mrf.mxu0 }
 0x149   :  { %v9416_v38 = vpop.eup %9415  ;;  %9441 = vrcp.f32 %v1697_v33  ;;  %v1700_v39 = vadd.f32 1.0, %v9414_v36  ;;  %v7195_v40 = vmul.f32 -1.442695, %v938_v35  ;;  %v933_v42 = vadd.f32 %v11451_v5, %v932_v37  ;;  %8698 = vmatmul.mubr.msk.f32.gmra.mxu1 %vm2038_vm3, %v9408_v27 }
 0x14a   :  { %v9418_v43 = vpop.eup %9417  ;;  %9443 = vpow2.f32 %v7192_v34  ;;  %v8533_v44 = vpop.f32.mrf.mxu0 }
 0x14b   :  { %v9420_v45 = vpop.eup %9419  ;;  %9445 = vrcp.f32 %v1700_v39  ;;  %v1699_v46 = vadd.f32 1.0, %v9418_v43  ;;  %v7194_v47 = vmul.f32 -1.442695, %v933_v42  ;;  %v948_v48 = vadd.f32 %v11451_v5, %v8533_v44 }
 0x14c   :  { %v9422_v49 = vpop.eup %9421  ;;  %9447 = vpow2.f32 %v7195_v40  ;;  %8700 = vmatprep.mubr.msk.f32.mxu1 %vm2038_vm3, %v9420_v45  ;;  %v942_v50 = vpop.f32.mrf.mxu0 }
 0x14d   :  { %v9424_v51 = vpop.eup %9423  ;;  %9449 = vrcp.f32 %v1699_v46  ;;  %v7197_v52 = vmul.f32 -1.442695, %v948_v48  ;;  %v943_v53 = vadd.f32 %v11451_v5, %v942_v50  ;;  %8701 = vmatmul.mubr.msk.f32.gmra.mxu1 %vm2038_vm3, %v9416_v38 }
 0x14e   :  { %v9426_v54 = vpop.eup %9425  ;;  %v1702_v55 = vadd.f32 1.0, %v9424_v51  ;;  %9451 = vpow2.f32 %v7194_v47  ;;  %v8536_v56 = vpop.f32.mrf.mxu0 }
 0x14f   :  { %v9428_v57 = vpop.eup %9427  ;;  %9453 = vpow2.f32 %v7197_v52  ;;  %v7196_v58 = vmul.f32 -1.442695, %v943_v53  ;;  %v958_v59 = vadd.f32 %v11451_v5, %v8536_v56  ;;  %8703 = vmatprep.mubr.msk.f32.mxu1 %vm2038_vm3, %v9426_v54 }
 0x150   :  { %v9430_v60 = vpop.eup %9429  ;;  %9455 = vrcp.f32 %v1702_v55  ;;  %v1701_v61 = vadd.f32 1.0, %v9428_v57  ;;  %v952_v62 = vpop.f32.mrf.mxu0 }
 0x151   :  { %v9432_v63 = vpop.eup %9431  ;;  %9457 = vpow2.f32 %v7196_v58  ;;  %v7199_v0 = vmul.f32 -1.442695, %v958_v59  ;;  %v953_v1 = vadd.f32 %v11451_v5, %v952_v62  ;;  %8704 = vmatmul.mubr.msk.f32.gmra.mxu1 %vm2038_vm3, %v9422_v49 }
 0x152   :  { %v9434_v2 = vpop.eup %9433  ;;  %9459 = vrcp.f32 %v1701_v61  ;;  %v1704_v3 = vadd.f32 1.0, %v9432_v63  ;;  %v8539_v4 = vpop.f32.mrf.mxu0 }
 0x153   :  { %v9436_v6 = vpop.eup %9435  ;;  %9461 = vpow2.f32 %v7199_v0  ;;  %v7198_v41 = vmul.f32 -1.442695, %v953_v1  ;;  %v968_v8 = vadd.f32 %v11451_v5, %v8539_v4  ;;  %8706 = vmatprep.mubr.msk.f32.mxu1 %vm2038_vm3, %v9434_v2 }
 0x154   :  { %v9438_v9 = vpop.eup %9437  ;;  %9463 = vrcp.f32 %v1704_v3  ;;  %v1703_v10 = vadd.f32 1.0, %v9436_v6  ;;  %v962_v11 = vpop.f32.mrf.mxu0 }
 0x155   :  { %v9440_v12 = vpop.eup %9439  ;;  %9465 = vpow2.f32 %v7198_v41  ;;  %v7201_v13 = vmul.f32 -1.442695, %v968_v8  ;;  %v963_v14 = vadd.f32 %v11451_v5, %v962_v11  ;;  %8707 = vmatmul.mubr.msk.f32.gmra.mxu1 %vm2038_vm3, %v9430_v60 }
 0x156   :  { %v9442_v15 = vpop.eup %9441  ;;  %9467 = vrcp.f32 %v1703_v10  ;;  %v1706_v16 = vadd.f32 1.0, %v9440_v12  ;;  %v8542_v17 = vpop.f32.mrf.mxu0 }
 0x157   :  { %v9444_v18 = vpop.eup %9443  ;;  %9469 = vpow2.f32 %v7201_v13  ;;  %v7200_v19 = vmul.f32 -1.442695, %v963_v14  ;;  %v978_v20 = vadd.f32 %v11451_v5, %v8542_v17  ;;  %8709 = vmatprep.mubr.msk.f32.mxu1 %vm2038_vm3, %v9442_v15 }
 0x158   :  { %v9446_v21 = vpop.eup %9445  ;;  %9471 = vrcp.f32 %v1706_v16  ;;  %v1705_v22 = vadd.f32 1.0, %v9444_v18  ;;  %v972_v23 = vpop.f32.mrf.mxu0 }
 0x159   :  { %v9448_v24 = vpop.eup %9447  ;;  %9473 = vpow2.f32 %v7200_v19  ;;  %v7203_v25 = vmul.f32 -1.442695, %v978_v20  ;;  %v973_v26 = vadd.f32 %v11451_v5, %v972_v23  ;;  %8710 = vmatmul.mubr.msk.f32.gmra.mxu1 %vm2038_vm3, %v9438_v9 }
 0x15a   :  { %v9450_v27 = vpop.eup %9449  ;;  %9475 = vrcp.f32 %v1705_v22  ;;  %v1708_v7 = vadd.f32 1.0, %v9448_v24  ;;  %v8545_v28 = vpop.f32.mrf.mxu0 }
 0x15b   :  { %v9452_v29 = vpop.eup %9451  ;;  %9477 = vpow2.f32 %v7203_v25  ;;  %v7202_v30 = vmul.f32 -1.442695, %v973_v26  ;;  %v988_v31 = vadd.f32 %v11451_v5, %v8545_v28  ;;  %8712 = vmatprep.mubr.msk.f32.mxu1 %vm2038_vm3, %v9450_v27 }
 0x15c   :  { %v9454_v32 = vpop.eup %9453  ;;  %9479 = vrcp.f32 %v1708_v7  ;;  %v1707_v33 = vadd.f32 1.0, %v9452_v29  ;;  %v982_v34 = vpop.f32.mrf.mxu0 }
 0x15d   :  { %v9456_v35 = vpop.eup %9455  ;;  %v1710_v36 = vadd.f32 1.0, %v9454_v32  ;;  %9481 = vpow2.f32 %v7202_v30  ;;  %v7205_v37 = vmul.f32 -1.442695, %v988_v31  ;;  %v983_v38 = vadd.f32 %v11451_v5, %v982_v34  ;;  %8713 = vmatmul.mubr.msk.f32.gmra.mxu1 %vm2038_vm3, %v9446_v21 }
 0x15e   :  { %v9458_v39 = vpop.eup %9457  ;;  %9483 = vrcp.f32 %v1707_v33  ;;  %v8548_v40 = vpop.f32.mrf.mxu0 }
 0x15f   :  { %v9460_v42 = vpop.eup %9459  ;;  %9485 = vrcp.f32 %v1710_v36  ;;  %v1709_v43 = vadd.f32 1.0, %v9458_v39  ;;  %v7204_v44 = vmul.f32 -1.442695, %v983_v38  ;;  %v998_v45 = vadd.f32 %v11451_v5, %v8548_v40 }
 0x160   :  { %v9462_v46 = vpop.eup %9461  ;;  %9487 = vpow2.f32 %v7205_v37  ;;  %8715 = vmatprep.mubr.msk.f32.mxu1 %vm2038_vm3, %v9460_v42  ;;  %v992_v47 = vpop.f32.mrf.mxu0 }
 0x161   :  { %v9464_v48 = vpop.eup %9463  ;;  %9489 = vrcp.f32 %v1709_v43  ;;  %v1712_v49 = vadd.f32 1.0, %v9462_v46  ;;  %v7207_v50 = vmul.f32 -1.442695, %v998_v45  ;;  %v993_v51 = vadd.f32 %v11451_v5, %v992_v47  ;;  %8716 = vmatmul.mubr.msk.f32.gmra.mxu1 %vm2038_vm3, %v9456_v35 }
 0x162   :  { %v9466_v52 = vpop.eup %9465  ;;  %9491 = vpow2.f32 %v7204_v44  ;;  %v8551_v53 = vpop.f32.mrf.mxu0 }
 0x163   :  { %v9468_v54 = vpop.eup %9467  ;;  %9493 = vrcp.f32 %v1712_v49  ;;  %v1711_v55 = vadd.f32 1.0, %v9466_v52  ;;  %v7206_v56 = vmul.f32 -1.442695, %v993_v51  ;;  %v1008_v57 = vadd.f32 %v11451_v5, %v8551_v53 }
 0x164   :  { %v9470_v58 = vpop.eup %9469  ;;  %9495 = vpow2.f32 %v7207_v50  ;;  %8718 = vmatprep.mubr.msk.f32.mxu1 %vm2038_vm3, %v9468_v54  ;;  %v1002_v59 = vpop.f32.mrf.mxu0 }
 0x165   :  { %v9472_v60 = vpop.eup %9471  ;;  %9497 = vrcp.f32 %v1711_v55  ;;  %v1714_v61 = vadd.f32 1.0, %v9470_v58  ;;  %v7209_v62 = vmul.f32 -1.442695, %v1008_v57  ;;  %v1003_v63 = vadd.f32 %v11451_v5, %v1002_v59  ;;  %8719 = vmatmul.mubr.msk.f32.gmra.mxu1 %vm2038_vm3, %v9464_v48 }
 0x166   :  { %v9474_v0 = vpop.eup %9473  ;;  %9499 = vpow2.f32 %v7206_v56  ;;  %v8554_v1 = vpop.f32.mrf.mxu0 }
 0x167   :  { %v9476_v2 = vpop.eup %9475  ;;  %9501 = vrcp.f32 %v1714_v61  ;;  %v1713_v3 = vadd.f32 1.0, %v9474_v0  ;;  %v7208_v4 = vmul.f32 -1.442695, %v1003_v63  ;;  %v1018_v6 = vadd.f32 %v11451_v5, %v8554_v1 }
 0x168   :  { %v9478_v41 = vpop.eup %9477  ;;  %9503 = vpow2.f32 %v7209_v62  ;;  %8721 = vmatprep.mubr.msk.f32.mxu1 %vm2038_vm3, %v9476_v2  ;;  %v1012_v8 = vpop.f32.mrf.mxu0 }
 0x169   :  { %v9480_v9 = vpop.eup %9479  ;;  %9505 = vrcp.f32 %v1713_v3  ;;  %v1716_v10 = vadd.f32 1.0, %v9478_v41  ;;  %v7211_v11 = vmul.f32 -1.442695, %v1018_v6  ;;  %v1013_v12 = vadd.f32 %v11451_v5, %v1012_v8  ;;  %8722 = vmatmul.mubr.msk.f32.gmra.mxu1 %vm2038_vm3, %v9472_v60 }
 0x16a   :  { %v9482_v13 = vpop.eup %9481  ;;  %9507 = vpow2.f32 %v7208_v4  ;;  %v8557_v14 = vpop.f32.mrf.mxu0 }
 0x16b   :  { %v9484_v15 = vpop.eup %9483  ;;  %9509 = vrcp.f32 %v1716_v10  ;;  %v1715_v16 = vadd.f32 1.0, %v9482_v13  ;;  %v7210_v17 = vmul.f32 -1.442695, %v1013_v12  ;;  %v1028_v18 = vadd.f32 %v11451_v5, %v8557_v14 }
 0x16c   :  { %v9486_v19 = vpop.eup %9485  ;;  %9511 = vpow2.f32 %v7211_v11  ;;  %8724 = vmatprep.mubr.msk.f32.mxu1 %vm2038_vm3, %v9484_v15  ;;  %v1022_v20 = vpop.f32.mrf.mxu0 }
 0x16d   :  { %v9488_v21 = vpop.eup %9487  ;;  %9513 = vrcp.f32 %v1715_v16  ;;  %v7213_v22 = vmul.f32 -1.442695, %v1028_v18  ;;  %v1023_v23 = vadd.f32 %v11451_v5, %v1022_v20  ;;  %8725 = vmatmul.mubr.msk.f32.gmra.mxu1 %vm2038_vm3, %v9480_v9 }
 0x16e   :  { %v9490_v24 = vpop.eup %9489  ;;  %v1718_v25 = vadd.f32 1.0, %v9488_v21  ;;  %9515 = vpow2.f32 %v7210_v17  ;;  %v8560_v26 = vpop.f32.mrf.mxu0 }
 0x16f   :  { %v9492_v27 = vpop.eup %9491  ;;  %9517 = vpow2.f32 %v7213_v22  ;;  %v7212_v7 = vmul.f32 -1.442695, %v1023_v23  ;;  %v1038_v28 = vadd.f32 %v11451_v5, %v8560_v26  ;;  %8727 = vmatprep.mubr.msk.f32.mxu1 %vm2038_vm3, %v9490_v24 }
 0x170   :  { %v9494_v29 = vpop.eup %9493  ;;  %9519 = vrcp.f32 %v1718_v25  ;;  %v1717_v30 = vadd.f32 1.0, %v9492_v27  ;;  %v1032_v31 = vpop.f32.mrf.mxu0 }
 0x171   :  { %v9496_v32 = vpop.eup %9495  ;;  %9521 = vpow2.f32 %v7212_v7  ;;  %v7215_v33 = vmul.f32 -1.442695, %v1038_v28  ;;  %v1033_v34 = vadd.f32 %v11451_v5, %v1032_v31  ;;  %8728 = vmatmul.mubr.msk.f32.gmra.mxu1 %vm2038_vm3, %v9486_v19 }
 0x172   :  { %v9498_v35 = vpop.eup %9497  ;;  %9523 = vrcp.f32 %v1717_v30  ;;  %v1720_v36 = vadd.f32 1.0, %v9496_v32  ;;  %v8563_v37 = vpop.f32.mrf.mxu0 }
 0x173   :  { %v9500_v38 = vpop.eup %9499  ;;  %9525 = vpow2.f32 %v7215_v33  ;;  %v7214_v39 = vmul.f32 -1.442695, %v1033_v34  ;;  %v1048_v40 = vadd.f32 %v11451_v5, %v8563_v37  ;;  %8730 = vmatprep.mubr.msk.f32.mxu1 %vm2038_vm3, %v9498_v35 }
 0x174   :  { %v9502_v42 = vpop.eup %9501  ;;  %9527 = vrcp.f32 %v1720_v36  ;;  %v1719_v43 = vadd.f32 1.0, %v9500_v38  ;;  %v1042_v44 = vpop.f32.mrf.mxu0 }
 0x175   :  { %v9504_v45 = vpop.eup %9503  ;;  %9529 = vpow2.f32 %v7214_v39  ;;  %v7217_v46 = vmul.f32 -1.442695, %v1048_v40  ;;  %v1043_v47 = vadd.f32 %v11451_v5, %v1042_v44  ;;  %8731 = vmatmul.mubr.msk.f32.gmra.mxu1 %vm2038_vm3, %v9494_v29  ;;  %v5771_v29 = vld [vmem:[%s13514_s7 + $0x8] sm:$0x3] }
 0x176   :  { %v9506_v48 = vpop.eup %9505  ;;  %9531 = vrcp.f32 %v1719_v43  ;;  %v1722_v49 = vadd.f32 1.0, %v9504_v45  ;;  %v8566_v50 = vpop.f32.mrf.mxu0  ;;  %9017 = vmatprep.subr.msk.mxu0 %vm2423_vm1, %v5771_v29 }
 0x177   :  { %v9508_v51 = vpop.eup %9507  ;;  %9533 = vpow2.f32 %v7217_v46  ;;  %v7216_v52 = vmul.f32 -1.442695, %v1043_v47  ;;  %v1058_v53 = vadd.f32 %v11451_v5, %v8566_v50  ;;  %8733 = vmatprep.mubr.msk.f32.mxu1 %vm2038_vm3, %v9506_v48  ;;  %9018 = vmatpush3.msk.msra.mxu0 %vm2423_vm1, %v5771_v29 }
 0x178   :  { %v9510_v54 = vpop.eup %9509  ;;  %9535 = vrcp.f32 %v1722_v49  ;;  %v1721_v55 = vadd.f32 1.0, %v9508_v51  ;;  %v1052_v56 = vpop.f32.mrf.mxu0 }
 0x179   :  { %v9512_v57 = vpop.eup %9511  ;;  %9537 = vpow2.f32 %v7216_v52  ;;  %v7219_v58 = vmul.f32 -1.442695, %v1058_v53  ;;  %v1053_v59 = vadd.f32 %v11451_v5, %v1052_v56  ;;  %8734 = vmatmul.mubr.msk.f32.gmra.mxu1 %vm2038_vm3, %v9502_v42 }
 0x17a   :  { %v9514_v60 = vpop.eup %9513  ;;  %9539 = vrcp.f32 %v1721_v55  ;;  %v1724_v61 = vadd.f32 1.0, %v9512_v57  ;;  %v8569_v62 = vpop.f32.mrf.mxu0 }
 0x17b   :  { %v9516_v63 = vpop.eup %9515  ;;  %9541 = vpow2.f32 %v7219_v58  ;;  %v7218_v0 = vmul.f32 -1.442695, %v1053_v59  ;;  %v1068_v1 = vadd.f32 %v11451_v5, %v8569_v62  ;;  %8736 = vmatprep.mubr.msk.f32.mxu1 %vm2038_vm3, %v9514_v60 }
 0x17c   :  { %v9518_v2 = vpop.eup %9517  ;;  %9543 = vrcp.f32 %v1724_v61  ;;  %v1723_v3 = vadd.f32 1.0, %v9516_v63  ;;  %v1062_v4 = vpop.f32.mrf.mxu0 }
 0x17d   :  { %v9520_v6 = vpop.eup %9519  ;;  %v1726_v41 = vadd.f32 1.0, %v9518_v2  ;;  %9545 = vpow2.f32 %v7218_v0  ;;  %v7221_v8 = vmul.f32 -1.442695, %v1068_v1  ;;  %v1063_v9 = vadd.f32 %v11451_v5, %v1062_v4  ;;  %8737 = vmatmul.mubr.msk.f32.gmra.mxu1 %vm2038_vm3, %v9510_v54 }
 0x17e   :  { %v9522_v10 = vpop.eup %9521  ;;  %9547 = vrcp.f32 %v1723_v3  ;;  %v8572_v11 = vpop.f32.mrf.mxu0 }
 0x17f   :  { %v9524_v12 = vpop.eup %9523  ;;  %9549 = vrcp.f32 %v1726_v41  ;;  %v1725_v13 = vadd.f32 1.0, %v9522_v10  ;;  %v7220_v14 = vmul.f32 -1.442695, %v1063_v9  ;;  %v1078_v15 = vadd.f32 %v11451_v5, %v8572_v11 }
 0x180   :  { %v9526_v16 = vpop.eup %9525  ;;  %9551 = vpow2.f32 %v7221_v8  ;;  %8739 = vmatprep.mubr.msk.f32.mxu1 %vm2038_vm3, %v9524_v12  ;;  %v1072_v17 = vpop.f32.mrf.mxu0 }
 0x181   :  { %v9528_v18 = vpop.eup %9527  ;;  %9553 = vrcp.f32 %v1725_v13  ;;  %v1728_v19 = vadd.f32 1.0, %v9526_v16  ;;  %v7223_v20 = vmul.f32 -1.442695, %v1078_v15  ;;  %v1073_v21 = vadd.f32 %v11451_v5, %v1072_v17  ;;  %8740 = vmatmul.mubr.msk.f32.gmra.mxu1 %vm2038_vm3, %v9520_v6 }
 0x182   :  { %v9530_v22 = vpop.eup %9529  ;;  %9555 = vpow2.f32 %v7220_v14  ;;  %v8575_v23 = vpop.f32.mrf.mxu0 }
 0x183   :  { %v9532_v24 = vpop.eup %9531  ;;  %9557 = vrcp.f32 %v1728_v19  ;;  %v1727_v25 = vadd.f32 1.0, %v9530_v22  ;;  %v7222_v26 = vmul.f32 -1.442695, %v1073_v21  ;;  %v1088_v27 = vadd.f32 %v11451_v5, %v8575_v23 }
 0x184   :  { %v9534_v7 = vpop.eup %9533  ;;  %9559 = vpow2.f32 %v7223_v20  ;;  %8742 = vmatprep.mubr.msk.f32.mxu1 %vm2038_vm3, %v9532_v24  ;;  %v1082_v28 = vpop.f32.mrf.mxu0 }
 0x185   :  { %v9536_v30 = vpop.eup %9535  ;;  %9561 = vrcp.f32 %v1727_v25  ;;  %v1730_v31 = vadd.f32 1.0, %v9534_v7  ;;  %v7225_v32 = vmul.f32 -1.442695, %v1088_v27  ;;  %v1083_v33 = vadd.f32 %v11451_v5, %v1082_v28  ;;  %8743 = vmatmul.mubr.msk.f32.gmra.mxu1 %vm2038_vm3, %v9528_v18 }
 0x186   :  { %v9538_v34 = vpop.eup %9537  ;;  %9563 = vpow2.f32 %v7222_v26  ;;  %v8578_v35 = vpop.f32.mrf.mxu0 }
 0x187   :  { %v9540_v36 = vpop.eup %9539  ;;  %9565 = vrcp.f32 %v1730_v31  ;;  %v1729_v37 = vadd.f32 1.0, %v9538_v34  ;;  %v7224_v38 = vmul.f32 -1.442695, %v1083_v33  ;;  %v1098_v39 = vadd.f32 %v11451_v5, %v8578_v35 }
 0x188   :  { %v9542_v40 = vpop.eup %9541  ;;  %9567 = vpow2.f32 %v7225_v32  ;;  %8745 = vmatprep.mubr.msk.f32.mxu1 %vm2038_vm3, %v9540_v36  ;;  %v1092_v42 = vpop.f32.mrf.mxu0 }
 0x189   :  { %v9544_v43 = vpop.eup %9543  ;;  %9569 = vrcp.f32 %v1729_v37  ;;  %v1732_v44 = vadd.f32 1.0, %v9542_v40  ;;  %v7227_v45 = vmul.f32 -1.442695, %v1098_v39  ;;  %v1093_v46 = vadd.f32 %v11451_v5, %v1092_v42  ;;  %8746 = vmatmul.mubr.msk.f32.gmra.mxu1 %vm2038_vm3, %v9536_v30 }
 0x18a   :  { %v9546_v47 = vpop.eup %9545  ;;  %9571 = vpow2.f32 %v7224_v38  ;;  %v8581_v48 = vpop.f32.mrf.mxu0 }
 0x18b   :  { %v9548_v49 = vpop.eup %9547  ;;  %9573 = vrcp.f32 %v1732_v44  ;;  %v1731_v50 = vadd.f32 1.0, %v9546_v47  ;;  %v7226_v51 = vmul.f32 -1.442695, %v1093_v46  ;;  %v1108_v52 = vadd.f32 %v11451_v5, %v8581_v48 }
 0x18c   :  { %v9550_v53 = vpop.eup %9549  ;;  %9575 = vpow2.f32 %v7227_v45  ;;  %8748 = vmatprep.mubr.msk.f32.mxu1 %vm2038_vm3, %v9548_v49  ;;  %v1102_v54 = vpop.f32.mrf.mxu0 }
 0x18d   :  { %v9552_v55 = vpop.eup %9551  ;;  %9577 = vrcp.f32 %v1731_v50  ;;  %v7229_v56 = vmul.f32 -1.442695, %v1108_v52  ;;  %v1103_v57 = vadd.f32 %v11451_v5, %v1102_v54  ;;  %8749 = vmatmul.mubr.msk.f32.gmra.mxu1 %vm2038_vm3, %v9544_v43 }
 0x18e   :  { %v9554_v58 = vpop.eup %9553  ;;  %v1734_v59 = vadd.f32 1.0, %v9552_v55  ;;  %9579 = vpow2.f32 %v7226_v51  ;;  %v8584_v60 = vpop.f32.mrf.mxu0 }
 0x18f   :  { %v9556_v61 = vpop.eup %9555  ;;  %9581 = vpow2.f32 %v7229_v56  ;;  %v7228_v62 = vmul.f32 -1.442695, %v1103_v57  ;;  %v1118_v63 = vadd.f32 %v11451_v5, %v8584_v60  ;;  %8751 = vmatprep.mubr.msk.f32.mxu1 %vm2038_vm3, %v9554_v58 }
 0x190   :  { %v9558_v0 = vpop.eup %9557  ;;  %9583 = vrcp.f32 %v1734_v59  ;;  %v1733_v1 = vadd.f32 1.0, %v9556_v61  ;;  %v1112_v2 = vpop.f32.mrf.mxu0 }
 0x191   :  { %v9560_v3 = vpop.eup %9559  ;;  %9585 = vpow2.f32 %v7228_v62  ;;  %v7231_v4 = vmul.f32 -1.442695, %v1118_v63  ;;  %v1113_v6 = vadd.f32 %v11451_v5, %v1112_v2  ;;  %8752 = vmatmul.mubr.msk.f32.gmra.mxu1 %vm2038_vm3, %v9550_v53 }
 0x192   :  { %v9562_v41 = vpop.eup %9561  ;;  %9587 = vrcp.f32 %v1733_v1  ;;  %v1736_v8 = vadd.f32 1.0, %v9560_v3  ;;  %v8587_v9 = vpop.f32.mrf.mxu0 }
 0x193   :  { %v9564_v10 = vpop.eup %9563  ;;  %9589 = vpow2.f32 %v7231_v4  ;;  %v7230_v11 = vmul.f32 -1.442695, %v1113_v6  ;;  %v1128_v12 = vadd.f32 %v11451_v5, %v8587_v9  ;;  %8754 = vmatprep.mubr.msk.f32.mxu1 %vm2038_vm3, %v9562_v41 }
 0x194   :  { %v9566_v13 = vpop.eup %9565  ;;  %9591 = vrcp.f32 %v1736_v8  ;;  %v1735_v14 = vadd.f32 1.0, %v9564_v10  ;;  %v1122_v15 = vpop.f32.mrf.mxu0 }
 0x195   :  { %v9568_v16 = vpop.eup %9567  ;;  %9593 = vpow2.f32 %v7230_v11  ;;  %v7233_v17 = vmul.f32 -1.442695, %v1128_v12  ;;  %v1123_v18 = vadd.f32 %v11451_v5, %v1122_v15  ;;  %8755 = vmatmul.mubr.msk.f32.gmra.mxu1 %vm2038_vm3, %v9558_v0 }
 0x196   :  { %v9570_v19 = vpop.eup %9569  ;;  %9595 = vrcp.f32 %v1735_v14  ;;  %v1738_v20 = vadd.f32 1.0, %v9568_v16  ;;  %v8590_v21 = vpop.f32.mrf.mxu0 }
 0x197   :  { %v9572_v22 = vpop.eup %9571  ;;  %9597 = vpow2.f32 %v7233_v17  ;;  %v7232_v23 = vmul.f32 -1.442695, %v1123_v18  ;;  %v1138_v24 = vadd.f32 %v11451_v5, %v8590_v21  ;;  %8757 = vmatprep.mubr.msk.f32.mxu1 %vm2038_vm3, %v9570_v19 }
 0x198   :  { %v9574_v25 = vpop.eup %9573  ;;  %9599 = vrcp.f32 %v1738_v20  ;;  %v1737_v26 = vadd.f32 1.0, %v9572_v22  ;;  %v1132_v27 = vpop.f32.mrf.mxu0 }
 0x199   :  { %v9576_v7 = vpop.eup %9575  ;;  %9601 = vpow2.f32 %v7232_v23  ;;  %v7235_v28 = vmul.f32 -1.442695, %v1138_v24  ;;  %v1133_v29 = vadd.f32 %v11451_v5, %v1132_v27  ;;  %8758 = vmatmul.mubr.msk.f32.gmra.mxu1 %vm2038_vm3, %v9566_v13 }
 0x19a   :  { %v9578_v30 = vpop.eup %9577  ;;  %9603 = vrcp.f32 %v1737_v26  ;;  %v1740_v31 = vadd.f32 1.0, %v9576_v7  ;;  %v8593_v32 = vpop.f32.mrf.mxu0 }
 0x19b   :  { %v9580_v33 = vpop.eup %9579  ;;  %9605 = vpow2.f32 %v7235_v28  ;;  %v7234_v34 = vmul.f32 -1.442695, %v1133_v29  ;;  %v1148_v35 = vadd.f32 %v11451_v5, %v8593_v32  ;;  %8760 = vmatprep.mubr.msk.f32.mxu1 %vm2038_vm3, %v9578_v30  ;;  %v11575_v30 = vld [vmem:[%s13515_s4] ss:$0 sm:$0xff] }
 0x19c   :  { %v9582_v36 = vpop.eup %9581  ;;  %9607 = vrcp.f32 %v1740_v31  ;;  %v1739_v37 = vadd.f32 1.0, %v9580_v33  ;;  %v1142_v38 = vpop.f32.mrf.mxu0  ;;  %v11580_v33 = vld [vmem:[%s13513_s2] ss:$0 sm:$0xff] }
 0x19d   :  { %v9584_v39 = vpop.eup %9583  ;;  %v1742_v40 = vadd.f32 1.0, %v9582_v36  ;;  %9609 = vpow2.f32 %v7234_v34  ;;  %v7237_v42 = vmul.f32 -1.442695, %v1148_v35  ;;  %v1143_v43 = vadd.f32 %v11451_v5, %v1142_v38  ;;  %8761 = vmatmul.mubr.msk.f32.gmra.mxu1 %vm2038_vm3, %v9574_v25 }
 0x19e   :  { %v9586_v44 = vpop.eup %9585  ;;  %9611 = vrcp.f32 %v1739_v37  ;;  %v8596_v45 = vpop.f32.mrf.mxu0 }
 0x19f   :  { %v9588_v46 = vpop.eup %9587  ;;  %9613 = vrcp.f32 %v1742_v40  ;;  %v1741_v47 = vadd.f32 1.0, %v9586_v44  ;;  %v7236_v48 = vmul.f32 -1.442695, %v1143_v43  ;;  %v1158_v49 = vadd.f32 %v11451_v5, %v8596_v45 }
 0x1a0   :  { %v9590_v50 = vpop.eup %9589  ;;  %9615 = vpow2.f32 %v7237_v42  ;;  %8763 = vmatprep.mubr.msk.f32.mxu1 %vm2038_vm3, %v9588_v46  ;;  %v1152_v51 = vpop.f32.mrf.mxu0 }
 0x1a1   :  { %v9592_v52 = vpop.eup %9591  ;;  %9617 = vrcp.f32 %v1741_v47  ;;  %v1744_v53 = vadd.f32 1.0, %v9590_v50  ;;  %v7239_v54 = vmul.f32 -1.442695, %v1158_v49  ;;  %v1153_v55 = vadd.f32 %v11451_v5, %v1152_v51  ;;  %8764 = vmatmul.mubr.msk.f32.gmra.mxu1 %vm2038_vm3, %v9584_v39 }
 0x1a2   :  { %v9594_v56 = vpop.eup %9593  ;;  %9619 = vpow2.f32 %v7236_v48  ;;  %v8599_v57 = vpop.f32.mrf.mxu0 }
 0x1a3   :  { %v9596_v58 = vpop.eup %9595  ;;  %9621 = vrcp.f32 %v1744_v53  ;;  %v1743_v59 = vadd.f32 1.0, %v9594_v56  ;;  %v7238_v60 = vmul.f32 -1.442695, %v1153_v55  ;;  %v1168_v61 = vadd.f32 %v11451_v5, %v8599_v57 }
 0x1a4   :  { %v9598_v62 = vpop.eup %9597  ;;  %9623 = vpow2.f32 %v7239_v54  ;;  %8766 = vmatprep.mubr.msk.f32.mxu1 %vm2038_vm3, %v9596_v58  ;;  %v1162_v63 = vpop.f32.mrf.mxu0 }
 0x1a5   :  { %v9600_v0 = vpop.eup %9599  ;;  %9625 = vrcp.f32 %v1743_v59  ;;  %v1746_v1 = vadd.f32 1.0, %v9598_v62  ;;  %v7241_v2 = vmul.f32 -1.442695, %v1168_v61  ;;  %v1163_v3 = vadd.f32 %v11451_v5, %v1162_v63  ;;  %8767 = vmatmul.mubr.msk.f32.gmra.mxu1 %vm2038_vm3, %v9592_v52 }
 0x1a6   :  { %v9602_v4 = vpop.eup %9601  ;;  %9627 = vpow2.f32 %v7238_v60  ;;  %v8602_v6 = vpop.f32.mrf.mxu0 }
 0x1a7   :  { %v9604_v41 = vpop.eup %9603  ;;  %9629 = vrcp.f32 %v1746_v1  ;;  %v1745_v8 = vadd.f32 1.0, %v9602_v4  ;;  %v7240_v9 = vmul.f32 -1.442695, %v1163_v3  ;;  %v1178_v10 = vadd.f32 %v11451_v5, %v8602_v6 }
 0x1a8   :  { %v9606_v11 = vpop.eup %9605  ;;  %9631 = vpow2.f32 %v7241_v2  ;;  %8769 = vmatprep.mubr.msk.f32.mxu1 %vm2038_vm3, %v9604_v41  ;;  %v1172_v12 = vpop.f32.mrf.mxu0 }
 0x1a9   :  { %v9608_v13 = vpop.eup %9607  ;;  %9633 = vrcp.f32 %v1745_v8  ;;  %v1748_v14 = vadd.f32 1.0, %v9606_v11  ;;  %v7243_v15 = vmul.f32 -1.442695, %v1178_v10  ;;  %v1173_v16 = vadd.f32 %v11451_v5, %v1172_v12  ;;  %8770 = vmatmul.mubr.msk.f32.gmra.mxu1 %vm2038_vm3, %v9600_v0 }
 0x1aa   :  { %v9610_v17 = vpop.eup %9609  ;;  %9635 = vpow2.f32 %v7240_v9  ;;  %v8605_v18 = vpop.f32.mrf.mxu0 }
 0x1ab   :  { %v9612_v19 = vpop.eup %9611  ;;  %9637 = vrcp.f32 %v1748_v14  ;;  %v1747_v20 = vadd.f32 1.0, %v9610_v17  ;;  %v7242_v21 = vmul.f32 -1.442695, %v1173_v16  ;;  %v1188_v22 = vadd.f32 %v11451_v5, %v8605_v18 }
 0x1ac   :  { %v9614_v23 = vpop.eup %9613  ;;  %9639 = vpow2.f32 %v7243_v15  ;;  %8772 = vmatprep.mubr.msk.f32.mxu1 %vm2038_vm3, %v9612_v19  ;;  %v1182_v24 = vpop.f32.mrf.mxu0 }
 0x1ad   :  { %v9616_v25 = vpop.eup %9615  ;;  %9641 = vrcp.f32 %v1747_v20  ;;  %v7245_v26 = vmul.f32 -1.442695, %v1188_v22  ;;  %v1183_v27 = vadd.f32 %v11451_v5, %v1182_v24  ;;  %8773 = vmatmul.mubr.msk.f32.gmra.mxu1 %vm2038_vm3, %v9608_v13 }
 0x1ae   :  { %v9618_v7 = vpop.eup %9617  ;;  %v1750_v28 = vadd.f32 1.0, %v9616_v25  ;;  %9643 = vpow2.f32 %v7242_v21  ;;  %v8608_v29 = vpop.f32.mrf.mxu0 }
 0x1af   :  { %v9620_v31 = vpop.eup %9619  ;;  %9645 = vpow2.f32 %v7245_v26  ;;  %v7244_v32 = vmul.f32 -1.442695, %v1183_v27  ;;  %v1198_v5 = vadd.f32 %v11580_v33, %v8608_v29  ;;  %8775 = vmatprep.mubr.msk.f32.mxu1 %vm2038_vm3, %v9618_v7 }
 0x1b0   :  { %v9622_v34 = vpop.eup %9621  ;;  %9647 = vrcp.f32 %v1750_v28  ;;  %v1749_v35 = vadd.f32 1.0, %v9620_v31  ;;  %v1192_v36 = vpop.f32.mrf.mxu0 }
 0x1b1   :  { %v8633_v37 = vpop.f32.mrf.mxu1  ;;  %v9624_v38 = vpop.eup %9623  ;;  %9649 = vpow2.f32 %v7244_v32  ;;  %v7247_v39 = vmul.f32 -1.442695, %v1198_v5  ;;  %v1193_v40 = vadd.f32 %v11580_v33, %v1192_v36  ;;  %8776 = vmatmul.mubr.msk.f32.gmra.mxu1 %vm2038_vm3, %v9614_v23 }
 0x1b2   :  { %v2499_v42 = vadd.f32 %v8633_v37, %v11575_v30  ;;  %v9626_v43 = vpop.eup %9625  ;;  %9651 = vrcp.f32 %v1749_v35  ;;  %v1752_v44 = vadd.f32 1.0, %v9624_v38  ;;  %v8611_v45 = vpop.f32.mrf.mxu0 }
 0x1b3   :  { %v2493_v46 = vpop.f32.mrf.mxu1  ;;  %v9628_v47 = vpop.eup %9627  ;;  %9653 = vpow2.f32 %v7247_v39  ;;  %v7246_v48 = vmul.f32 -1.442695, %v1193_v40  ;;  %v1208_v50 = vadd.f32 %v11580_v33, %v8611_v45  ;;  %8778 = vmatprep.mubr.msk.f32.mxu1 %vm2038_vm3, %v9626_v43 }
 0x1b4   :  { %v7391_v49 = vmul.f32 -1.442695, %v2499_v42  ;;  %v9630_v51 = vpop.eup %9629  ;;  %9655 = vrcp.f32 %v1752_v44  ;;  %v1751_v52 = vadd.f32 1.0, %v9628_v47  ;;  %v2494_v53 = vadd.f32 %v11575_v30, %v2493_v46  ;;  %v1202_v54 = vpop.f32.mrf.mxu0 }
 0x1b5   :  { %v8636_v55 = vpop.f32.mrf.mxu1  ;;  %v9632_v56 = vpop.eup %9631  ;;  %9657 = vpow2.f32 %v7246_v48  ;;  %v7249_v57 = vmul.f32 -1.442695, %v1208_v50  ;;  %v1203_v58 = vadd.f32 %v11580_v33, %v1202_v54  ;;  %8779 = vmatmul.mubr.msk.f32.gmra.mxu1 %vm2038_vm3, %v9622_v34 }
 0x1b6   :  { %v9634_v59 = vpop.eup %9633  ;;  %9659 = vrcp.f32 %v1751_v52  ;;  %v1754_v60 = vadd.f32 1.0, %v9632_v56  ;;  %v8614_v61 = vpop.f32.mrf.mxu0  ;;  %v7390_v0 = vmul.f32 -1.442695, %v2494_v53  ;;  %v2509_v3 = vadd.f32 %v8636_v55, %v11575_v30 }
 0x1b7   :  { %v2503_v62 = vpop.f32.mrf.mxu1  ;;  %v9636_v63 = vpop.eup %9635  ;;  %9661 = vpow2.f32 %v7391_v49  ;;  %8781 = vmatprep.mubr.msk.f32.mxu1 %vm2038_vm3, %v9634_v59  ;;  %v7248_v41 = vmul.f32 -1.442695, %v1203_v58  ;;  %v1218_v10 = vadd.f32 %v11580_v33, %v8614_v61 }
 0x1b8   :  { %v9638_v1 = vpop.eup %9637  ;;  %9663 = vrcp.f32 %v1754_v60  ;;  %v1753_v2 = vadd.f32 1.0, %v9636_v63  ;;  %v1212_v11 = vpop.f32.mrf.mxu0  ;;  %v7393_v16 = vmul.f32 -1.442695, %v2509_v3  ;;  %v2504_v17 = vadd.f32 %v11575_v30, %v2503_v62 }
 0x1b9   :  { %v8639_v4 = vpop.f32.mrf.mxu1  ;;  %v9640_v6 = vpop.eup %9639  ;;  %9665 = vpow2.f32 %v7249_v57  ;;  %8782 = vmatmul.mubr.msk.f32.gmra.mxu1 %vm2038_vm3, %v9630_v51  ;;  %v7251_v22 = vmul.f32 -1.442695, %v1218_v10  ;;  %v1213_v23 = vadd.f32 %v11580_v33, %v1212_v11 }
 0x1ba   :  { %v9642_v8 = vpop.eup %9641  ;;  %9667 = vrcp.f32 %v1753_v2  ;;  %v1756_v9 = vadd.f32 1.0, %v9640_v6  ;;  %v8617_v24 = vpop.f32.mrf.mxu0  ;;  %v7392_v28 = vmul.f32 -1.442695, %v2504_v17  ;;  %v2519_v29 = vadd.f32 %v8639_v4, %v11575_v30 }
 0x1bb   :  { %v2513_v12 = vpop.f32.mrf.mxu1  ;;  %v9644_v13 = vpop.eup %9643  ;;  %9669 = vpow2.f32 %v7390_v0  ;;  %8784 = vmatprep.mubr.msk.f32.mxu1 %vm2038_vm3, %v9642_v8  ;;  %v7250_v35 = vmul.f32 -1.442695, %v1213_v23  ;;  %v1228_v36 = vadd.f32 %v11580_v33, %v8617_v24 }
 0x1bc   :  { %v9646_v14 = vpop.eup %9645  ;;  %9671 = vrcp.f32 %v1756_v9  ;;  %v1755_v15 = vadd.f32 1.0, %v9644_v13  ;;  %v1222_v37 = vpop.f32.mrf.mxu0  ;;  %v7395_v43 = vmul.f32 -1.442695, %v2519_v29  ;;  %v2514_v44 = vadd.f32 %v11575_v30, %v2513_v12 }
 0x1bd   :  { %v8642_v18 = vpop.f32.mrf.mxu1  ;;  %v9648_v19 = vpop.eup %9647  ;;  %v1758_v20 = vadd.f32 1.0, %v9646_v14  ;;  %9673 = vpow2.f32 %v7248_v41  ;;  %8785 = vmatmul.mubr.msk.f32.gmra.mxu1 %vm2038_vm3, %v9638_v1  ;;  %v7253_v49 = vmul.f32 -1.442695, %v1228_v36  ;;  %v1223_v50 = vadd.f32 %v11580_v33, %v1222_v37 }
 0x1be   :  { %v9650_v21 = vpop.eup %9649  ;;  %9675 = vrcp.f32 %v1755_v15  ;;  %v8620_v51 = vpop.f32.mrf.mxu0  ;;  %v2529_v54 = vadd.f32 %v8642_v18, %v11575_v30  ;;  %v7394_v57 = vmul.f32 -1.442695, %v2514_v44 }
 0x1bf   :  { %v2523_v25 = vpop.f32.mrf.mxu1  ;;  %v9652_v26 = vpop.eup %9651  ;;  %9677 = vrcp.f32 %v1758_v20  ;;  %v1757_v27 = vadd.f32 1.0, %v9650_v21  ;;  %v1238_v60 = vadd.f32 %v11580_v33, %v8620_v51  ;;  %v7252_v63 = vmul.f32 -1.442695, %v1223_v50 }
 0x1c0   :  { %v9654_v7 = vpop.eup %9653  ;;  %9679 = vpow2.f32 %v7393_v16  ;;  %8787 = vmatprep.mubr.msk.f32.mxu1 %vm2038_vm3, %v9652_v26  ;;  %v1232_v0 = vpop.f32.mrf.mxu0  ;;  %v7397_v3 = vmul.f32 -1.442695, %v2529_v54  ;;  %v2524_v4 = vadd.f32 %v11575_v30, %v2523_v25 }
 0x1c1   :  { %v9656_v31 = vpop.eup %9655  ;;  %9681 = vrcp.f32 %v1757_v27  ;;  %v1760_v32 = vadd.f32 1.0, %v9654_v7  ;;  %v11602_v5 = vpop.f32.mrf.mxu1  ;;  %8788 = vmatmul.mubr.msk.f32.gmra.mxu1 %vm2038_vm3, %v9648_v19  ;;  %v7255_v9 = vmul.f32 -1.442695, %v1238_v60  ;;  %v1233_v10 = vadd.f32 %v11580_v33, %v1232_v0 }
 0x1c2   :  { %v9658_v34 = vpop.eup %9657  ;;  %9683 = vpow2.f32 %v7251_v22  ;;  %v8623_v14 = vpop.f32.mrf.mxu0  ;;  %v7396_v16 = vmul.f32 -1.442695, %v2524_v4  ;;  %v2539_v17 = vadd.f32 %v11602_v5, %v11575_v30 }
 0x1c3   :  { %v9660_v38 = vpop.eup %9659  ;;  %9685 = vrcp.f32 %v1760_v32  ;;  %v1759_v39 = vadd.f32 1.0, %v9658_v34  ;;  %v11606_v40 = vpop.f32.mrf.mxu1  ;;  %v7254_v22 = vmul.f32 -1.442695, %v1233_v10  ;;  %v1248_v23 = vadd.f32 %v11580_v33, %v8623_v14 }
 0x1c4   :  { %v9662_v42 = vpop.eup %9661  ;;  %9687 = vpow2.f32 %v7392_v28  ;;  %8790 = vmatprep.mubr.msk.f32.mxu1 %vm2038_vm3, %v9660_v38  ;;  %v1242_v27 = vpop.f32.mrf.mxu0  ;;  %v7399_v28 = vmul.f32 -1.442695, %v2539_v17  ;;  %v2534_v29 = vadd.f32 %v11575_v30, %v11606_v40 }
 0x1c5   :  { %v9664_v45 = vpop.eup %9663  ;;  %9689 = vrcp.f32 %v1759_v39  ;;  %v3517_v46 = vadd.f32 1.0, %v9662_v42  ;;  %v11610_v47 = vpop.f32.mrf.mxu1  ;;  %8791 = vmatmul.mubr.msk.f32.gmra.mxu1 %vm2038_vm3, %v9656_v31  ;;  %v1243_v36 = vadd.f32 %v11580_v33, %v1242_v27 }
 0x1c6   :  { %v9666_v48 = vpop.eup %9665  ;;  %9691 = vpow2.f32 %v7250_v35  ;;  %v7257_v35 = vmul.f32 -1.442695, %v1248_v23  ;;  %v7398_v42 = vmul.f32 -1.442695, %v2534_v29 }
 0x1c7   :  { %v9668_v52 = vpop.eup %9667  ;;  %9693 = vrcp.f32 %v3517_v46  ;;  %v1762_v53 = vadd.f32 1.0, %v9666_v48  ;;  %v11615_v55 = vpop.f32.mrf.mxu1  ;;  %v2549_v48 = vadd.f32 %v11610_v47, %v11575_v30  ;;  %v7256_v50 = vmul.f32 -1.442695, %v1243_v36 }
 0x1c8   :  { %v9670_v56 = vpop.eup %9669  ;;  %9695 = vpow2.f32 %v7395_v43  ;;  %8793 = vmatprep.mubr.msk.f32.mxu1 %vm2038_vm3, %v9668_v52  ;;  %v8626_v43 = vpop.f32.mrf.mxu0 }
 0x1c9   :  { %v9672_v58 = vpop.eup %9671  ;;  %9697 = vrcp.f32 %v1762_v53  ;;  %v3516_v59 = vadd.f32 1.0, %v9670_v56  ;;  %v11619_v61 = vpop.f32.mrf.mxu1  ;;  %8794 = vmatmul.mubr.msk.f32.gmra.mxu1 %vm2038_vm3, %v9664_v45  ;;  %v1258_v54 = vadd.f32 %v11580_v33, %v8626_v43  ;;  %v7401_v60 = vmul.f32 -1.442695, %v2549_v48 }
 0x1ca   :  { %v9674_v62 = vpop.eup %9673  ;;  %9699 = vpow2.f32 %v7253_v49 }
 0x1cb   :  { %v9676_v1 = vpop.eup %9675  ;;  %9701 = vrcp.f32 %v3516_v59  ;;  %v1761_v2 = vadd.f32 1.0, %v9674_v62  ;;  %v11623_v6 = vpop.f32.mrf.mxu1  ;;  %v2544_v62 = vadd.f32 %v11575_v30, %v11615_v55 }
 0x1cc   :  { %v9678_v41 = vpop.eup %9677  ;;  %9703 = vpow2.f32 %v7394_v57  ;;  %8796 = vmatprep.mubr.msk.f32.mxu1 %vm2038_vm3, %v9676_v1  ;;  %v1252_v57 = vpop.f32.mrf.mxu0  ;;  %v2554_v17 = vadd.f32 %v11575_v30, %v11623_v6 }
 0x1cd   :  { %v9680_v8 = vpop.eup %9679  ;;  %9705 = vrcp.f32 %v1761_v2  ;;  %v11627_v11 = vpop.f32.mrf.mxu1  ;;  %8797 = vmatmul.mubr.msk.f32.gmra.mxu1 %vm2038_vm3, %v9672_v58  ;;  %v1253_v4 = vadd.f32 %v11580_v33, %v1252_v57  ;;  %v7400_v55 = vmul.f32 -1.442695, %v2544_v62 }
 0x1ce   :  { %v9682_v12 = vpop.eup %9681  ;;  %v3519_v13 = vadd.f32 1.0, %v9680_v8  ;;  %9707 = vpow2.f32 %v7252_v63  ;;  %v2569_v23 = vadd.f32 %v11627_v11, %v11575_v30 }
 0x1cf   :  { %v9684_v15 = vpop.eup %9683  ;;  %9709 = vpow2.f32 %v7397_v3  ;;  %v11632_v18 = vpop.f32.mrf.mxu1  ;;  %8799 = vmatprep.mubr.msk.f32.mxu1 %vm2038_vm3, %v9682_v12  ;;  %v7259_v3 = vmul.f32 -1.442695, %v1258_v54  ;;  %v2559_v12 = vadd.f32 %v11619_v61, %v11575_v30  ;;  %v7258_v33 = vmul.f32 -1.442695, %v1253_v4 }
 0x1d0   :  { %v9686_v19 = vpop.eup %9685  ;;  %9711 = vrcp.f32 %v3519_v13  ;;  %v1764_v20 = vadd.f32 1.0, %v9684_v15  ;;  %v7405_v36 = vmul.f32 -1.442695, %v2569_v23 }
 0x1d1   :  { %v9688_v21 = vpop.eup %9687  ;;  %9713 = vpow2.f32 %v7255_v9  ;;  %v11636_v24 = vpop.f32.mrf.mxu1  ;;  %8800 = vmatmul.mubr.msk.f32.gmra.mxu1 %vm2038_vm3, %v9678_v41  ;;  %v7403_v61 = vmul.f32 -1.442695, %v2559_v12 }
 0x1d2   :  { %v9690_v25 = vpop.eup %9689  ;;  %9715 = vrcp.f32 %v1764_v20  ;;  %v3518_v26 = vadd.f32 1.0, %v9688_v21  ;;  %v2579_v11 = vadd.f32 %v11636_v24, %v11575_v30 }
 0x1d3   :  { %v9692_v7 = vpop.eup %9691  ;;  %9717 = vpow2.f32 %v7396_v16  ;;  %v11641_v31 = vpop.f32.mrf.mxu1  ;;  %8802 = vmatprep.mubr.msk.f32.mxu1 %vm2038_vm3, %v9690_v25 }
 0x1d4   :  { %v11644_v32 = vpop.eup %9693  ;;  %9719 = vrcp.f32 %v3518_v26  ;;  %v1763_v5 = vadd.f32 1.0, %v9692_v7  ;;  %v7402_v7 = vmul.f32 -1.442695, %v2554_v17  ;;  %v7407_v48 = vmul.f32 -1.442695, %v2579_v11 }
 0x1d5   :  { %v9696_v34 = vpop.eup %9695  ;;  %9721 = vpow2.f32 %v7254_v22  ;;  %v11647_v37 = vpop.f32.mrf.mxu1  ;;  %8803 = vmatmul.mubr.msk.f32.gmra.mxu1 %vm2038_vm3, %v9686_v19 }
 0x1d6   :  { %v9698_v38 = vpop.eup %9697  ;;  %9723 = vrcp.f32 %v1763_v5  ;;  %v3521_v39 = vadd.f32 1.0, %v9696_v34 }
 0x1d7   :  { %v9700_v40 = vpop.eup %9699  ;;  %9725 = vpow2.f32 %v7399_v28  ;;  %v11650_v44 = vpop.f32.mrf.mxu1  ;;  %v2564_v28 = vadd.f32 %v11575_v30, %v11632_v18 }
 0x1d8   :  { %v11652_v45 = vpop.eup %9701  ;;  %9727 = vrcp.f32 %v3521_v39  ;;  %v1766_v46 = vadd.f32 1.0, %v9700_v40  ;;  %v2574_v40 = vadd.f32 %v11575_v30, %v11641_v31  ;;  %v2584_v54 = vadd.f32 %v11575_v30, %v11650_v44 }
 0x1d9   :  { %v9704_v49 = vpop.eup %9703  ;;  %9729 = vpow2.f32 %v7257_v35  ;;  %v11656_v51 = vpop.f32.mrf.mxu1  ;;  %v7404_v43 = vmul.f32 -1.442695, %v2564_v28 }
 0x1da   :  { %v9706_v52 = vpop.eup %9705  ;;  %9731 = vrcp.f32 %v1766_v46  ;;  %v3520_v53 = vadd.f32 1.0, %v9704_v49  ;;  %v2589_v49 = vadd.f32 %v11647_v37, %v11575_v30 }
 0x1db   :  { %v9708_v56 = vpop.eup %9707  ;;  %9733 = vpow2.f32 %v7398_v42  ;;  %8805 = vmatprep.mubr.msk.f32.mxu1 %vm2038_vm3, %v9706_v52  ;;  %v11660_v58 = vpop.f32.mrf.mxu1 }
 0x1dc   :  { %v9710_v59 = vpop.eup %9709  ;;  %9735 = vrcp.f32 %v3520_v53  ;;  %v1765_v47 = vadd.f32 1.0, %v9708_v56  ;;  %8806 = vmatmul.mubr.msk.f32.gmra.mxu1 %vm2038_vm3, %v9698_v38  ;;  %v7406_v53 = vmul.f32 -1.442695, %v2574_v40  ;;  %v2594_v4 = vadd.f32 %v11575_v30, %v11660_v58 }
 0x1dd   :  { %v11665_v63 = vpop.eup %9711  ;;  %v3523_v0 = vadd.f32 1.0, %v9710_v59  ;;  %9737 = vpow2.f32 %v7256_v50  ;;  %v11667_v1 = vpop.f32.mrf.mxu1 }
 0x1de   :  { %v9714_v2 = vpop.eup %9713  ;;  %9739 = vrcp.f32 %v1765_v47  ;;  %v7409_v47 = vmul.f32 -1.442695, %v2589_v49  ;;  %v2609_v12 = vadd.f32 %v11667_v1, %v11575_v30  ;;  %v7410_v17 = vmul.f32 -1.442695, %v2594_v4 }
 0x1df   :  { %v9716_v41 = vpop.eup %9715  ;;  %9741 = vrcp.f32 %v3523_v0  ;;  %v1768_v8 = vadd.f32 1.0, %v9714_v2  ;;  %v11670_v9 = vpop.f32.mrf.mxu1 }
 0x1e0   :  { %v9718_v10 = vpop.eup %9717  ;;  %9743 = vpow2.f32 %v7401_v60  ;;  %v2599_v60 = vadd.f32 %v11656_v51, %v11575_v30  ;;  %v7413_v23 = vmul.f32 -1.442695, %v2609_v12 }
 0x1e1   :  { %v11674_v13 = vpop.eup %9719  ;;  %9745 = vrcp.f32 %v1768_v8  ;;  %v3522_v14 = vadd.f32 1.0, %v9718_v10  ;;  %v11676_v15 = vpop.f32.mrf.mxu1 }
 0x1e2   :  { %v9722_v16 = vpop.eup %9721  ;;  %9747 = vpow2.f32 %v7259_v3  ;;  %v7408_v3 = vmul.f32 -1.442695, %v2584_v54  ;;  %v7411_v51 = vmul.f32 -1.442695, %v2599_v60  ;;  %v2619_v28 = vadd.f32 %v11676_v15, %v11575_v30 }
 0x1e3   :  { %v9724_v19 = vpop.eup %9723  ;;  %9749 = vrcp.f32 %v3522_v14  ;;  %v1767_v20 = vadd.f32 1.0, %v9722_v16  ;;  %v11680_v21 = vpop.f32.mrf.mxu1 }
 0x1e4   :  { %v9726_v22 = vpop.eup %9725  ;;  %9751 = vpow2.f32 %v7400_v55  ;;  %8808 = vmatprep.mubr.msk.f32.mxu1 %vm2038_vm3, %v9724_v19  ;;  %v2604_v19 = vadd.f32 %v11575_v30, %v11670_v9 }
 0x1e5   :  { %v11685_v25 = vpop.eup %9727  ;;  %9753 = vrcp.f32 %v1767_v20  ;;  %v3525_v26 = vadd.f32 1.0, %v9726_v22  ;;  %8809 = vmatmul.mubr.msk.f32.gmra.mxu1 %vm2038_vm3, %v9716_v41  ;;  %v11688_v6 = vpop.f32.mrf.mxu1 }
 0x1e6   :  { %v9730_v27 = vpop.eup %9729  ;;  %9755 = vpow2.f32 %v7258_v33  ;;  %v7412_v9 = vmul.f32 -1.442695, %v2604_v19 }
 0x1e7   :  { %v9732_v29 = vpop.eup %9731  ;;  %9757 = vrcp.f32 %v3525_v26  ;;  %v1770_v5 = vadd.f32 1.0, %v9730_v27  ;;  %v11694_v34 = vpop.f32.mrf.mxu1 }
 0x1e8   :  { %v9734_v35 = vpop.eup %9733  ;;  %9759 = vpow2.f32 %v7403_v61 }
 0x1e9   :  { %v11696_v38 = vpop.eup %9735  ;;  %9761 = vrcp.f32 %v1770_v5  ;;  %v3524_v39 = vadd.f32 1.0, %v9734_v35  ;;  %v11700_v42 = vpop.f32.mrf.mxu1 }
 0x1ea   :  { %v9738_v18 = vpop.eup %9737  ;;  %9763 = vpow2.f32 %v7402_v7 }
 0x1eb   :  { %v9740_v46 = vpop.eup %9739  ;;  %9765 = vrcp.f32 %v3524_v39  ;;  %v1769_v24 = vadd.f32 1.0, %v9738_v18  ;;  %v11704_v50 = vpop.f32.mrf.mxu1 }
 0x1ec   :  { %v11706_v52 = vpop.eup %9741  ;;  %9767 = vpow2.f32 %v7405_v36  ;;  %8811 = vmatprep.mubr.msk.f32.mxu1 %vm2038_vm3, %v9740_v46  ;;  %v2614_v36 = vadd.f32 %v11575_v30, %v11680_v21  ;;  %v2629_v46 = vadd.f32 %v11688_v6, %v11575_v30  ;;  %v2634_v4 = vadd.f32 %v11575_v30, %v11704_v50 }
 0x1ed   :  { %v9744_v31 = vpop.eup %9743  ;;  %9769 = vrcp.f32 %v1769_v24  ;;  %8812 = vmatmul.mubr.msk.f32.gmra.mxu1 %vm2038_vm3, %v9732_v29  ;;  %v11712_v56 = vpop.f32.mrf.mxu1 }
 0x1ee   :  { %v9746_v57 = vpop.eup %9745  ;;  %v3527_v59 = vadd.f32 1.0, %v9744_v31  ;;  %9771 = vpow2.f32 %v7404_v43  ;;  %v7415_v43 = vmul.f32 -1.442695, %v2619_v28  ;;  %v7414_v31 = vmul.f32 -1.442695, %v2614_v36 }
 0x1ef   :  { %v9748_v37 = vpop.eup %9747  ;;  %9773 = vpow2.f32 %v7407_v48  ;;  %v11716_v62 = vpop.f32.mrf.mxu1 }
 0x1f0   :  { %v11718_v0 = vpop.eup %9749  ;;  %9775 = vrcp.f32 %v3527_v59  ;;  %v1772_v2 = vadd.f32 1.0, %v9748_v37  ;;  %v7417_v37 = vmul.f32 -1.442695, %v2629_v46 }
 0x1f1   :  { %v9752_v44 = vpop.eup %9751  ;;  %9777 = vpow2.f32 %v7406_v53  ;;  %v11722_v41 = vpop.f32.mrf.mxu1  ;;  %v2624_v53 = vadd.f32 %v11575_v30, %v11694_v34 }
 0x1f2   :  { %v9754_v8 = vpop.eup %9753  ;;  %9779 = vrcp.f32 %v1772_v2  ;;  %v3526_v10 = vadd.f32 1.0, %v9752_v44 }
 0x1f3   :  { %v9756_v55 = vpop.eup %9755  ;;  %9781 = vpow2.f32 %v7409_v47  ;;  %8814 = vmatprep.mubr.msk.f32.mxu1 %vm2038_vm3, %v9754_v8  ;;  %v11727_v14 = vpop.f32.mrf.mxu1  ;;  %v2639_v47 = vadd.f32 %v11700_v42, %v11575_v30  ;;  %v7416_v34 = vmul.f32 -1.442695, %v2624_v53  ;;  %v5770_v42 = vld [vmem:[%s13514_s7] sm:$0xff] }
 0x1f4   :  { %v11729_v16 = vpop.eup %9757  ;;  %9783 = vrcp.f32 %v3526_v10  ;;  %v1771_v33 = vadd.f32 1.0, %v9756_v55  ;;  %8815 = vmatmul.mubr.msk.f32.gmra.mxu1 %vm2038_vm3, %v9746_v57  ;;  %9019 = vmatprep.subr.mxu0 %v5770_v42 }
 0x1f5   :  { %v9760_v58 = vpop.eup %9759  ;;  %9785 = vpow2.f32 %v7408_v3  ;;  %v11734_v20 = vpop.f32.mrf.mxu1  ;;  %v7419_v12 = vmul.f32 -1.442695, %v2639_v47  ;;  %9020 = vmatpush3.msra.mxu0 %v5770_v42 }
 0x1f6   :  { %v9762_v22 = vpop.eup %9761  ;;  %9787 = vrcp.f32 %v1771_v33  ;;  %v3529_v1 = vadd.f32 1.0, %v9760_v58  ;;  %v2649_v33 = vadd.f32 %v11712_v56, %v11575_v30 }
 0x1f7   :  { %v9764_v61 = vpop.eup %9763  ;;  %9789 = vpow2.f32 %v7411_v51  ;;  %v11736_v26 = vpop.f32.mrf.mxu1 }
 0x1f8   :  { %v11738_v27 = vpop.eup %9765  ;;  %9791 = vrcp.f32 %v3529_v1  ;;  %v3528_v7 = vadd.f32 1.0, %v9764_v61  ;;  %v2644_v1 = vadd.f32 %v11575_v30, %v11716_v62 }
 0x1f9   :  { %v9768_v29 = vpop.eup %9767  ;;  %9793 = vpow2.f32 %v7410_v17  ;;  %v11742_v5 = vpop.f32.mrf.mxu1 }
 0x1fa   :  { %v9770_v11 = vpop.eup %9769  ;;  %9795 = vrcp.f32 %v3528_v7  ;;  %v3531_v35 = vadd.f32 1.0, %v9768_v29  ;;  %v7421_v29 = vmul.f32 -1.442695, %v2649_v33 }
 0x1fb   :  { %v9772_v39 = vpop.eup %9771  ;;  %9797 = vpow2.f32 %v7413_v23  ;;  %8817 = vmatprep.mubr.msk.f32.mxu1 %vm2038_vm3, %v9770_v11  ;;  %v11747_v40 = vpop.f32.mrf.mxu1  ;;  %v2659_v23 = vadd.f32 %v11722_v41, %v11575_v30  ;;  %v7420_v41 = vmul.f32 -1.442695, %v2644_v1 }
 0x1fc   :  { %v9774_v18 = vpop.eup %9773  ;;  %9799 = vrcp.f32 %v3531_v35  ;;  %v3530_v15 = vadd.f32 1.0, %v9772_v39  ;;  %8818 = vmatmul.mubr.msk.f32.gmra.mxu1 %vm2038_vm3, %v9762_v22  ;;  %v7418_v22 = vmul.f32 -1.442695, %v2634_v4 }
 0x1fd   :  { %v11752_v24 = vpop.eup %9775  ;;  %v3533_v48 = vadd.f32 1.0, %v9774_v18  ;;  %9801 = vpow2.f32 %v7412_v9  ;;  %v11754_v21 = vpop.f32.mrf.mxu1  ;;  %v7423_v18 = vmul.f32 -1.442695, %v2659_v23 }
 0x1fe   :  { %v9778_v49 = vpop.eup %9777  ;;  %9803 = vrcp.f32 %v3530_v15  ;;  %v2669_v15 = vadd.f32 %v11734_v20, %v11575_v30  ;;  %v2689_v4 = vadd.f32 %v11754_v21, %v11575_v30 }
 0x1ff   :  { %v9780_v54 = vpop.eup %9779  ;;  %9805 = vrcp.f32 %v3533_v48  ;;  %v3532_v57 = vadd.f32 1.0, %v9778_v49  ;;  %v11758_v59 = vpop.f32.mrf.mxu1 }
 0x200   :  { %v9782_v6 = vpop.eup %9781  ;;  %9807 = vpow2.f32 %v7415_v43  ;;  %v7425_v53 = vmul.f32 -1.442695, %v2669_v15 }
 0x201   :  { %v11762_v60 = vpop.eup %9783  ;;  %9809 = vrcp.f32 %v3532_v57  ;;  %v3535_v2 = vadd.f32 1.0, %v9782_v6  ;;  %v11764_v44 = vpop.f32.mrf.mxu1 }
 0x202   :  { %v9786_v3 = vpop.eup %9785  ;;  %9811 = vpow2.f32 %v7414_v31 }
 0x203   :  { %v9788_v8 = vpop.eup %9787  ;;  %9813 = vrcp.f32 %v3535_v2  ;;  %v3534_v10 = vadd.f32 1.0, %v9786_v3  ;;  %v11768_v55 = vpop.f32.mrf.mxu1 }
 0x204   :  { %v9790_v51 = vpop.eup %9789  ;;  %9815 = vpow2.f32 %v7417_v37  ;;  %8820 = vmatprep.mubr.msk.f32.mxu1 %vm2038_vm3, %v9788_v8 }
 0x205   :  { %v11776_v50 = vpop.eup %9791  ;;  %9817 = vrcp.f32 %v3534_v10  ;;  %v3537_v58 = vadd.f32 1.0, %v9790_v51  ;;  %8821 = vmatmul.mubr.msk.f32.gmra.mxu1 %vm2038_vm3, %v9780_v54  ;;  %v11779_v17 = vpop.f32.mrf.mxu1  ;;  %v2679_v54 = vadd.f32 %v11742_v5, %v11575_v30 }
 0x206   :  { %v9794_v19 = vpop.eup %9793  ;;  %9819 = vpow2.f32 %v7416_v34  ;;  %8825 = vmatprep.mubr.msk.f32.mxu1 %vm3908_vm4, %v11652_v45  ;;  %v2654_v45 = vadd.f32 %v11575_v30, %v11727_v14 }
 0x207   :  { %v11785_v56 = vpop.eup %9795  ;;  %9821 = vrcp.f32 %v3537_v58  ;;  %v3536_v61 = vadd.f32 1.0, %v9794_v19  ;;  %v11789_v7 = vpop.f32.mrf.mxu1  ;;  %v7427_v34 = vmul.f32 -1.442695, %v2679_v54  ;;  %v7429_v58 = vmul.f32 -1.442695, %v2689_v4 }
 0x208   :  { %v9798_v28 = vpop.eup %9797  ;;  %9823 = vpow2.f32 %v7419_v12  ;;  %v7422_v46 = vmul.f32 -1.442695, %v2654_v45 }
 0x209   :  { %v11791_v9 = vpop.eup %9799  ;;  %9825 = vrcp.f32 %v3536_v61  ;;  %v3539_v11 = vadd.f32 1.0, %v9798_v28  ;;  %8826 = vmatmul.mubr.msk.f32.vlgmr.msra.gmra.mxu1 %vm3908_vm4, %v11644_v32  ;;  %v11797_v62 = vpop.f32.mrf.mxu1 }
 0x20a   :  { %v9802_v35 = vpop.eup %9801  ;;  %9827 = vpow2.f32 %v7418_v22  ;;  %8828 = vmatprep.mubr.msk.f32.mxu1 %vm3908_vm4, %v11674_v13  ;;  %v2664_v13 = vadd.f32 %v11575_v30, %v11736_v26 }
 0x20b   :  { %v11801_v36 = vpop.eup %9803  ;;  %9829 = vrcp.f32 %v3539_v11  ;;  %v3538_v39 = vadd.f32 1.0, %v9802_v35  ;;  %v11805_v32 = vpop.f32.mrf.mxu1 }
 0x20c   :  { %v11807_v43 = vpop.eup %9805  ;;  %9831 = vpow2.f32 %v7421_v29  ;;  %v7424_v37 = vmul.f32 -1.442695, %v2664_v13  ;;  %v2694_v29 = vadd.f32 %v11575_v30, %v11768_v55 }
 0x20d   :  { %v9808_v14 = vpop.eup %9807  ;;  %9833 = vrcp.f32 %v3538_v39  ;;  %8829 = vmatmul.mubr.msk.f32.gmra.mxu1 %vm3908_vm4, %v11665_v63  ;;  %v11813_v48 = vpop.f32.mrf.mxu1 }
 0x20e   :  { %v11815_v49 = vpop.eup %9809  ;;  %v3541_v31 = vadd.f32 1.0, %v9808_v14  ;;  %9835 = vpow2.f32 %v7420_v41  ;;  %8831 = vmatprep.mubr.msk.f32.mxu1 %vm3908_vm4, %v11696_v38  ;;  %v2674_v38 = vadd.f32 %v11575_v30, %v11747_v40  ;;  %v2709_v41 = vadd.f32 %v11779_v17, %v11575_v30  ;;  %v11882_v14 = vld [vmem:[%s13515_s4] ss:$0 sm:$0xff] }
 0x20f   :  { %v9812_v20 = vpop.eup %9811  ;;  %9837 = vpow2.f32 %v7423_v18  ;;  %v11821_v57 = vpop.f32.mrf.mxu1  ;;  %v7430_v15 = vmul.f32 -1.442695, %v2694_v29 }
 0x210   :  { %v11823_v63 = vpop.eup %9813  ;;  %9839 = vrcp.f32 %v3541_v31  ;;  %v3540_v26 = vadd.f32 1.0, %v9812_v20  ;;  %v7426_v42 = vmul.f32 -1.442695, %v2674_v38  ;;  %v7433_v31 = vmul.f32 -1.442695, %v2709_v41 }
 0x211   :  { %v9816_v6 = vpop.eup %9815  ;;  %9841 = vpow2.f32 %v7422_v46  ;;  %8832 = vmatmul.mubr.msk.f32.gmra.mxu1 %vm3908_vm4, %v11685_v25  ;;  %v11829_v47 = vpop.f32.mrf.mxu1 }
 0x212   :  { %v11831_v2 = vpop.eup %9817  ;;  %9843 = vrcp.f32 %v3540_v26  ;;  %v3543_v5 = vadd.f32 1.0, %v9816_v6  ;;  %8834 = vmatprep.mubr.msk.f32.mxu1 %vm3908_vm4, %v11718_v0  ;;  %v2684_v0 = vadd.f32 %v11575_v30, %v11758_v59  ;;  %v2699_v59 = vadd.f32 %v11764_v44, %v11575_v30 }
 0x213   :  { %v9820_v3 = vpop.eup %9819  ;;  %9845 = vpow2.f32 %v7425_v53  ;;  %v11837_v8 = vpop.f32.mrf.mxu1  ;;  %v2704_v30 = vadd.f32 %v11882_v14, %v11789_v7  ;;  %v2714_v6 = vadd.f32 %v11882_v14, %v11805_v32 }
 0x214   :  { %v11839_v25 = vpop.eup %9821  ;;  %9847 = vrcp.f32 %v3543_v5  ;;  %v3542_v40 = vadd.f32 1.0, %v9820_v3  ;;  %v7428_v61 = vmul.f32 -1.442695, %v2684_v0  ;;  %v2729_v3 = vadd.f32 %v11882_v14, %v11813_v48 }
 0x215   :  { %v9824_v10 = vpop.eup %9823  ;;  %9849 = vpow2.f32 %v7424_v37  ;;  %8835 = vmatmul.mubr.msk.f32.gmra.mxu1 %vm3908_vm4, %v11706_v52  ;;  %v11845_v51 = vpop.f32.mrf.mxu1  ;;  %v7432_v26 = vmul.f32 -1.442695, %v2704_v30  ;;  %v2739_v0 = vadd.f32 %v11882_v14, %v11829_v47 }
 0x216   :  { %v11847_v12 = vpop.eup %9825  ;;  %9851 = vrcp.f32 %v3542_v40  ;;  %v3545_v21 = vadd.f32 1.0, %v9824_v10  ;;  %8837 = vmatprep.mubr.msk.f32.mxu1 %vm3908_vm4, %v11738_v27  ;;  %v7434_v40 = vmul.f32 -1.442695, %v2714_v6  ;;  %v2724_v10 = vadd.f32 %v11882_v14, %v11821_v57 }
 0x217   :  { %v9828_v33 = vpop.eup %9827  ;;  %9853 = vpow2.f32 %v7427_v34  ;;  %v11851_v19 = vpop.f32.mrf.mxu1  ;;  %v2749_v29 = vadd.f32 %v11882_v14, %v11845_v51 }
 0x218   :  { %v11853_v22 = vpop.eup %9829  ;;  %9855 = vrcp.f32 %v3545_v21  ;;  %v3544_v52 = vadd.f32 1.0, %v9828_v33  ;;  %v7437_v33 = vmul.f32 -1.442695, %v2729_v3  ;;  %v7436_v47 = vmul.f32 -1.442695, %v2724_v10 }
 0x219   :  { %v9832_v1 = vpop.eup %9831  ;;  %9857 = vpow2.f32 %v7426_v42  ;;  %8838 = vmatmul.mubr.msk.f32.gmra.mxu1 %vm3908_vm4, %v11729_v16  ;;  %v11859_v23 = vpop.f32.mrf.mxu1  ;;  %v7431_v16 = vmul.f32 -1.442695, %v2699_v59 }
 0x21a   :  { %v11861_v27 = vpop.eup %9833  ;;  %9859 = vrcp.f32 %v3544_v52  ;;  %v3547_v28 = vadd.f32 1.0, %v9832_v1  ;;  %8840 = vmatprep.mubr.msk.f32.mxu1 %vm3908_vm4, %v11762_v60 }
 0x21b   :  { %v9836_v11 = vpop.eup %9835  ;;  %9861 = vpow2.f32 %v7429_v58  ;;  %v11867_v44 = vpop.f32.mrf.mxu1 }
 0x21c   :  { %v9838_v45 = vpop.eup %9837  ;;  %9863 = vrcp.f32 %v3547_v28  ;;  %v3546_v35 = vadd.f32 1.0, %v9836_v11  ;;  %v7439_v28 = vmul.f32 -1.442695, %v2739_v0 }
 0x21d   :  { %v11871_v39 = vpop.eup %9839  ;;  %v3549_v18 = vadd.f32 1.0, %v9838_v45  ;;  %9865 = vpow2.f32 %v7428_v61  ;;  %8841 = vmatmul.mubr.msk.f32.gmra.mxu1 %vm3908_vm4, %v11752_v24  ;;  %v11875_v60 = vpop.f32.mrf.mxu1 }
 0x21e   :  { %v9842_v55 = vpop.eup %9841  ;;  %9867 = vrcp.f32 %v3546_v35  ;;  %8843 = vmatprep.mubr.msk.f32.mxu1 %vm3908_vm4, %v11785_v56  ;;  %v2719_v56 = vadd.f32 %v11882_v14, %v11797_v62 }
 0x21f   :  { %v11886_v17 = vpop.eup %9843  ;;  %9869 = vrcp.f32 %v3549_v18  ;;  %v3548_v24 = vadd.f32 1.0, %v9842_v55  ;;  %v11888_v46 = vpop.f32.mrf.mxu1  ;;  %v7441_v18 = vmul.f32 -1.442695, %v2749_v29  ;;  %v2759_v55 = vadd.f32 %v11882_v14, %v11859_v23 }
 0x220   :  { %v9846_v13 = vpop.eup %9845  ;;  %9871 = vpow2.f32 %v7431_v16 }
 0x221   :  { %v11892_v20 = vpop.eup %9847  ;;  %9873 = vrcp.f32 %v3548_v24  ;;  %v3551_v53 = vadd.f32 1.0, %v9846_v13  ;;  %8844 = vmatmul.mubr.msk.f32.gmra.mxu1 %vm3908_vm4, %v11776_v50  ;;  %v11896_v7 = vpop.f32.mrf.mxu1  ;;  %v7435_v50 = vmul.f32 -1.442695, %v2719_v56 }
 0x222   :  { %v9850_v54 = vpop.eup %9849  ;;  %9875 = vpow2.f32 %v7430_v15  ;;  %8846 = vmatprep.mubr.msk.f32.mxu1 %vm3908_vm4, %v11801_v36 }
 0x223   :  { %v11902_v37 = vpop.eup %9851  ;;  %9877 = vrcp.f32 %v3551_v53  ;;  %v3550_v62 = vadd.f32 1.0, %v9850_v54  ;;  %v11904_v38 = vpop.f32.mrf.mxu1  ;;  %v7443_v53 = vmul.f32 -1.442695, %v2759_v55  ;;  %v2769_v54 = vadd.f32 %v11882_v14, %v11875_v60 }
 0x224   :  { %v9854_v5 = vpop.eup %9853  ;;  %9879 = vpow2.f32 %v7433_v31 }
 0x225   :  { %v11908_v34 = vpop.eup %9855  ;;  %9881 = vrcp.f32 %v3550_v62  ;;  %v3553_v4 = vadd.f32 1.0, %v9854_v5  ;;  %8847 = vmatmul.mubr.msk.f32.gmra.mxu1 %vm3908_vm4, %v11791_v9  ;;  %v11912_v36 = vpop.f32.mrf.mxu1 }
 0x226   :  { %v9858_v32 = vpop.eup %9857  ;;  %9883 = vpow2.f32 %v7432_v26  ;;  %8849 = vmatprep.mubr.msk.f32.mxu1 %vm3908_vm4, %v11815_v49  ;;  %v2734_v49 = vadd.f32 %v11882_v14, %v11837_v8 }
 0x227   :  { %v11918_v42 = vpop.eup %9859  ;;  %9885 = vrcp.f32 %v3553_v4  ;;  %v3552_v48 = vadd.f32 1.0, %v9858_v32  ;;  %v11922_v21 = vpop.f32.mrf.mxu1  ;;  %v7445_v4 = vmul.f32 -1.442695, %v2769_v54 }
 0x228   :  { %v9862_v9 = vpop.eup %9861  ;;  %9887 = vpow2.f32 %v7435_v50  ;;  %v7438_v45 = vmul.f32 -1.442695, %v2734_v49 }
 0x229   :  { %v11924_v58 = vpop.eup %9863  ;;  %9889 = vrcp.f32 %v3552_v48  ;;  %v3555_v52 = vadd.f32 1.0, %v9862_v9  ;;  %8850 = vmatmul.mubr.msk.f32.gmra.mxu1 %vm3908_vm4, %v11807_v43  ;;  %v11930_v57 = vpop.f32.mrf.mxu1 }
 0x22a   :  { %v9866_v59 = vpop.eup %9865  ;;  %9891 = vpow2.f32 %v7434_v40  ;;  %8852 = vmatprep.mubr.msk.f32.mxu1 %vm3908_vm4, %v11831_v2  ;;  %v2744_v2 = vadd.f32 %v11882_v14, %v11851_v19 }
 0x22b   :  { %v11934_v1 = vpop.eup %9867  ;;  %9893 = vrcp.f32 %v3555_v52  ;;  %v3554_v61 = vadd.f32 1.0, %v9866_v59  ;;  %v11938_v43 = vpop.f32.mrf.mxu1 }
 0x22c   :  { %v11940_v11 = vpop.eup %9869  ;;  %9895 = vpow2.f32 %v7437_v33  ;;  %v7440_v24 = vmul.f32 -1.442695, %v2744_v2  ;;  %v2774_v33 = vadd.f32 %v11882_v14, %v11904_v38 }
 0x22d   :  { %v9872_v8 = vpop.eup %9871  ;;  %9897 = vrcp.f32 %v3554_v61  ;;  %8853 = vmatmul.mubr.msk.f32.gmra.mxu1 %vm3908_vm4, %v11823_v63  ;;  %v11946_v35 = vpop.f32.mrf.mxu1 }
 0x22e   :  { %v11948_v16 = vpop.eup %9873  ;;  %v3557_v41 = vadd.f32 1.0, %v9872_v8  ;;  %9899 = vpow2.f32 %v7436_v47  ;;  %8855 = vmatprep.mubr.msk.f32.mxu1 %vm3908_vm4, %v11847_v12  ;;  %v2754_v12 = vadd.f32 %v11882_v14, %v11867_v44  ;;  %v2789_v47 = vadd.f32 %v11882_v14, %v11912_v36 }
 0x22f   :  { %v9876_v51 = vpop.eup %9875  ;;  %9901 = vpow2.f32 %v7439_v28  ;;  %v11954_v15 = vpop.f32.mrf.mxu1  ;;  %v7446_v29 = vmul.f32 -1.442695, %v2774_v33  ;;  %v2784_v8 = vadd.f32 %v11882_v14, %v11922_v21 }
 0x230   :  { %v11956_v63 = vpop.eup %9877  ;;  %9903 = vrcp.f32 %v3557_v41  ;;  %v3556_v19 = vadd.f32 1.0, %v9876_v51  ;;  %v7442_v62 = vmul.f32 -1.442695, %v2754_v12  ;;  %v2799_v51 = vadd.f32 %v11882_v14, %v11930_v57 }
 0x231   :  { %v9880_v30 = vpop.eup %9879  ;;  %9905 = vpow2.f32 %v7438_v45  ;;  %8856 = vmatmul.mubr.msk.f32.gmra.mxu1 %vm3908_vm4, %v11839_v25  ;;  %v11962_v13 = vpop.f32.mrf.mxu1 }
 0x232   :  { %v11964_v31 = vpop.eup %9881  ;;  %9907 = vrcp.f32 %v3556_v19  ;;  %v3559_v23 = vadd.f32 1.0, %v9880_v30  ;;  %8858 = vmatprep.mubr.msk.f32.mxu1 %vm3908_vm4, %v11861_v27  ;;  %v2764_v27 = vadd.f32 %v11882_v14, %v11888_v46  ;;  %v2779_v46 = vadd.f32 %v11882_v14, %v11896_v7 }
 0x233   :  { %v9884_v56 = vpop.eup %9883  ;;  %9909 = vpow2.f32 %v7441_v18  ;;  %v11970_v26 = vpop.f32.mrf.mxu1  ;;  %v7448_v19 = vmul.f32 -1.442695, %v2784_v8  ;;  %v2794_v30 = vadd.f32 %v11882_v14, %v11938_v43 }
 0x234   :  { %v11972_v25 = vpop.eup %9885  ;;  %9911 = vrcp.f32 %v3559_v23  ;;  %v3558_v44 = vadd.f32 1.0, %v9884_v56  ;;  %v7444_v48 = vmul.f32 -1.442695, %v2764_v27  ;;  %v2809_v56 = vadd.f32 %v11882_v14, %v11946_v35 }
 0x235   :  { %v9888_v6 = vpop.eup %9887  ;;  %9913 = vpow2.f32 %v7440_v24  ;;  %8859 = vmatmul.mubr.msk.f32.gmra.mxu1 %vm3908_vm4, %v11853_v22  ;;  %v11978_v5 = vpop.f32.mrf.mxu1  ;;  %v2819_v27 = vadd.f32 %v11882_v14, %v11962_v13 }
 0x236   :  { %v11980_v50 = vpop.eup %9889  ;;  %9915 = vrcp.f32 %v3558_v44  ;;  %v3561_v60 = vadd.f32 1.0, %v9888_v6  ;;  %8861 = vmatprep.mubr.msk.f32.mxu1 %vm3908_vm4, %v11886_v17  ;;  %v7450_v44 = vmul.f32 -1.442695, %v2794_v30  ;;  %v2804_v6 = vadd.f32 %v11882_v14, %v11954_v15 }
 0x237   :  { %v9892_v3 = vpop.eup %9891  ;;  %9917 = vpow2.f32 %v7443_v53  ;;  %v11984_v32 = vpop.f32.mrf.mxu1  ;;  %v2829_v33 = vadd.f32 %v11882_v14, %v11978_v5 }
 0x238   :  { %v11986_v40 = vpop.eup %9893  ;;  %9919 = vrcp.f32 %v3561_v60  ;;  %v3560_v22 = vadd.f32 1.0, %v9892_v3  ;;  %v7453_v3 = vmul.f32 -1.442695, %v2809_v56  ;;  %v7452_v13 = vmul.f32 -1.442695, %v2804_v6 }
 0x239   :  { %v9896_v10 = vpop.eup %9895  ;;  %9921 = vpow2.f32 %v7442_v62  ;;  %8862 = vmatmul.mubr.msk.f32.gmra.mxu1 %vm3908_vm4, %v11871_v39  ;;  %v11992_v0 = vpop.f32.mrf.mxu1  ;;  %v7447_v39 = vmul.f32 -1.442695, %v2779_v46 }
 0x23a   :  { %v11994_v17 = vpop.eup %9897  ;;  %9923 = vrcp.f32 %v3560_v22  ;;  %v3563_v9 = vadd.f32 1.0, %v9896_v10  ;;  %8864 = vmatprep.mubr.msk.f32.mxu1 %vm3908_vm4, %v11902_v37 }
 0x23b   :  { %v9900_v52 = vpop.eup %9899  ;;  %9925 = vpow2.f32 %v7445_v4  ;;  %v12000_v7 = vpop.f32.mrf.mxu1 }
 0x23c   :  { %v9902_v49 = vpop.eup %9901  ;;  %9927 = vrcp.f32 %v3563_v9  ;;  %v3562_v59 = vadd.f32 1.0, %v9900_v52  ;;  %v7455_v9 = vmul.f32 -1.442695, %v2819_v27 }
 0x23d   :  { %v12004_v61 = vpop.eup %9903  ;;  %v3565_v28 = vadd.f32 1.0, %v9902_v49  ;;  %9929 = vpow2.f32 %v7444_v48  ;;  %8865 = vmatmul.mubr.msk.f32.gmra.mxu1 %vm3908_vm4, %v11892_v20  ;;  %v12008_v37 = vpop.f32.mrf.mxu1  ;;  %v7449_v20 = vmul.f32 -1.442695, %v2789_v47 }
 0x23e   :  { %v9906_v38 = vpop.eup %9905  ;;  %9931 = vrcp.f32 %v3562_v59  ;;  %8867 = vmatprep.mubr.msk.f32.mxu1 %vm3908_vm4, %v11918_v42 }
 0x23f   :  { %v12014_v45 = vpop.eup %9907  ;;  %9933 = vrcp.f32 %v3565_v28  ;;  %v3564_v36 = vadd.f32 1.0, %v9906_v38  ;;  %v12016_v2 = vpop.f32.mrf.mxu1  ;;  %v7457_v28 = vmul.f32 -1.442695, %v2829_v33  ;;  %v2839_v38 = vadd.f32 %v11882_v14, %v11992_v0 }
 0x240   :  { %v9910_v41 = vpop.eup %9909  ;;  %9935 = vpow2.f32 %v7447_v39 }
 0x241   :  { %v12020_v18 = vpop.eup %9911  ;;  %9937 = vrcp.f32 %v3564_v36  ;;  %v3567_v55 = vadd.f32 1.0, %v9910_v41  ;;  %8868 = vmatmul.mubr.msk.f32.gmra.mxu1 %vm3908_vm4, %v11908_v34  ;;  %v12024_v42 = vpop.f32.mrf.mxu1  ;;  %v7451_v34 = vmul.f32 -1.442695, %v2799_v51 }
 0x242   :  { %v9914_v21 = vpop.eup %9913  ;;  %9939 = vpow2.f32 %v7446_v29  ;;  %8870 = vmatprep.mubr.msk.f32.mxu1 %vm3908_vm4, %v11934_v1 }
 0x243   :  { %v12030_v24 = vpop.eup %9915  ;;  %9941 = vrcp.f32 %v3567_v55  ;;  %v3566_v57 = vadd.f32 1.0, %v9914_v21  ;;  %v12032_v12 = vpop.f32.mrf.mxu1  ;;  %v7459_v55 = vmul.f32 -1.442695, %v2839_v38  ;;  %v2849_v21 = vadd.f32 %v11882_v14, %v12008_v37 }
 0x244   :  { %v9918_v23 = vpop.eup %9917  ;;  %9943 = vpow2.f32 %v7449_v20 }
 0x245   :  { %v12036_v53 = vpop.eup %9919  ;;  %9945 = vrcp.f32 %v3566_v57  ;;  %v3569_v54 = vadd.f32 1.0, %v9918_v23  ;;  %8871 = vmatmul.mubr.msk.f32.gmra.mxu1 %vm3908_vm4, %v11924_v58  ;;  %v12040_v1 = vpop.f32.mrf.mxu1 }
 0x246   :  { %v9922_v43 = vpop.eup %9921  ;;  %9947 = vpow2.f32 %v7448_v19  ;;  %8873 = vmatprep.mubr.msk.f32.mxu1 %vm3908_vm4, %v11948_v16  ;;  %v2814_v16 = vadd.f32 %v11882_v14, %v11970_v26 }
 0x247   :  { %v12046_v62 = vpop.eup %9923  ;;  %9949 = vrcp.f32 %v3569_v54  ;;  %v3568_v35 = vadd.f32 1.0, %v9922_v43  ;;  %v12050_v60 = vpop.f32.mrf.mxu1  ;;  %v7461_v54 = vmul.f32 -1.442695, %v2849_v21 }
 0x248   :  { %v9926_v58 = vpop.eup %9925  ;;  %9951 = vpow2.f32 %v7451_v34  ;;  %v7454_v49 = vmul.f32 -1.442695, %v2814_v16 }
 0x249   :  { %v12052_v4 = vpop.eup %9927  ;;  %9953 = vrcp.f32 %v3568_v35  ;;  %v3571_v22 = vadd.f32 1.0, %v9926_v58  ;;  %8874 = vmatmul.mubr.msk.f32.gmra.mxu1 %vm3908_vm4, %v11940_v11  ;;  %v12058_v15 = vpop.f32.mrf.mxu1 }
 0x24a   :  { %v9930_v46 = vpop.eup %9929  ;;  %9955 = vpow2.f32 %v7450_v44  ;;  %8876 = vmatprep.mubr.msk.f32.mxu1 %vm3908_vm4, %v11964_v31  ;;  %v2824_v31 = vadd.f32 %v11882_v14, %v11984_v32 }
 0x24b   :  { %v12062_v10 = vpop.eup %9931  ;;  %9957 = vrcp.f32 %v3571_v22  ;;  %v3570_v48 = vadd.f32 1.0, %v9930_v46  ;;  %v12066_v11 = vpop.f32.mrf.mxu1 }
 0x24c   :  { %v12068_v52 = vpop.eup %9933  ;;  %9959 = vpow2.f32 %v7453_v3  ;;  %v7456_v36 = vmul.f32 -1.442695, %v2824_v31  ;;  %v2854_v3 = vadd.f32 %v11882_v14, %v12032_v12 }
 0x24d   :  { %v9936_v26 = vpop.eup %9935  ;;  %9961 = vrcp.f32 %v3570_v48  ;;  %8877 = vmatmul.mubr.msk.f32.gmra.mxu1 %vm3908_vm4, %v11956_v63  ;;  %v12074_v59 = vpop.f32.mrf.mxu1 }
 0x24e   :  { %v12076_v39 = vpop.eup %9937  ;;  %v3573_v47 = vadd.f32 1.0, %v9936_v26  ;;  %9963 = vpow2.f32 %v7452_v13  ;;  %8879 = vmatprep.mubr.msk.f32.mxu1 %vm3908_vm4, %v11980_v50  ;;  %v2834_v50 = vadd.f32 %v11882_v14, %v12000_v7  ;;  %v2869_v13 = vadd.f32 %v11882_v14, %v12040_v1 }
 0x24f   :  { %v9940_v5 = vpop.eup %9939  ;;  %9965 = vpow2.f32 %v7455_v9  ;;  %v12082_v29 = vpop.f32.mrf.mxu1  ;;  %v7462_v33 = vmul.f32 -1.442695, %v2854_v3  ;;  %v2864_v26 = vadd.f32 %v11882_v14, %v12050_v60 }
 0x250   :  { %v12084_v63 = vpop.eup %9941  ;;  %9967 = vrcp.f32 %v3573_v47  ;;  %v3572_v32 = vadd.f32 1.0, %v9940_v5  ;;  %v7458_v57 = vmul.f32 -1.442695, %v2834_v50  ;;  %v2879_v5 = vadd.f32 %v11882_v14, %v12058_v15 }
 0x251   :  { %v9944_v8 = vpop.eup %9943  ;;  %9969 = vpow2.f32 %v7454_v49  ;;  %8880 = vmatmul.mubr.msk.f32.gmra.mxu1 %vm3908_vm4, %v11972_v25  ;;  %v12090_v41 = vpop.f32.mrf.mxu1 }
 0x252   :  { %v12092_v20 = vpop.eup %9945  ;;  %9971 = vrcp.f32 %v3572_v32  ;;  %v3575_v0 = vadd.f32 1.0, %v9944_v8  ;;  %8882 = vmatprep.mubr.msk.f32.mxu1 %vm3908_vm4, %v11994_v17  ;;  %v2844_v17 = vadd.f32 %v11882_v14, %v12016_v2  ;;  %v2859_v2 = vadd.f32 %v11882_v14, %v12024_v42 }
 0x253   :  { %v9948_v51 = vpop.eup %9947  ;;  %9973 = vpow2.f32 %v7457_v28  ;;  %v12098_v19 = vpop.f32.mrf.mxu1  ;;  %v7464_v32 = vmul.f32 -1.442695, %v2864_v26  ;;  %v2874_v8 = vadd.f32 %v11882_v14, %v12066_v11 }
 0x254   :  { %v12100_v25 = vpop.eup %9949  ;;  %9975 = vrcp.f32 %v3575_v0  ;;  %v3574_v7 = vadd.f32 1.0, %v9948_v51  ;;  %v7460_v35 = vmul.f32 -1.442695, %v2844_v17  ;;  %v2889_v51 = vadd.f32 %v11882_v14, %v12074_v59 }
 0x255   :  { %v9952_v30 = vpop.eup %9951  ;;  %9977 = vpow2.f32 %v7456_v36  ;;  %8883 = vmatmul.mubr.msk.f32.gmra.mxu1 %vm3908_vm4, %v11986_v40  ;;  %v12106_v23 = vpop.f32.mrf.mxu1  ;;  %v2899_v17 = vadd.f32 %v11882_v14, %v12090_v41 }
 0x256   :  { %v12108_v34 = vpop.eup %9953  ;;  %9979 = vrcp.f32 %v3574_v7  ;;  %v3577_v37 = vadd.f32 1.0, %v9952_v30  ;;  %8885 = vmatprep.mubr.msk.f32.mxu1 %vm3908_vm4, %v12014_v45  ;;  %v7466_v7 = vmul.f32 -1.442695, %v2874_v8  ;;  %v2884_v30 = vadd.f32 %v11882_v14, %v12082_v29 }
 0x257   :  { %v9956_v56 = vpop.eup %9955  ;;  %9981 = vpow2.f32 %v7459_v55  ;;  %v12112_v43 = vpop.f32.mrf.mxu1  ;;  %v2909_v3 = vadd.f32 %v11882_v14, %v12106_v23 }
 0x258   :  { %v12114_v44 = vpop.eup %9957  ;;  %9983 = vrcp.f32 %v3577_v37  ;;  %v3576_v40 = vadd.f32 1.0, %v9956_v56  ;;  %v7469_v56 = vmul.f32 -1.442695, %v2889_v51  ;;  %v7468_v41 = vmul.f32 -1.442695, %v2884_v30 }
 0x259   :  { %v9960_v6 = vpop.eup %9959  ;;  %9985 = vpow2.f32 %v7458_v57  ;;  %8886 = vmatmul.mubr.msk.f32.gmra.mxu1 %vm3908_vm4, %v12004_v61  ;;  %v12120_v27 = vpop.f32.mrf.mxu1  ;;  %v7463_v61 = vmul.f32 -1.442695, %v2859_v2 }
 0x25a   :  { %v12122_v45 = vpop.eup %9961  ;;  %9987 = vrcp.f32 %v3576_v40  ;;  %v3579_v58 = vadd.f32 1.0, %v9960_v6  ;;  %8888 = vmatprep.mubr.msk.f32.mxu1 %vm3908_vm4, %v12030_v24 }
 0x25b   :  { %v9964_v22 = vpop.eup %9963  ;;  %9989 = vpow2.f32 %v7461_v54  ;;  %v12128_v42 = vpop.f32.mrf.mxu1 }
 0x25c   :  { %v9966_v16 = vpop.eup %9965  ;;  %9991 = vrcp.f32 %v3579_v58  ;;  %v3578_v46 = vadd.f32 1.0, %v9964_v22  ;;  %v7471_v58 = vmul.f32 -1.442695, %v2899_v17 }
 0x25d   :  { %v12132_v48 = vpop.eup %9967  ;;  %v3581_v9 = vadd.f32 1.0, %v9966_v16  ;;  %9993 = vpow2.f32 %v7460_v35  ;;  %8889 = vmatmul.mubr.msk.f32.gmra.mxu1 %vm3908_vm4, %v12020_v18  ;;  %v12136_v24 = vpop.f32.mrf.mxu1  ;;  %v7465_v18 = vmul.f32 -1.442695, %v2869_v13 }
 0x25e   :  { %v9970_v12 = vpop.eup %9969  ;;  %9995 = vrcp.f32 %v3578_v46  ;;  %8891 = vmatprep.mubr.msk.f32.mxu1 %vm3908_vm4, %v12046_v62 }
 0x25f   :  { %v12142_v49 = vpop.eup %9971  ;;  %9997 = vrcp.f32 %v3581_v9  ;;  %v3580_v1 = vadd.f32 1.0, %v9970_v12  ;;  %v12144_v31 = vpop.f32.mrf.mxu1  ;;  %v7473_v9 = vmul.f32 -1.442695, %v2909_v3  ;;  %v2919_v12 = vadd.f32 %v11882_v14, %v12120_v27 }
 0x260   :  { %v9974_v47 = vpop.eup %9973  ;;  %9999 = vpow2.f32 %v7463_v61 }
 0x261   :  { %v12148_v28 = vpop.eup %9975  ;;  %10001 = vrcp.f32 %v3580_v1  ;;  %v3583_v38 = vadd.f32 1.0, %v9974_v47  ;;  %8892 = vmatmul.mubr.msk.f32.gmra.mxu1 %vm3908_vm4, %v12036_v53  ;;  %v12152_v62 = vpop.f32.mrf.mxu1  ;;  %v7467_v53 = vmul.f32 -1.442695, %v2879_v5 }
 0x262   :  { %v9978_v60 = vpop.eup %9977  ;;  %10003 = vpow2.f32 %v7462_v33  ;;  %8894 = vmatprep.mubr.msk.f32.mxu1 %vm3908_vm4, %v12062_v10 }
 0x263   :  { %v12158_v36 = vpop.eup %9979  ;;  %10005 = vrcp.f32 %v3583_v38  ;;  %v3582_v15 = vadd.f32 1.0, %v9978_v60  ;;  %v12160_v50 = vpop.f32.mrf.mxu1  ;;  %v7475_v38 = vmul.f32 -1.442695, %v2919_v12  ;;  %v2929_v60 = vadd.f32 %v11882_v14, %v12136_v24 }
 0x264   :  { %v9982_v0 = vpop.eup %9981  ;;  %10007 = vpow2.f32 %v7465_v18 }
 0x265   :  { %v12164_v55 = vpop.eup %9983  ;;  %10009 = vrcp.f32 %v3582_v15  ;;  %v3585_v21 = vadd.f32 1.0, %v9982_v0  ;;  %8895 = vmatmul.mubr.msk.f32.gmra.mxu1 %vm3908_vm4, %v12052_v4  ;;  %v12168_v10 = vpop.f32.mrf.mxu1 }
 0x266   :  { %v9986_v11 = vpop.eup %9985  ;;  %10011 = vpow2.f32 %v7464_v32  ;;  %8897 = vmatprep.mubr.msk.f32.mxu1 %vm3908_vm4, %v12076_v39  ;;  %v2894_v39 = vadd.f32 %v11882_v14, %v12098_v19 }
 0x267   :  { %v12174_v57 = vpop.eup %9987  ;;  %10013 = vrcp.f32 %v3585_v21  ;;  %v3584_v59 = vadd.f32 1.0, %v9986_v11  ;;  %v12178_v37 = vpop.f32.mrf.mxu1  ;;  %v7477_v21 = vmul.f32 -1.442695, %v2929_v60 }
 0x268   :  { %v9990_v4 = vpop.eup %9989  ;;  %10015 = vpow2.f32 %v7467_v53  ;;  %v7470_v16 = vmul.f32 -1.442695, %v2894_v39 }
 0x269   :  { %v12180_v54 = vpop.eup %9991  ;;  %10017 = vrcp.f32 %v3584_v59  ;;  %v3587_v40 = vadd.f32 1.0, %v9990_v4  ;;  %8898 = vmatmul.mubr.msk.f32.gmra.mxu1 %vm3908_vm4, %v12068_v52  ;;  %v12186_v29 = vpop.f32.mrf.mxu1 }
 0x26a   :  { %v9994_v2 = vpop.eup %9993  ;;  %10019 = vpow2.f32 %v7466_v7  ;;  %8900 = vmatprep.mubr.msk.f32.mxu1 %vm3908_vm4, %v12092_v20  ;;  %v2904_v20 = vadd.f32 %v11882_v14, %v12112_v43 }
 0x26b   :  { %v12190_v6 = vpop.eup %9995  ;;  %10021 = vrcp.f32 %v3587_v40  ;;  %v3586_v35 = vadd.f32 1.0, %v9994_v2  ;;  %v12194_v52 = vpop.f32.mrf.mxu1 }
 0x26c   :  { %v12196_v22 = vpop.eup %9997  ;;  %10023 = vpow2.f32 %v7469_v56  ;;  %v7472_v1 = vmul.f32 -1.442695, %v2904_v20  ;;  %v2934_v56 = vadd.f32 %v11882_v14, %v12160_v50 }
 0x26d   :  { %v10000_v19 = vpop.eup %9999  ;;  %10025 = vrcp.f32 %v3586_v35  ;;  %8901 = vmatmul.mubr.msk.f32.gmra.mxu1 %vm3908_vm4, %v12084_v63  ;;  %v12202_v46 = vpop.f32.mrf.mxu1 }
 0x26e   :  { %v12204_v61 = vpop.eup %10001  ;;  %v3589_v13 = vadd.f32 1.0, %v10000_v19  ;;  %10027 = vpow2.f32 %v7468_v41  ;;  %8903 = vmatprep.mubr.msk.f32.mxu1 %vm3908_vm4, %v12108_v34  ;;  %v2914_v34 = vadd.f32 %v11882_v14, %v12128_v42  ;;  %v2949_v41 = vadd.f32 %v11882_v14, %v12168_v10 }
 0x26f   :  { %v10004_v23 = vpop.eup %10003  ;;  %10029 = vpow2.f32 %v7471_v58  ;;  %v12210_v33 = vpop.f32.mrf.mxu1  ;;  %v7478_v3 = vmul.f32 -1.442695, %v2934_v56  ;;  %v2944_v19 = vadd.f32 %v11882_v14, %v12178_v37 }
 0x270   :  { %v12212_v63 = vpop.eup %10005  ;;  %10031 = vrcp.f32 %v3589_v13  ;;  %v3588_v43 = vadd.f32 1.0, %v10004_v23  ;;  %v7474_v15 = vmul.f32 -1.442695, %v2914_v34  ;;  %v2959_v23 = vadd.f32 %v11882_v14, %v12186_v29 }
 0x271   :  { %v10008_v26 = vpop.eup %10007  ;;  %10033 = vpow2.f32 %v7470_v16  ;;  %8904 = vmatmul.mubr.msk.f32.gmra.mxu1 %vm3908_vm4, %v12100_v25  ;;  %v12218_v47 = vpop.f32.mrf.mxu1 }
 0x272   :  { %v12220_v18 = vpop.eup %10009  ;;  %10035 = vrcp.f32 %v3588_v43  ;;  %v3591_v27 = vadd.f32 1.0, %v10008_v26  ;;  %8906 = vmatprep.mubr.msk.f32.mxu1 %vm3908_vm4, %v12122_v45  ;;  %v2924_v45 = vadd.f32 %v11882_v14, %v12144_v31  ;;  %v2939_v31 = vadd.f32 %v11882_v14, %v12152_v62 }
 0x273   :  { %v10012_v5 = vpop.eup %10011  ;;  %10037 = vpow2.f32 %v7473_v9  ;;  %v12226_v32 = vpop.f32.mrf.mxu1  ;;  %v7480_v43 = vmul.f32 -1.442695, %v2944_v19  ;;  %v2954_v26 = vadd.f32 %v11882_v14, %v12194_v52 }
 0x274   :  { %v12228_v25 = vpop.eup %10013  ;;  %10039 = vrcp.f32 %v3591_v27  ;;  %v3590_v42 = vadd.f32 1.0, %v10012_v5  ;;  %v7476_v59 = vmul.f32 -1.442695, %v2924_v45  ;;  %v2969_v5 = vadd.f32 %v11882_v14, %v12202_v46 }
 0x275   :  { %v10016_v8 = vpop.eup %10015  ;;  %10041 = vpow2.f32 %v7472_v1  ;;  %8907 = vmatmul.mubr.msk.f32.gmra.mxu1 %vm3908_vm4, %v12114_v44  ;;  %v12234_v0 = vpop.f32.mrf.mxu1  ;;  %v2979_v45 = vadd.f32 %v11882_v14, %v12218_v47 }
 0x276   :  { %v12236_v53 = vpop.eup %10017  ;;  %10043 = vrcp.f32 %v3590_v42  ;;  %v3593_v24 = vadd.f32 1.0, %v10016_v8  ;;  %8909 = vmatprep.mubr.msk.f32.mxu1 %vm3908_vm4, %v12142_v49  ;;  %v7482_v42 = vmul.f32 -1.442695, %v2954_v26  ;;  %v2964_v8 = vadd.f32 %v11882_v14, %v12210_v33 }
 0x277   :  { %v10020_v51 = vpop.eup %10019  ;;  %10045 = vpow2.f32 %v7475_v38  ;;  %v12240_v11 = vpop.f32.mrf.mxu1  ;;  %v2989_v56 = vadd.f32 %v11882_v14, %v12234_v0 }
 0x278   :  { %v12242_v7 = vpop.eup %10021  ;;  %10047 = vrcp.f32 %v3593_v24  ;;  %v3592_v44 = vadd.f32 1.0, %v10020_v51  ;;  %v7485_v51 = vmul.f32 -1.442695, %v2969_v5  ;;  %v7484_v47 = vmul.f32 -1.442695, %v2964_v8 }
 0x279   :  { %v10024_v30 = vpop.eup %10023  ;;  %10049 = vpow2.f32 %v7474_v15  ;;  %8910 = vmatmul.mubr.msk.f32.gmra.mxu1 %vm3908_vm4, %v12132_v48  ;;  %v12248_v17 = vpop.f32.mrf.mxu1  ;;  %v7479_v48 = vmul.f32 -1.442695, %v2939_v31 }
 0x27a   :  { %v12250_v49 = vpop.eup %10025  ;;  %10051 = vrcp.f32 %v3592_v44  ;;  %v3595_v4 = vadd.f32 1.0, %v10024_v30  ;;  %8912 = vmatprep.mubr.msk.f32.mxu1 %vm3908_vm4, %v12158_v36 }
 0x27b   :  { %v10028_v40 = vpop.eup %10027  ;;  %10053 = vpow2.f32 %v7477_v21  ;;  %v12256_v62 = vpop.f32.mrf.mxu1 }
 0x27c   :  { %v10030_v39 = vpop.eup %10029  ;;  %10055 = vrcp.f32 %v3595_v4  ;;  %v3594_v2 = vadd.f32 1.0, %v10028_v40  ;;  %v7487_v4 = vmul.f32 -1.442695, %v2979_v45 }
 0x27d   :  { %v12260_v35 = vpop.eup %10031  ;;  %v3597_v58 = vadd.f32 1.0, %v10030_v39  ;;  %10057 = vpow2.f32 %v7476_v59  ;;  %8913 = vmatmul.mubr.msk.f32.gmra.mxu1 %vm3908_vm4, %v12148_v28  ;;  %v12264_v36 = vpop.f32.mrf.mxu1  ;;  %v7481_v28 = vmul.f32 -1.442695, %v2949_v41 }
 0x27e   :  { %v10034_v50 = vpop.eup %10033  ;;  %10059 = vrcp.f32 %v3594_v2  ;;  %8915 = vmatprep.mubr.msk.f32.mxu1 %vm3908_vm4, %v12174_v57 }
 0x27f   :  { %v12270_v16 = vpop.eup %10035  ;;  %10061 = vrcp.f32 %v3597_v58  ;;  %v3596_v10 = vadd.f32 1.0, %v10034_v50  ;;  %v12272_v20 = vpop.f32.mrf.mxu1  ;;  %v7489_v58 = vmul.f32 -1.442695, %v2989_v56  ;;  %v2999_v50 = vadd.f32 %v11882_v14, %v12248_v17 }
 0x280   :  { %v10038_v13 = vpop.eup %10037  ;;  %10063 = vpow2.f32 %v7479_v48 }
 0x281   :  { %v12276_v9 = vpop.eup %10039  ;;  %10065 = vrcp.f32 %v3596_v10  ;;  %v3599_v12 = vadd.f32 1.0, %v10038_v13  ;;  %8916 = vmatmul.mubr.msk.f32.gmra.mxu1 %vm3908_vm4, %v12164_v55  ;;  %v12280_v57 = vpop.f32.mrf.mxu1  ;;  %v7483_v55 = vmul.f32 -1.442695, %v2959_v23 }
 0x282   :  { %v10042_v37 = vpop.eup %10041  ;;  %10067 = vpow2.f32 %v7478_v3  ;;  %8918 = vmatprep.mubr.msk.f32.mxu1 %vm3908_vm4, %v12190_v6 }
 0x283   :  { %v12286_v1 = vpop.eup %10043  ;;  %10069 = vrcp.f32 %v3599_v12  ;;  %v3598_v29 = vadd.f32 1.0, %v10042_v37  ;;  %v12288_v34 = vpop.f32.mrf.mxu1 }
 0x284   :  { %v10046_v27 = vpop.eup %10045  ;;  %10071 = vpow2.f32 %v7481_v28 }
 0x285   :  { %v12292_v38 = vpop.eup %10047  ;;  %10073 = vrcp.f32 %v3598_v29  ;;  %v3601_v60 = vadd.f32 1.0, %v10046_v27  ;;  %8919 = vmatmul.mubr.msk.f32.gmra.mxu1 %vm3908_vm4, %v12180_v54  ;;  %v12296_v6 = vpop.f32.mrf.mxu1 }
 0x286   :  { %v10050_v52 = vpop.eup %10049  ;;  %10075 = vpow2.f32 %v7480_v43  ;;  %8921 = vmatprep.mubr.msk.f32.mxu1 %vm3908_vm4, %v12204_v61  ;;  %v2974_v61 = vadd.f32 %v11882_v14, %v12226_v32 }
 0x287   :  { %v12302_v15 = vpop.eup %10051  ;;  %10077 = vrcp.f32 %v3601_v60  ;;  %v3600_v46 = vadd.f32 1.0, %v10050_v52  ;;  %v12306_v24 = vpop.f32.mrf.mxu1 }
 0x288   :  { %v10054_v54 = vpop.eup %10053  ;;  %10079 = vpow2.f32 %v7483_v55  ;;  %v7486_v39 = vmul.f32 -1.442695, %v2974_v61 }
 0x289   :  { %v12308_v21 = vpop.eup %10055  ;;  %10081 = vrcp.f32 %v3600_v46  ;;  %v3603_v44 = vadd.f32 1.0, %v10054_v54  ;;  %8922 = vmatmul.mubr.msk.f32.gmra.mxu1 %vm3908_vm4, %v12196_v22  ;;  %v12314_v33 = vpop.f32.mrf.mxu1 }
 0x28a   :  { %v10058_v31 = vpop.eup %10057  ;;  %10083 = vpow2.f32 %v7482_v42  ;;  %8924 = vmatprep.mubr.msk.f32.mxu1 %vm3908_vm4, %v12220_v18  ;;  %v2984_v18 = vadd.f32 %v11882_v14, %v12240_v11 }
 0x28b   :  { %v12318_v30 = vpop.eup %10059  ;;  %10085 = vrcp.f32 %v3603_v44  ;;  %v3602_v59 = vadd.f32 1.0, %v10058_v31  ;;  %v12322_v22 = vpop.f32.mrf.mxu1 }
 0x28c   :  { %v12324_v40 = vpop.eup %10061  ;;  %10087 = vpow2.f32 %v7485_v51  ;;  %v7488_v10 = vmul.f32 -1.442695, %v2984_v18 }
 0x28d   :  { %v10064_v32 = vpop.eup %10063  ;;  %10089 = vrcp.f32 %v3602_v59  ;;  %8925 = vmatmul.mubr.msk.f32.gmra.mxu1 %vm3908_vm4, %v12212_v63  ;;  %v12330_v2 = vpop.f32.mrf.mxu1 }
 0x28e   :  { %v12332_v48 = vpop.eup %10065  ;;  %v3605_v41 = vadd.f32 1.0, %v10064_v32  ;;  %10091 = vpow2.f32 %v7484_v47  ;;  %8927 = vmatprep.mubr.msk.f32.mxu1 %vm3908_vm4, %v12236_v53  ;;  %v12347_v53 = vld [vmem:[%s13515_s4] ss:$0 sm:$0xff] }
 0x28f   :  { %v10068_v0 = vpop.eup %10067  ;;  %10093 = vpow2.f32 %v7487_v4  ;;  %v12338_v3 = vpop.f32.mrf.mxu1  ;;  %v2994_v14 = vadd.f32 %v12347_v53, %v12256_v62  ;;  %v3009_v12 = vadd.f32 %v12347_v53, %v12264_v36  ;;  %v3014_v54 = vadd.f32 %v12347_v53, %v12288_v34 }
 0x290   :  { %v12340_v63 = vpop.eup %10069  ;;  %10095 = vrcp.f32 %v3605_v41  ;;  %v3604_v11 = vadd.f32 1.0, %v10068_v0  ;;  %v3024_v4 = vadd.f32 %v12347_v53, %v12306_v24 }
 0x291   :  { %v10072_v19 = vpop.eup %10071  ;;  %10097 = vpow2.f32 %v7486_v39  ;;  %8928 = vmatmul.mubr.msk.f32.gmra.mxu1 %vm3908_vm4, %v12228_v25  ;;  %v12351_v17 = vpop.f32.mrf.mxu1  ;;  %v7491_v25 = vmul.f32 -1.442695, %v2999_v50  ;;  %v7490_v29 = vmul.f32 -1.442695, %v2994_v14  ;;  %v7493_v60 = vmul.f32 -1.442695, %v3009_v12 }
 0x292   :  { %v12353_v13 = vpop.eup %10073  ;;  %10099 = vrcp.f32 %v3604_v11  ;;  %v3607_v28 = vadd.f32 1.0, %v10072_v19  ;;  %8930 = vmatprep.mubr.msk.f32.mxu1 %vm3908_vm4, %v12250_v49  ;;  %v3004_v49 = vadd.f32 %v12347_v53, %v12272_v20  ;;  %v7494_v34 = vmul.f32 -1.442695, %v3014_v54 }
 0x293   :  { %v10076_v23 = vpop.eup %10075  ;;  %10101 = vpow2.f32 %v7489_v58  ;;  %v12359_v37 = vpop.f32.mrf.mxu1  ;;  %v7496_v0 = vmul.f32 -1.442695, %v3024_v4  ;;  %v3034_v58 = vadd.f32 %v12347_v53, %v12322_v22  ;;  %v3059_v12 = vadd.f32 %v12347_v53, %v12351_v17 }
 0x294   :  { %v12361_v43 = vpop.eup %10077  ;;  %10103 = vrcp.f32 %v3607_v28  ;;  %v3606_v62 = vadd.f32 1.0, %v10076_v23  ;;  %v7492_v8 = vmul.f32 -1.442695, %v3004_v49  ;;  %v3044_v23 = vadd.f32 %v12347_v53, %v12338_v3 }
 0x295   :  { %v10080_v26 = vpop.eup %10079  ;;  %10105 = vpow2.f32 %v7488_v10  ;;  %8931 = vmatmul.mubr.msk.f32.gmra.mxu1 %vm3908_vm4, %v12242_v7  ;;  %v12367_v27 = vpop.f32.mrf.mxu1  ;;  %v3019_v7 = vadd.f32 %v12347_v53, %v12280_v57  ;;  %v7498_v22 = vmul.f32 -1.442695, %v3034_v58 }
 0x296   :  { %v12369_v55 = vpop.eup %10081  ;;  %10107 = vrcp.f32 %v3606_v62  ;;  %v3609_v36 = vadd.f32 1.0, %v10080_v26  ;;  %8933 = vmatprep.mubr.msk.f32.mxu1 %vm3908_vm4, %v12270_v16 }
 0x297   :  { %v10084_v5 = vpop.eup %10083  ;;  %10109 = vpow2.f32 %v7491_v25  ;;  %v12379_v46 = vpop.f32.mrf.mxu1  ;;  %v7495_v61 = vmul.f32 -1.442695, %v3019_v7 }
 0x298   :  { %v12373_v52 = vpop.eup %10085  ;;  %10111 = vrcp.f32 %v3609_v36  ;;  %v3608_v42 = vadd.f32 1.0, %v10084_v5  ;;  %v7500_v36 = vmul.f32 -1.442695, %v3044_v23 }
 0x299   :  { %v10088_v20 = vpop.eup %10087  ;;  %10113 = vpow2.f32 %v7490_v29  ;;  %8934 = vmatmul.mubr.msk.f32.gmra.mxu1 %vm3908_vm4, %v12260_v35  ;;  %v3029_v35 = vadd.f32 %v12347_v53, %v12296_v6 }
 0x29a   :  { %v12381_v45 = vpop.eup %10089  ;;  %10115 = vrcp.f32 %v3608_v42  ;;  %v3611_v16 = vadd.f32 1.0, %v10088_v20  ;;  %8936 = vmatprep.mubr.msk.f32.mxu1 %vm3908_vm4, %v12286_v1  ;;  %v3069_v42 = vadd.f32 %v12347_v53, %v12367_v27 }
 0x29b   :  { %v10092_v51 = vpop.eup %10091  ;;  %10117 = vpow2.f32 %v7493_v60  ;;  %v7497_v39 = vmul.f32 -1.442695, %v3029_v35  ;;  %v7503_v60 = vmul.f32 -1.442695, %v3059_v12 }
 0x29c   :  { %v10094_v57 = vpop.eup %10093  ;;  %10119 = vrcp.f32 %v3611_v16  ;;  %v3610_v44 = vadd.f32 1.0, %v10092_v51  ;;  %v12393_v1 = vpop.f32.mrf.mxu1  ;;  %v7505_v54 = vmul.f32 -1.442695, %v3069_v42 }
 0x29d   :  { %v12389_v31 = vpop.eup %10095  ;;  %v3613_v47 = vadd.f32 1.0, %v10094_v57  ;;  %10121 = vpow2.f32 %v7492_v8  ;;  %8937 = vmatmul.mubr.msk.f32.gmra.mxu1 %vm3908_vm4, %v12276_v9  ;;  %v3039_v9 = vadd.f32 %v12347_v53, %v12314_v33  ;;  %v3079_v51 = vadd.f32 %v12347_v53, %v12393_v1 }
 0x29e   :  { %v10098_v59 = vpop.eup %10097  ;;  %10123 = vrcp.f32 %v3610_v44  ;;  %8939 = vmatprep.mubr.msk.f32.mxu1 %vm3908_vm4, %v12302_v15  ;;  %v12407_v15 = vpop.f32.mrf.mxu1 }
 0x29f   :  { %v12399_v56 = vpop.eup %10099  ;;  %10125 = vrcp.f32 %v3613_v47  ;;  %v3612_v6 = vadd.f32 1.0, %v10098_v59  ;;  %v7499_v19 = vmul.f32 -1.442695, %v3039_v9  ;;  %v7507_v59 = vmul.f32 -1.442695, %v3079_v51 }
 0x2a0   :  { %v10102_v32 = vpop.eup %10101  ;;  %10127 = vpow2.f32 %v7495_v61 }
 0x2a1   :  { %v12403_v18 = vpop.eup %10103  ;;  %10129 = vrcp.f32 %v3612_v6  ;;  %v3615_v41 = vadd.f32 1.0, %v10102_v32  ;;  %8940 = vmatmul.mubr.msk.f32.gmra.mxu1 %vm3908_vm4, %v12292_v38  ;;  %v3049_v38 = vadd.f32 %v12347_v53, %v12330_v2 }
 0x2a2   :  { %v10106_v24 = vpop.eup %10105  ;;  %10131 = vpow2.f32 %v7494_v34  ;;  %8942 = vmatprep.mubr.msk.f32.mxu1 %vm3908_vm4, %v12318_v30 }
 0x2a3   :  { %v12413_v50 = vpop.eup %10107  ;;  %10133 = vrcp.f32 %v3615_v41  ;;  %v3614_v33 = vadd.f32 1.0, %v10106_v24 }
 0x2a4   :  { %v10110_v11 = vpop.eup %10109  ;;  %10135 = vpow2.f32 %v7497_v39 }
 0x2a5   :  { %v12417_v10 = vpop.eup %10111  ;;  %10137 = vrcp.f32 %v3614_v33  ;;  %v3617_v14 = vadd.f32 1.0, %v10110_v11  ;;  %8943 = vmatmul.mubr.msk.f32.gmra.mxu1 %vm3908_vm4, %v12308_v21  ;;  %v8810_v30 = vpop.f32.mrf.mxu1  ;;  %v7501_v21 = vmul.f32 -1.442695, %v3049_v38 }
 0x2a6   :  { %v10114_v28 = vpop.eup %10113  ;;  %10139 = vpow2.f32 %v7496_v0  ;;  %8945 = vmatprep.mubr.msk.f32.mxu1 %vm3908_vm4, %v12332_v48  ;;  %v3054_v48 = vadd.f32 %v12347_v53, %v12359_v37  ;;  %v3089_v34 = vadd.f32 %v12347_v53, %v8810_v30 }
 0x2a7   :  { %v12425_v25 = vpop.eup %10115  ;;  %10141 = vrcp.f32 %v3617_v14  ;;  %v3616_v2 = vadd.f32 1.0, %v10114_v28  ;;  %v3083_v3 = vpop.f32.mrf.mxu1 }
 0x2a8   :  { %v10118_v62 = vpop.eup %10117  ;;  %10143 = vpow2.f32 %v7499_v19  ;;  %v7502_v37 = vmul.f32 -1.442695, %v3054_v48  ;;  %v3084_v9 = vadd.f32 %v12347_v53, %v3083_v3  ;;  %v7509_v24 = vmul.f32 -1.442695, %v3089_v34 }
 0x2a9   :  { %v12429_v26 = vpop.eup %10119  ;;  %10145 = vrcp.f32 %v3616_v2  ;;  %v3619_v29 = vadd.f32 1.0, %v10118_v62  ;;  %8946 = vmatmul.mubr.msk.f32.gmra.mxu1 %vm3908_vm4, %v12324_v40 }
 0x2aa   :  { %v10122_v49 = vpop.eup %10121  ;;  %10147 = vpow2.f32 %v7498_v22  ;;  %8948 = vmatprep.mubr.msk.f32.mxu1 %vm3908_vm4, %v12353_v13  ;;  %v3064_v13 = vadd.f32 %v12347_v53, %v12379_v46  ;;  %v7508_v19 = vmul.f32 -1.442695, %v3084_v9 }
 0x2ab   :  { %v12437_v17 = vpop.eup %10123  ;;  %10149 = vrcp.f32 %v3619_v29  ;;  %v3618_v5 = vadd.f32 1.0, %v10122_v49 }
 0x2ac   :  { %v12441_v7 = vpop.eup %10125  ;;  %10151 = vpow2.f32 %v7501_v21  ;;  %v7504_v61 = vmul.f32 -1.442695, %v3064_v13 }
 0x2ad   :  { %v10128_v40 = vpop.eup %10127  ;;  %10153 = vrcp.f32 %v3618_v5  ;;  %8949 = vmatmul.mubr.msk.f32.gmra.mxu1 %vm3908_vm4, %v12340_v63  ;;  %v8813_v20 = vpop.f32.mrf.mxu1 }
 0x2ae   :  { %v12447_v8 = vpop.eup %10129  ;;  %v3621_v16 = vadd.f32 1.0, %v10128_v40  ;;  %10155 = vpow2.f32 %v7500_v36  ;;  %8951 = vmatprep.mubr.msk.f32.mxu1 %vm3908_vm4, %v12369_v55  ;;  %v3074_v55 = vadd.f32 %v12347_v53, %v12407_v15  ;;  %v3099_v33 = vadd.f32 %v12347_v53, %v8813_v20 }
 0x2af   :  { %v10132_v27 = vpop.eup %10131  ;;  %10157 = vpow2.f32 %v7503_v60  ;;  %v3093_v44 = vpop.f32.mrf.mxu1 }
 0x2b0   :  { %v12453_v57 = vpop.eup %10133  ;;  %10159 = vrcp.f32 %v3621_v16  ;;  %v3620_v63 = vadd.f32 1.0, %v10132_v27  ;;  %v7506_v39 = vmul.f32 -1.442695, %v3074_v55  ;;  %v3094_v14 = vadd.f32 %v12347_v53, %v3093_v44 }
 0x2b1   :  { %v10136_v46 = vpop.eup %10135  ;;  %10161 = vpow2.f32 %v7502_v37  ;;  %8952 = vmatmul.mubr.msk.f32.gmra.mxu1 %vm3908_vm4, %v12361_v43  ;;  %v7511_v23 = vmul.f32 -1.442695, %v3099_v33 }
 0x2b2   :  { %v12459_v35 = vpop.eup %10137  ;;  %10163 = vrcp.f32 %v3620_v63  ;;  %v3623_v47 = vadd.f32 1.0, %v10136_v46  ;;  %8954 = vmatprep.mubr.msk.f32.mxu1 %vm3908_vm4, %v12381_v45 }
 0x2b3   :  { %v10140_v1 = vpop.eup %10139  ;;  %10165 = vpow2.f32 %v7505_v54 }
 0x2b4   :  { %v12464_v4 = vpop.eup %10141  ;;  %10167 = vrcp.f32 %v3623_v47  ;;  %v3622_v6 = vadd.f32 1.0, %v10140_v1  ;;  %v8816_v43 = vpop.f32.mrf.mxu1  ;;  %v12515_v47 = vld [vmem:[%s13516_s6] ss:$0 sm:$0xff] }
 0x2b5   :  { %v10144_v32 = vpop.eup %10143  ;;  %10169 = vpow2.f32 %v7504_v61  ;;  %8955 = vmatmul.mubr.msk.f32.gmra.mxu1 %vm3908_vm4, %v12373_v52  ;;  %v3109_v2 = vadd.f32 %v12347_v53, %v8816_v43 }
 0x2b6   :  { %v12469_v41 = vpop.eup %10145  ;;  %10171 = vrcp.f32 %v3622_v6  ;;  %v3625_v45 = vadd.f32 1.0, %v10144_v32  ;;  %8957 = vmatprep.mubr.msk.f32.mxu1 %vm3908_vm4, %v12399_v56  ;;  %v3103_v11 = vpop.f32.mrf.mxu1 }
 0x2b7   :  { %v10148_v15 = vpop.eup %10147  ;;  %10173 = vpow2.f32 %v7507_v59  ;;  %v3104_v29 = vadd.f32 %v12347_v53, %v3103_v11  ;;  %v7513_v5 = vmul.f32 -1.442695, %v3109_v2 }
 0x2b8   :  { %v12473_v0 = vpop.eup %10149  ;;  %10175 = vrcp.f32 %v3625_v45  ;;  %v3624_v58 = vadd.f32 1.0, %v10148_v15 }
 0x2b9   :  { %v10152_v52 = vpop.eup %10151  ;;  %10177 = vpow2.f32 %v7506_v39  ;;  %8958 = vmatmul.mubr.msk.f32.gmra.mxu1 %vm3908_vm4, %v12389_v31  ;;  %v7512_v40 = vmul.f32 -1.442695, %v3104_v29 }
 0x2ba   :  { %v12478_v38 = vpop.eup %10153  ;;  %10179 = vrcp.f32 %v3624_v58  ;;  %v3627_v56 = vadd.f32 1.0, %v10152_v52  ;;  %8960 = vmatprep.mubr.msk.f32.mxu1 %vm3908_vm4, %v12413_v50  ;;  %v7510_v50 = vmul.f32 -1.442695, %v3094_v14 }
 0x2bb   :  { %v10156_v30 = vpop.eup %10155  ;;  %10181 = vpow2.f32 %v7509_v24 }
 0x2bc   :  { %v10158_v28 = vpop.eup %10157  ;;  %10183 = vrcp.f32 %v3627_v56  ;;  %v3626_v22 = vadd.f32 1.0, %v10156_v30  ;;  %v8819_v12 = vpop.f32.mrf.mxu1 }
 0x2bd   :  { %v12484_v62 = vpop.eup %10159  ;;  %v3629_v31 = vadd.f32 1.0, %v10158_v28  ;;  %10185 = vpow2.f32 %v7508_v19  ;;  %8961 = vmatmul.mubr.msk.f32.gmra.mxu1 %vm3908_vm4, %v12403_v18  ;;  %v3119_v60 = vadd.f32 %v12347_v53, %v8819_v12 }
 0x2be   :  { %v10162_v21 = vpop.eup %10161  ;;  %10187 = vrcp.f32 %v3626_v22  ;;  %8963 = vmatprep.mubr.msk.f32.mxu1 %vm3908_vm4, %v12425_v25  ;;  %v3113_v49 = vpop.f32.mrf.mxu1 }
 0x2bf   :  { %v12491_v48 = vpop.eup %10163  ;;  %10189 = vrcp.f32 %v3629_v31  ;;  %v3628_v3 = vadd.f32 1.0, %v10162_v21  ;;  %v3114_v37 = vadd.f32 %v12347_v53, %v3113_v49  ;;  %v7515_v27 = vmul.f32 -1.442695, %v3119_v60 }
 0x2c0   :  { %v10166_v36 = vpop.eup %10165  ;;  %10191 = vpow2.f32 %v7511_v23 }
 0x2c1   :  { %v12494_v42 = vpop.eup %10167  ;;  %10193 = vrcp.f32 %v3628_v3  ;;  %v3631_v18 = vadd.f32 1.0, %v10166_v36  ;;  %8964 = vmatmul.mubr.msk.f32.gmra.mxu1 %vm3908_vm4, %v12417_v10 }
 0x2c2   :  { %v10170_v25 = vpop.eup %10169  ;;  %10195 = vpow2.f32 %v7510_v50  ;;  %8966 = vmatprep.mubr.msk.f32.mxu1 %vm3908_vm4, %v12437_v17  ;;  %v7514_v17 = vmul.f32 -1.442695, %v3114_v37 }
 0x2c3   :  { %v12501_v13 = vpop.eup %10171  ;;  %10197 = vrcp.f32 %v3631_v18  ;;  %v3630_v20 = vadd.f32 1.0, %v10170_v25 }
 0x2c4   :  { %v10174_v16 = vpop.eup %10173  ;;  %10199 = vpow2.f32 %v7513_v5 }
 0x2c5   :  { %v12503_v54 = vpop.eup %10175  ;;  %10201 = vrcp.f32 %v3630_v20  ;;  %v3633_v51 = vadd.f32 1.0, %v10174_v16  ;;  %v8822_v10 = vpop.f32.mrf.mxu1  ;;  %8967 = vmatmul.mubr.msk.f32.gmra.mxu1 %vm3908_vm4, %v12429_v26 }
 0x2c6   :  { %v10178_v63 = vpop.eup %10177  ;;  %10203 = vpow2.f32 %v7512_v40  ;;  %v3129_v44 = vadd.f32 %v12347_v53, %v8822_v10  ;;  %8969 = vmatprep.mubr.msk.f32.mxu1 %vm3908_vm4, %v12447_v8 }
 0x2c7   :  { %v12510_v46 = vpop.eup %10179  ;;  %10205 = vrcp.f32 %v3633_v51  ;;  %v3632_v61 = vadd.f32 1.0, %v10178_v63  ;;  %v3123_v55 = vpop.f32.mrf.mxu1 }
 0x2c8   :  { %v10182_v1 = vpop.eup %10181  ;;  %10207 = vpow2.f32 %v7515_v27  ;;  %v7517_v26 = vmul.f32 -1.442695, %v3129_v44  ;;  %v3124_v59 = vadd.f32 %v12347_v53, %v3123_v55 }
 0x2c9   :  { %v12518_v34 = vpop.eup %10183  ;;  %10209 = vrcp.f32 %v3632_v61  ;;  %v3635_v6 = vadd.f32 1.0, %v10182_v1  ;;  %v8827_v8 = vpop.f32.mrf.mxu1  ;;  %8970 = vmatmul.mubr.msk.f32.gmra.mxu1 %vm3908_vm4, %v12441_v7 }
 0x2ca   :  { %v10186_v43 = vpop.eup %10185  ;;  %10211 = vpow2.f32 %v7514_v17  ;;  %v7516_v32 = vmul.f32 -1.442695, %v3124_v59  ;;  %v4369_v39 = vadd.f32 %v8827_v8, %v12515_v47  ;;  %8972 = vmatprep.mubr.msk.f32.mxu1 %vm3908_vm4, %v12459_v35 }
 0x2cb   :  { %v12525_v9 = vpop.eup %10187  ;;  %10213 = vrcp.f32 %v3635_v6  ;;  %v3634_v53 = vadd.f32 1.0, %v10186_v43  ;;  %v4363_v45 = vpop.f32.mrf.mxu1 }
 0x2cc   :  { %v12527_v15 = vpop.eup %10189  ;;  %10215 = vpow2.f32 %v7517_v26  ;;  %v7649_v24 = vmul.f32 -1.442695, %v4369_v39  ;;  %v4364_v58 = vadd.f32 %v12515_v47, %v4363_v45 }
 0x2cd   :  { %v10192_v7 = vpop.eup %10191  ;;  %10217 = vrcp.f32 %v3634_v53  ;;  %v8830_v33 = vpop.f32.mrf.mxu1  ;;  %8973 = vmatmul.mubr.msk.f32.gmra.mxu1 %vm3908_vm4, %v12453_v57 }
 0x2ce   :  { %v12532_v11 = vpop.eup %10193  ;;  %v3637_v35 = vadd.f32 1.0, %v10192_v7  ;;  %10219 = vpow2.f32 %v7516_v32  ;;  %v7648_v52 = vmul.f32 -1.442695, %v4364_v58  ;;  %v4379_v19 = vadd.f32 %v8830_v33, %v12515_v47  ;;  %8975 = vmatprep.mubr.msk.f32.mxu1 %vm3908_vm4, %v12469_v41 }
 0x2cf   :  { %v10196_v56 = vpop.eup %10195  ;;  %10221 = vpow2.f32 %v7649_v24  ;;  %v4373_v14 = vpop.f32.mrf.mxu1 }
 0x2d0   :  { %v12537_v30 = vpop.eup %10197  ;;  %10223 = vrcp.f32 %v3637_v35  ;;  %v3636_v28 = vadd.f32 1.0, %v10196_v56  ;;  %v7651_v22 = vmul.f32 -1.442695, %v4379_v19  ;;  %v4374_v57 = vadd.f32 %v12515_v47, %v4373_v14 }
 0x2d1   :  { %v10200_v23 = vpop.eup %10199  ;;  %10225 = vpow2.f32 %v7648_v52  ;;  %v8833_v2 = vpop.f32.mrf.mxu1  ;;  %8976 = vmatmul.mubr.msk.f32.gmra.mxu1 %vm3908_vm4, %v12464_v4 }
 0x2d2   :  { %v12542_v12 = vpop.eup %10201  ;;  %10227 = vrcp.f32 %v3636_v28  ;;  %v3639_v41 = vadd.f32 1.0, %v10200_v23  ;;  %v7650_v31 = vmul.f32 -1.442695, %v4374_v57  ;;  %v4389_v21 = vadd.f32 %v8833_v2, %v12515_v47  ;;  %8978 = vmatprep.mubr.msk.f32.mxu1 %vm3908_vm4, %v12478_v38 }
 0x2d3   :  { %v10204_v50 = vpop.eup %10203  ;;  %10229 = vpow2.f32 %v7651_v22  ;;  %v4383_v29 = vpop.f32.mrf.mxu1 }
 0x2d4   :  { %v12547_v3 = vpop.eup %10205  ;;  %10231 = vrcp.f32 %v3639_v41  ;;  %v3638_v49 = vadd.f32 1.0, %v10204_v50  ;;  %v7653_v36 = vmul.f32 -1.442695, %v4389_v21  ;;  %v4384_v4 = vadd.f32 %v12515_v47, %v4383_v29 }
 0x2d5   :  { %v10208_v5 = vpop.eup %10207  ;;  %10233 = vpow2.f32 %v7650_v31  ;;  %v8836_v60 = vpop.f32.mrf.mxu1  ;;  %8979 = vmatmul.mubr.msk.f32.gmra.mxu1 %vm3908_vm4, %v12473_v0 }
 0x2d6   :  { %v12552_v18 = vpop.eup %10209  ;;  %10235 = vrcp.f32 %v3638_v49  ;;  %v3641_v38 = vadd.f32 1.0, %v10208_v5  ;;  %v7652_v25 = vmul.f32 -1.442695, %v4384_v4  ;;  %v4399_v40 = vadd.f32 %v8836_v60, %v12515_v47  ;;  %8981 = vmatprep.mubr.msk.f32.mxu1 %vm3908_vm4, %v12491_v48 }
 0x2d7   :  { %v10212_v37 = vpop.eup %10211  ;;  %10237 = vpow2.f32 %v7653_v36  ;;  %v4393_v20 = vpop.f32.mrf.mxu1 }
 0x2d8   :  { %v12557_v16 = vpop.eup %10213  ;;  %10239 = vrcp.f32 %v3641_v38  ;;  %v3640_v27 = vadd.f32 1.0, %v10212_v37  ;;  %v7655_v51 = vmul.f32 -1.442695, %v4399_v40  ;;  %v4394_v0 = vadd.f32 %v12515_v47, %v4393_v20 }
 0x2d9   :  { %v10216_v10 = vpop.eup %10215  ;;  %10241 = vpow2.f32 %v7652_v25  ;;  %v8839_v63 = vpop.f32.mrf.mxu1  ;;  %8982 = vmatmul.mubr.msk.f32.gmra.mxu1 %vm3908_vm4, %v12484_v62 }
 0x2da   :  { %v12562_v17 = vpop.eup %10217  ;;  %10243 = vrcp.f32 %v3640_v27  ;;  %v3643_v48 = vadd.f32 1.0, %v10216_v10  ;;  %v7654_v44 = vmul.f32 -1.442695, %v4394_v0  ;;  %v4409_v61 = vadd.f32 %v8839_v63, %v12515_v47  ;;  %8984 = vmatprep.mubr.msk.f32.mxu1 %vm3908_vm4, %v12501_v13 }
 0x2db   :  { %v10220_v55 = vpop.eup %10219  ;;  %10245 = vpow2.f32 %v7655_v51  ;;  %v4403_v1 = vpop.f32.mrf.mxu1 }
 0x2dc   :  { %v10222_v26 = vpop.eup %10221  ;;  %10247 = vrcp.f32 %v3643_v48  ;;  %v3642_v59 = vadd.f32 1.0, %v10220_v55  ;;  %v7657_v6 = vmul.f32 -1.442695, %v4409_v61  ;;  %v4404_v8 = vadd.f32 %v12515_v47, %v4403_v1 }
 0x2dd   :  { %v12568_v62 = vpop.eup %10223  ;;  %v5387_v43 = vadd.f32 1.0, %v10222_v26  ;;  %10249 = vpow2.f32 %v7654_v44  ;;  %v8842_v32 = vpop.f32.mrf.mxu1  ;;  %8985 = vmatmul.mubr.msk.f32.gmra.mxu1 %vm3908_vm4, %v12494_v42 }
 0x2de   :  { %v10226_v39 = vpop.eup %10225  ;;  %10251 = vrcp.f32 %v3642_v59  ;;  %v7656_v13 = vmul.f32 -1.442695, %v4404_v8  ;;  %v4419_v53 = vadd.f32 %v8842_v32, %v12515_v47  ;;  %8987 = vmatprep.mubr.msk.f32.mxu1 %vm3908_vm4, %v12510_v46 }
 0x2df   :  { %v12575_v45 = vpop.eup %10227  ;;  %10253 = vrcp.f32 %v5387_v43  ;;  %v5386_v24 = vadd.f32 1.0, %v10226_v39  ;;  %v4413_v58 = vpop.f32.mrf.mxu1 }
 0x2e0   :  { %v10230_v7 = vpop.eup %10229  ;;  %10255 = vpow2.f32 %v7657_v6  ;;  %v7659_v33 = vmul.f32 -1.442695, %v4419_v53  ;;  %v4414_v35 = vadd.f32 %v12515_v47, %v4413_v58 }
 0x2e1   :  { %v12578_v52 = vpop.eup %10231  ;;  %10257 = vrcp.f32 %v5386_v24  ;;  %v5389_v42 = vadd.f32 1.0, %v10230_v7  ;;  %v8845_v19 = vpop.f32.mrf.mxu1  ;;  %8988 = vmatmul.mubr.msk.f32.gmra.mxu1 %vm3908_vm4, %v12503_v54 }
 0x2e2   :  { %v10234_v56 = vpop.eup %10233  ;;  %10259 = vpow2.f32 %v7656_v13  ;;  %v7658_v46 = vmul.f32 -1.442695, %v4414_v35  ;;  %v4429_v14 = vadd.f32 %v8845_v19, %v12515_v47  ;;  %8990 = vmatprep.mubr.msk.f32.mxu1 %vm3908_vm4, %v12525_v9 }
 0x2e3   :  { %v12585_v28 = vpop.eup %10235  ;;  %10261 = vrcp.f32 %v5389_v42  ;;  %v5388_v22 = vadd.f32 1.0, %v10234_v56  ;;  %v4423_v57 = vpop.f32.mrf.mxu1 }
 0x2e4   :  { %v10238_v23 = vpop.eup %10237  ;;  %10263 = vpow2.f32 %v7659_v33  ;;  %v7661_v2 = vmul.f32 -1.442695, %v4429_v14  ;;  %v4424_v41 = vadd.f32 %v12515_v47, %v4423_v57 }
 0x2e5   :  { %v12588_v31 = vpop.eup %10239  ;;  %10265 = vrcp.f32 %v5388_v22  ;;  %v5391_v54 = vadd.f32 1.0, %v10238_v23  ;;  %v8848_v21 = vpop.f32.mrf.mxu1  ;;  %8991 = vmatmul.mubr.msk.f32.gmra.mxu1 %vm3908_vm4, %v12518_v34 }
 0x2e6   :  { %v10242_v50 = vpop.eup %10241  ;;  %10267 = vpow2.f32 %v7658_v46  ;;  %v7660_v9 = vmul.f32 -1.442695, %v4424_v41  ;;  %v4439_v29 = vadd.f32 %v8848_v21, %v12515_v47  ;;  %8993 = vmatprep.mubr.msk.f32.mxu1 %vm3908_vm4, %v12532_v11 }
 0x2e7   :  { %v12595_v49 = vpop.eup %10243  ;;  %10269 = vrcp.f32 %v5391_v54  ;;  %v5390_v36 = vadd.f32 1.0, %v10242_v50  ;;  %v4433_v4 = vpop.f32.mrf.mxu1 }
 0x2e8   :  { %v10246_v5 = vpop.eup %10245  ;;  %10271 = vpow2.f32 %v7661_v2  ;;  %v7663_v60 = vmul.f32 -1.442695, %v4439_v29  ;;  %v4434_v38 = vadd.f32 %v12515_v47, %v4433_v4 }
 0x2e9   :  { %v12598_v25 = vpop.eup %10247  ;;  %10273 = vrcp.f32 %v5390_v36  ;;  %v5393_v34 = vadd.f32 1.0, %v10246_v5  ;;  %v8851_v40 = vpop.f32.mrf.mxu1  ;;  %8994 = vmatmul.mubr.msk.f32.gmra.mxu1 %vm3908_vm4, %v12527_v15 }
 0x2ea   :  { %v10250_v37 = vpop.eup %10249  ;;  %10275 = vpow2.f32 %v7660_v9  ;;  %v7662_v11 = vmul.f32 -1.442695, %v4434_v38  ;;  %v4449_v20 = vadd.f32 %v8851_v40, %v12515_v47  ;;  %8996 = vmatprep.mubr.msk.f32.mxu1 %vm3908_vm4, %v12542_v12 }
 0x2eb   :  { %v12605_v27 = vpop.eup %10251  ;;  %10277 = vrcp.f32 %v5393_v34  ;;  %v5392_v51 = vadd.f32 1.0, %v10250_v37  ;;  %v4443_v0 = vpop.f32.mrf.mxu1 }
 0x2ec   :  { %v10254_v10 = vpop.eup %10253  ;;  %10279 = vpow2.f32 %v7663_v60  ;;  %v7665_v63 = vmul.f32 -1.442695, %v4449_v20  ;;  %v4444_v48 = vadd.f32 %v12515_v47, %v4443_v0 }
 0x2ed   :  { %v10256_v44 = vpop.eup %10255  ;;  %10281 = vrcp.f32 %v5392_v51  ;;  %v8854_v15 = vpop.f32.mrf.mxu1  ;;  %8997 = vmatmul.mubr.msk.f32.gmra.mxu1 %vm3908_vm4, %v12537_v30 }
 0x2ee   :  { %v10258_v61 = vpop.eup %10257  ;;  %v5395_v55 = vadd.f32 1.0, %v10256_v44  ;;  %10283 = vpow2.f32 %v7662_v11  ;;  %v7664_v12 = vmul.f32 -1.442695, %v4444_v48  ;;  %v4459_v1 = vadd.f32 %v8854_v15, %v12515_v47  ;;  %8999 = vmatprep.mubr.msk.f32.mxu1 %vm3908_vm4, %v12552_v18 }
 0x2ef   :  { %v10260_v26 = vpop.eup %10259  ;;  %10285 = vpow2.f32 %v7665_v63  ;;  %9021 = vmatprep.mubr.msk.f32.mxu0 %vm2038_vm3, %v10258_v61  ;;  %v4453_v59 = vpop.f32.mrf.mxu1 }
 0x2f0   :  { %v10262_v6 = vpop.eup %10261  ;;  %10287 = vrcp.f32 %v5395_v55  ;;  %v5394_v8 = vadd.f32 1.0, %v10260_v26  ;;  %v7667_v43 = vmul.f32 -1.442695, %v4459_v1  ;;  %v4454_v30 = vadd.f32 %v12515_v47, %v4453_v59  ;;  %9022 = vmatmul.mubr.msk.f32.vlgmr.msra.gmra.mxu0 %vm2038_vm3, %v10254_v10 }
 0x2f1   :  { %v10264_v32 = vpop.eup %10263  ;;  %10289 = vpow2.f32 %v7664_v12  ;;  %v8857_v39 = vpop.f32.mrf.mxu1  ;;  %9000 = vmatmul.mubr.msk.f32.gmra.mxu1 %vm3908_vm4, %v12547_v3 }
 0x2f2   :  { %v10266_v18 = vpop.eup %10265  ;;  %10291 = vrcp.f32 %v5394_v8  ;;  %v5397_v13 = vadd.f32 1.0, %v10264_v32  ;;  %v7666_v53 = vmul.f32 -1.442695, %v4454_v30  ;;  %v4469_v24 = vadd.f32 %v8857_v39, %v12515_v47  ;;  %9002 = vmatprep.mubr.msk.f32.mxu1 %vm3908_vm4, %v12562_v17 }
 0x2f3   :  { %v10268_v58 = vpop.eup %10267  ;;  %10293 = vpow2.f32 %v7667_v43  ;;  %9024 = vmatprep.mubr.msk.f32.mxu0 %vm2038_vm3, %v10266_v18  ;;  %v4463_v7 = vpop.f32.mrf.mxu1 }
 0x2f4   :  { %v10270_v33 = vpop.eup %10269  ;;  %10295 = vrcp.f32 %v5397_v13  ;;  %v5396_v35 = vadd.f32 1.0, %v10268_v58  ;;  %v7669_v42 = vmul.f32 -1.442695, %v4469_v24  ;;  %v4464_v3 = vadd.f32 %v12515_v47, %v4463_v7  ;;  %9025 = vmatmul.mubr.msk.f32.gmra.mxu0 %vm2038_vm3, %v10262_v6 }
 0x2f5   :  { %v10272_v19 = vpop.eup %10271  ;;  %10297 = vpow2.f32 %v7666_v53  ;;  %v8860_v56 = vpop.f32.mrf.mxu1  ;;  %9003 = vmatmul.mubr.msk.f32.gmra.mxu1 %vm3908_vm4, %v12557_v16 }
 0x2f6   :  { %v10274_v17 = vpop.eup %10273  ;;  %10299 = vrcp.f32 %v5396_v35  ;;  %v5399_v46 = vadd.f32 1.0, %v10272_v19  ;;  %v7668_v14 = vmul.f32 -1.442695, %v4464_v3  ;;  %v4479_v22 = vadd.f32 %v8860_v56, %v12515_v47  ;;  %9005 = vmatprep.mubr.msk.f32.mxu1 %vm3908_vm4, %v12575_v45 }
 0x2f7   :  { %v10276_v57 = vpop.eup %10275  ;;  %10301 = vpow2.f32 %v7669_v42  ;;  %9027 = vmatprep.mubr.msk.f32.mxu0 %vm2038_vm3, %v10274_v17  ;;  %v4473_v23 = vpop.f32.mrf.mxu1 }
 0x2f8   :  { %v10278_v2 = vpop.eup %10277  ;;  %10303 = vrcp.f32 %v5399_v46  ;;  %v5398_v41 = vadd.f32 1.0, %v10276_v57  ;;  %v7671_v54 = vmul.f32 -1.442695, %v4479_v22  ;;  %v4474_v16 = vadd.f32 %v12515_v47, %v4473_v23  ;;  %9028 = vmatmul.mubr.msk.f32.gmra.mxu0 %vm2038_vm3, %v10270_v33 }
 0x2f9   :  { %v10280_v21 = vpop.eup %10279  ;;  %10305 = vpow2.f32 %v7668_v14  ;;  %v8863_v50 = vpop.f32.mrf.mxu1  ;;  %9006 = vmatmul.mubr.msk.f32.gmra.mxu1 %vm3908_vm4, %v12568_v62 }
 0x2fa   :  { %v10282_v45 = vpop.eup %10281  ;;  %10307 = vrcp.f32 %v5398_v41  ;;  %v5401_v9 = vadd.f32 1.0, %v10280_v21  ;;  %v7670_v29 = vmul.f32 -1.442695, %v4474_v16  ;;  %v4489_v36 = vadd.f32 %v8863_v50, %v12515_v47  ;;  %9008 = vmatprep.mubr.msk.f32.mxu1 %vm3908_vm4, %v12585_v28 }
 0x2fb   :  { %v10284_v4 = vpop.eup %10283  ;;  %10309 = vpow2.f32 %v7671_v54  ;;  %9030 = vmatprep.mubr.msk.f32.mxu0 %vm2038_vm3, %v10282_v45  ;;  %v4483_v5 = vpop.f32.mrf.mxu1 }
 0x2fc   :  { %v10286_v60 = vpop.eup %10285  ;;  %10311 = vrcp.f32 %v5401_v9  ;;  %v5400_v38 = vadd.f32 1.0, %v10284_v4  ;;  %v7673_v34 = vmul.f32 -1.442695, %v4489_v36  ;;  %v4484_v62 = vadd.f32 %v12515_v47, %v4483_v5  ;;  %9031 = vmatmul.mubr.msk.f32.gmra.mxu0 %vm2038_vm3, %v10278_v2 }
 0x2fd   :  { %v10288_v40 = vpop.eup %10287  ;;  %v5403_v37 = vadd.f32 1.0, %v10286_v60  ;;  %10313 = vpow2.f32 %v7670_v29  ;;  %v8866_v11 = vpop.f32.mrf.mxu1  ;;  %9009 = vmatmul.mubr.msk.f32.gmra.mxu1 %vm3908_vm4, %v12578_v52 }
 0x2fe   :  { %v10290_v28 = vpop.eup %10289  ;;  %10315 = vrcp.f32 %v5400_v38  ;;  %v7672_v20 = vmul.f32 -1.442695, %v4484_v62  ;;  %v4499_v51 = vadd.f32 %v8866_v11, %v12515_v47  ;;  %9011 = vmatprep.mubr.msk.f32.mxu1 %vm3908_vm4, %v12595_v49 }
 0x2ff   :  { %v10292_v0 = vpop.eup %10291  ;;  %10317 = vrcp.f32 %v5403_v37  ;;  %v5402_v10 = vadd.f32 1.0, %v10290_v28  ;;  %v4493_v63 = vpop.f32.mrf.mxu1 }
 0x300   :  { %v10294_v48 = vpop.eup %10293  ;;  %10319 = vpow2.f32 %v7673_v34  ;;  %v7675_v44 = vmul.f32 -1.442695, %v4499_v51  ;;  %9033 = vmatprep.mubr.msk.f32.mxu0 %vm2038_vm3, %v10292_v0  ;;  %v4494_v15 = vadd.f32 %v12515_v47, %v4493_v63 }
 0x301   :  { %v10296_v52 = vpop.eup %10295  ;;  %10321 = vrcp.f32 %v5402_v10  ;;  %v5405_v61 = vadd.f32 1.0, %v10294_v48  ;;  %9034 = vmatmul.mubr.msk.f32.gmra.mxu0 %vm2038_vm3, %v10288_v40  ;;  %v8869_v55 = vpop.f32.mrf.mxu1  ;;  %9012 = vmatmul.mubr.msk.f32.gmra.mxu1 %vm3908_vm4, %v12588_v31 }
 0x302   :  { %v10298_v49 = vpop.eup %10297  ;;  %10323 = vpow2.f32 %v7672_v20  ;;  %v7674_v12 = vmul.f32 -1.442695, %v4494_v15  ;;  %v4509_v1 = vadd.f32 %v8869_v55, %v12515_v47  ;;  %9014 = vmatprep.mubr.msk.f32.mxu1 %vm3908_vm4, %v12605_v27 }
 0x303   :  { %v10300_v26 = vpop.eup %10299  ;;  %10325 = vrcp.f32 %v5405_v61  ;;  %v5404_v59 = vadd.f32 1.0, %v10298_v49  ;;  %v4503_v6 = vpop.f32.mrf.mxu1 }
 0x304   :  { %v10302_v8 = vpop.eup %10301  ;;  %10327 = vpow2.f32 %v7675_v44  ;;  %v7677_v43 = vmul.f32 -1.442695, %v4509_v1  ;;  %9036 = vmatprep.mubr.msk.f32.mxu0 %vm2038_vm3, %v10300_v26  ;;  %v4504_v30 = vadd.f32 %v12515_v47, %v4503_v6 }
 0x305   :  { %v10304_v31 = vpop.eup %10303  ;;  %10329 = vrcp.f32 %v5404_v59  ;;  %v5407_v32 = vadd.f32 1.0, %v10302_v8  ;;  %9037 = vmatmul.mubr.msk.f32.gmra.mxu0 %vm2038_vm3, %v10296_v52  ;;  %v8872_v39 = vpop.f32.mrf.mxu1  ;;  %9015 = vmatmul.mubr.msk.f32.gmra.mxu1 %vm3908_vm4, %v12598_v25 }
 0x306   :  { %v10306_v27 = vpop.eup %10305  ;;  %10331 = vpow2.f32 %v7674_v12  ;;  %v7676_v18 = vmul.f32 -1.442695, %v4504_v30  ;;  %v4519_v13 = vadd.f32 %v8872_v39, %v12515_v47 }
 0x307   :  { %v10308_v53 = vpop.eup %10307  ;;  %10333 = vrcp.f32 %v5407_v32  ;;  %v5406_v24 = vadd.f32 1.0, %v10306_v27  ;;  %v4513_v58 = vpop.f32.mrf.mxu1 }
 0x308   :  { %v10310_v7 = vpop.eup %10309  ;;  %10335 = vpow2.f32 %v7677_v43  ;;  %v7679_v33 = vmul.f32 -1.442695, %v4519_v13  ;;  %9039 = vmatprep.mubr.msk.f32.mxu0 %vm2038_vm3, %v10308_v53  ;;  %v4514_v35 = vadd.f32 %v12515_v47, %v4513_v58 }
 0x309   :  { %v10312_v42 = vpop.eup %10311  ;;  %10337 = vrcp.f32 %v5406_v24  ;;  %v5409_v3 = vadd.f32 1.0, %v10310_v7  ;;  %9040 = vmatmul.mubr.msk.f32.gmra.mxu0 %vm2038_vm3, %v10304_v31  ;;  %v8875_v25 = vpop.f32.mrf.mxu1 }
 0x30a   :  { %v10314_v19 = vpop.eup %10313  ;;  %10339 = vpow2.f32 %v7676_v18  ;;  %v7678_v56 = vmul.f32 -1.442695, %v4514_v35  ;;  %v4529_v17 = vadd.f32 %v8875_v25, %v12515_v47 }
 0x30b   :  { %v10316_v46 = vpop.eup %10315  ;;  %10341 = vrcp.f32 %v5409_v3  ;;  %v5408_v14 = vadd.f32 1.0, %v10314_v19  ;;  %v4523_v22 = vpop.f32.mrf.mxu1 }
 0x30c   :  { %v10318_v57 = vpop.eup %10317  ;;  %10343 = vpow2.f32 %v7679_v33  ;;  %v7681_v23 = vmul.f32 -1.442695, %v4529_v17  ;;  %9042 = vmatprep.mubr.msk.f32.mxu0 %vm2038_vm3, %v10316_v46  ;;  %v4524_v2 = vadd.f32 %v12515_v47, %v4523_v22 }
 0x30d   :  { %v10320_v41 = vpop.eup %10319  ;;  %10345 = vrcp.f32 %v5408_v14  ;;  %9043 = vmatmul.mubr.msk.f32.gmra.mxu0 %vm2038_vm3, %v10312_v42  ;;  %v8878_v54 = vpop.f32.mrf.mxu1 }
 0x30e   :  { %v10322_v16 = vpop.eup %10321  ;;  %v5411_v21 = vadd.f32 1.0, %v10320_v41  ;;  %10347 = vpow2.f32 %v7678_v56  ;;  %v7680_v50 = vmul.f32 -1.442695, %v4524_v2  ;;  %v4539_v45 = vadd.f32 %v8878_v54, %v12515_v47 }
 0x30f   :  { %v10324_v9 = vpop.eup %10323  ;;  %10349 = vpow2.f32 %v7681_v23  ;;  %9045 = vmatprep.mubr.msk.f32.mxu0 %vm2038_vm3, %v10322_v16  ;;  %v4533_v29 = vpop.f32.mrf.mxu1 }
 0x310   :  { %v10326_v36 = vpop.eup %10325  ;;  %10351 = vrcp.f32 %v5411_v21  ;;  %v5410_v4 = vadd.f32 1.0, %v10324_v9  ;;  %v7683_v5 = vmul.f32 -1.442695, %v4539_v45  ;;  %v4534_v60 = vadd.f32 %v12515_v47, %v4533_v29 }
 0x311   :  { %v10328_v38 = vpop.eup %10327  ;;  %10353 = vpow2.f32 %v7680_v50  ;;  %9046 = vmatmul.mubr.msk.f32.gmra.mxu0 %vm2038_vm3, %v10318_v57  ;;  %v8881_v34 = vpop.f32.mrf.mxu1 }
 0x312   :  { %v10330_v62 = vpop.eup %10329  ;;  %10355 = vrcp.f32 %v5410_v4  ;;  %v5413_v40 = vadd.f32 1.0, %v10328_v38  ;;  %v7682_v37 = vmul.f32 -1.442695, %v4534_v60  ;;  %v4549_v11 = vadd.f32 %v8881_v34, %v12515_v47 }
 0x313   :  { %v10332_v28 = vpop.eup %10331  ;;  %10357 = vpow2.f32 %v7683_v5  ;;  %9048 = vmatprep.mubr.msk.f32.mxu0 %vm2038_vm3, %v10330_v62  ;;  %v4543_v20 = vpop.f32.mrf.mxu1 }
 0x314   :  { %v10334_v51 = vpop.eup %10333  ;;  %10359 = vrcp.f32 %v5413_v40  ;;  %v5412_v0 = vadd.f32 1.0, %v10332_v28  ;;  %v7685_v10 = vmul.f32 -1.442695, %v4549_v11  ;;  %v4544_v63 = vadd.f32 %v12515_v47, %v4543_v20 }
 0x315   :  { %v10336_v48 = vpop.eup %10335  ;;  %10361 = vpow2.f32 %v7682_v37  ;;  %9049 = vmatmul.mubr.msk.f32.gmra.mxu0 %vm2038_vm3, %v10326_v36  ;;  %v8884_v44 = vpop.f32.mrf.mxu1 }
 0x316   :  { %v10338_v15 = vpop.eup %10337  ;;  %10363 = vrcp.f32 %v5412_v0  ;;  %v5415_v52 = vadd.f32 1.0, %v10336_v48  ;;  %v7684_v61 = vmul.f32 -1.442695, %v4544_v63  ;;  %v4559_v55 = vadd.f32 %v8884_v44, %v12515_v47 }
 0x317   :  { %v10340_v49 = vpop.eup %10339  ;;  %10365 = vpow2.f32 %v7685_v10  ;;  %9051 = vmatprep.mubr.msk.f32.mxu0 %vm2038_vm3, %v10338_v15  ;;  %v4553_v12 = vpop.f32.mrf.mxu1 }
 0x318   :  { %v10342_v1 = vpop.eup %10341  ;;  %10367 = vrcp.f32 %v5415_v52  ;;  %v5414_v26 = vadd.f32 1.0, %v10340_v49  ;;  %v7687_v59 = vmul.f32 -1.442695, %v4559_v55  ;;  %v4554_v6 = vadd.f32 %v12515_v47, %v4553_v12 }
 0x319   :  { %v10344_v8 = vpop.eup %10343  ;;  %10369 = vpow2.f32 %v7684_v61  ;;  %9052 = vmatmul.mubr.msk.f32.gmra.mxu0 %vm2038_vm3, %v10334_v51  ;;  %v8887_v43 = vpop.f32.mrf.mxu1 }
 0x31a   :  { %v10346_v30 = vpop.eup %10345  ;;  %10371 = vrcp.f32 %v5414_v26  ;;  %v5417_v31 = vadd.f32 1.0, %v10344_v8  ;;  %v7686_v32 = vmul.f32 -1.442695, %v4554_v6  ;;  %v4569_v39 = vadd.f32 %v8887_v43, %v12515_v47 }
 0x31b   :  { %v10348_v27 = vpop.eup %10347  ;;  %10373 = vpow2.f32 %v7687_v59  ;;  %9054 = vmatprep.mubr.msk.f32.mxu0 %vm2038_vm3, %v10346_v30  ;;  %v4563_v18 = vpop.f32.mrf.mxu1 }
 0x31c   :  { %v10350_v13 = vpop.eup %10349  ;;  %10375 = vrcp.f32 %v5417_v31  ;;  %v5416_v53 = vadd.f32 1.0, %v10348_v27  ;;  %v7689_v24 = vmul.f32 -1.442695, %v4569_v39  ;;  %v4564_v58 = vadd.f32 %v12515_v47, %v4563_v18 }
 0x31d   :  { %v10352_v7 = vpop.eup %10351  ;;  %v5419_v33 = vadd.f32 1.0, %v10350_v13  ;;  %10377 = vpow2.f32 %v7686_v32  ;;  %9055 = vmatmul.mubr.msk.f32.gmra.mxu0 %vm2038_vm3, %v10342_v1  ;;  %v8890_v35 = vpop.f32.mrf.mxu1 }
 0x31e   :  { %v10354_v42 = vpop.eup %10353  ;;  %10379 = vrcp.f32 %v5416_v53  ;;  %v7688_v3 = vmul.f32 -1.442695, %v4564_v58  ;;  %v4579_v25 = vadd.f32 %v8890_v35, %v12515_v47 }
 0x31f   :  { %v10356_v19 = vpop.eup %10355  ;;  %10381 = vrcp.f32 %v5419_v33  ;;  %v5418_v56 = vadd.f32 1.0, %v10354_v42  ;;  %v4573_v17 = vpop.f32.mrf.mxu1 }
 0x320   :  { %v10358_v46 = vpop.eup %10357  ;;  %10383 = vpow2.f32 %v7689_v24  ;;  %v7691_v14 = vmul.f32 -1.442695, %v4579_v25  ;;  %9057 = vmatprep.mubr.msk.f32.mxu0 %vm2038_vm3, %v10356_v19  ;;  %v4574_v22 = vadd.f32 %v12515_v47, %v4573_v17 }
 0x321   :  { %v10360_v57 = vpop.eup %10359  ;;  %10385 = vrcp.f32 %v5418_v56  ;;  %v5421_v23 = vadd.f32 1.0, %v10358_v46  ;;  %9058 = vmatmul.mubr.msk.f32.gmra.mxu0 %vm2038_vm3, %v10352_v7  ;;  %v8893_v2 = vpop.f32.mrf.mxu1 }
 0x322   :  { %v10362_v41 = vpop.eup %10361  ;;  %10387 = vpow2.f32 %v7688_v3  ;;  %v7690_v54 = vmul.f32 -1.442695, %v4574_v22  ;;  %v4589_v16 = vadd.f32 %v8893_v2, %v12515_v47 }
 0x323   :  { %v10364_v21 = vpop.eup %10363  ;;  %10389 = vrcp.f32 %v5421_v23  ;;  %v5420_v50 = vadd.f32 1.0, %v10362_v41  ;;  %v4583_v45 = vpop.f32.mrf.mxu1 }
 0x324   :  { %v10366_v9 = vpop.eup %10365  ;;  %10391 = vpow2.f32 %v7691_v14  ;;  %v7693_v29 = vmul.f32 -1.442695, %v4589_v16  ;;  %9060 = vmatprep.mubr.msk.f32.mxu0 %vm2038_vm3, %v10364_v21  ;;  %v4584_v36 = vadd.f32 %v12515_v47, %v4583_v45  ;;  %v12711_v45 = vld [vmem:[%s13516_s6] ss:$0 sm:$0xff] }
 0x325   :  { %v10368_v4 = vpop.eup %10367  ;;  %10393 = vrcp.f32 %v5420_v50  ;;  %v5423_v5 = vadd.f32 1.0, %v10366_v9  ;;  %9061 = vmatmul.mubr.msk.f32.gmra.mxu0 %vm2038_vm3, %v10360_v57  ;;  %v8896_v60 = vpop.f32.mrf.mxu1 }
 0x326   :  { %v10370_v38 = vpop.eup %10369  ;;  %10395 = vpow2.f32 %v7690_v54  ;;  %v7692_v34 = vmul.f32 -1.442695, %v4584_v36  ;;  %v4599_v62 = vadd.f32 %v8896_v60, %v12515_v47 }
 0x327   :  { %v10372_v40 = vpop.eup %10371  ;;  %10397 = vrcp.f32 %v5423_v5  ;;  %v5422_v37 = vadd.f32 1.0, %v10370_v38  ;;  %v4593_v11 = vpop.f32.mrf.mxu1 }
 0x328   :  { %v10374_v28 = vpop.eup %10373  ;;  %10399 = vpow2.f32 %v7693_v29  ;;  %v7695_v20 = vmul.f32 -1.442695, %v4599_v62  ;;  %9063 = vmatprep.mubr.msk.f32.mxu0 %vm2038_vm3, %v10372_v40  ;;  %v4594_v51 = vadd.f32 %v12515_v47, %v4593_v11 }
 0x329   :  { %v10376_v0 = vpop.eup %10375  ;;  %10401 = vrcp.f32 %v5422_v37  ;;  %v5425_v10 = vadd.f32 1.0, %v10374_v28  ;;  %9064 = vmatmul.mubr.msk.f32.gmra.mxu0 %vm2038_vm3, %v10368_v4  ;;  %v8899_v63 = vpop.f32.mrf.mxu1 }
 0x32a   :  { %v10378_v48 = vpop.eup %10377  ;;  %10403 = vpow2.f32 %v7692_v34  ;;  %v7694_v44 = vmul.f32 -1.442695, %v4594_v51  ;;  %v4609_v15 = vadd.f32 %v8899_v63, %v12515_v47 }
 0x32b   :  { %v10380_v52 = vpop.eup %10379  ;;  %10405 = vrcp.f32 %v5425_v10  ;;  %v5424_v61 = vadd.f32 1.0, %v10378_v48  ;;  %v4603_v55 = vpop.f32.mrf.mxu1 }
 0x32c   :  { %v10382_v49 = vpop.eup %10381  ;;  %10407 = vpow2.f32 %v7695_v20  ;;  %v7697_v12 = vmul.f32 -1.442695, %v4609_v15  ;;  %9066 = vmatprep.mubr.msk.f32.mxu0 %vm2038_vm3, %v10380_v52  ;;  %v4604_v1 = vadd.f32 %v12515_v47, %v4603_v55 }
 0x32d   :  { %v10384_v26 = vpop.eup %10383  ;;  %10409 = vrcp.f32 %v5424_v61  ;;  %9067 = vmatmul.mubr.msk.f32.gmra.mxu0 %vm2038_vm3, %v10376_v0  ;;  %v8902_v59 = vpop.f32.mrf.mxu1 }
 0x32e   :  { %v10386_v6 = vpop.eup %10385  ;;  %v5427_v8 = vadd.f32 1.0, %v10384_v26  ;;  %10411 = vpow2.f32 %v7694_v44  ;;  %v7696_v43 = vmul.f32 -1.442695, %v4604_v1  ;;  %v4619_v30 = vadd.f32 %v8902_v59, %v12515_v47 }
 0x32f   :  { %v10388_v31 = vpop.eup %10387  ;;  %10413 = vpow2.f32 %v7697_v12  ;;  %9069 = vmatprep.mubr.msk.f32.mxu0 %vm2038_vm3, %v10386_v6  ;;  %v4613_v32 = vpop.f32.mrf.mxu1 }
 0x330   :  { %v10390_v39 = vpop.eup %10389  ;;  %10415 = vrcp.f32 %v5427_v8  ;;  %v5426_v27 = vadd.f32 1.0, %v10388_v31  ;;  %v7699_v18 = vmul.f32 -1.442695, %v4619_v30  ;;  %v4614_v13 = vadd.f32 %v12515_v47, %v4613_v32 }
 0x331   :  { %v10392_v53 = vpop.eup %10391  ;;  %10417 = vpow2.f32 %v7696_v43  ;;  %9070 = vmatmul.mubr.msk.f32.gmra.mxu0 %vm2038_vm3, %v10382_v49  ;;  %v8905_v24 = vpop.f32.mrf.mxu1 }
 0x332   :  { %v10394_v58 = vpop.eup %10393  ;;  %10419 = vrcp.f32 %v5426_v27  ;;  %v5429_v7 = vadd.f32 1.0, %v10392_v53  ;;  %v7698_v33 = vmul.f32 -1.442695, %v4614_v13  ;;  %v4629_v35 = vadd.f32 %v8905_v24, %v12515_v47 }
 0x333   :  { %v10396_v42 = vpop.eup %10395  ;;  %10421 = vpow2.f32 %v7699_v18  ;;  %9072 = vmatprep.mubr.msk.f32.mxu0 %vm2038_vm3, %v10394_v58  ;;  %v4623_v3 = vpop.f32.mrf.mxu1 }
 0x334   :  { %v10398_v25 = vpop.eup %10397  ;;  %10423 = vrcp.f32 %v5429_v7  ;;  %v5428_v19 = vadd.f32 1.0, %v10396_v42  ;;  %v7701_v56 = vmul.f32 -1.442695, %v4629_v35  ;;  %v4624_v17 = vadd.f32 %v12515_v47, %v4623_v3 }
 0x335   :  { %v10400_v46 = vpop.eup %10399  ;;  %10425 = vpow2.f32 %v7698_v33  ;;  %9073 = vmatmul.mubr.msk.f32.gmra.mxu0 %vm2038_vm3, %v10390_v39  ;;  %v8908_v14 = vpop.f32.mrf.mxu1 }
 0x336   :  { %v10402_v22 = vpop.eup %10401  ;;  %10427 = vrcp.f32 %v5428_v19  ;;  %v5431_v57 = vadd.f32 1.0, %v10400_v46  ;;  %v7700_v23 = vmul.f32 -1.442695, %v4624_v17  ;;  %v4639_v2 = vadd.f32 %v8908_v14, %v12515_v47 }
 0x337   :  { %v10404_v41 = vpop.eup %10403  ;;  %10429 = vpow2.f32 %v7701_v56  ;;  %9075 = vmatprep.mubr.msk.f32.mxu0 %vm2038_vm3, %v10402_v22  ;;  %v4633_v54 = vpop.f32.mrf.mxu1 }
 0x338   :  { %v10406_v16 = vpop.eup %10405  ;;  %10431 = vrcp.f32 %v5431_v57  ;;  %v5430_v21 = vadd.f32 1.0, %v10404_v41  ;;  %v7703_v50 = vmul.f32 -1.442695, %v4639_v2  ;;  %v4634_v9 = vadd.f32 %v12711_v45, %v4633_v54 }
 0x339   :  { %v10408_v29 = vpop.eup %10407  ;;  %10433 = vpow2.f32 %v7700_v23  ;;  %9076 = vmatmul.mubr.msk.f32.gmra.mxu0 %vm2038_vm3, %v10398_v25  ;;  %v8911_v47 = vpop.f32.mrf.mxu1 }
 0x33a   :  { %v10410_v36 = vpop.eup %10409  ;;  %10435 = vrcp.f32 %v5430_v21  ;;  %v5433_v4 = vadd.f32 1.0, %v10408_v29  ;;  %v7702_v5 = vmul.f32 -1.442695, %v4634_v9  ;;  %v4649_v60 = vadd.f32 %v12711_v45, %v8911_v47 }
 0x33b   :  { %v10412_v38 = vpop.eup %10411  ;;  %10437 = vpow2.f32 %v7703_v50  ;;  %9078 = vmatprep.mubr.msk.f32.mxu0 %vm2038_vm3, %v10410_v36  ;;  %v4643_v34 = vpop.f32.mrf.mxu1 }
 0x33c   :  { %v10414_v62 = vpop.eup %10413  ;;  %10439 = vrcp.f32 %v5433_v4  ;;  %v5432_v40 = vadd.f32 1.0, %v10412_v38  ;;  %v7705_v37 = vmul.f32 -1.442695, %v4649_v60  ;;  %v4644_v11 = vadd.f32 %v12711_v45, %v4643_v34 }
 0x33d   :  { %v10416_v28 = vpop.eup %10415  ;;  %v5435_v20 = vadd.f32 1.0, %v10414_v62  ;;  %10441 = vpow2.f32 %v7702_v5  ;;  %9079 = vmatmul.mubr.msk.f32.gmra.mxu0 %vm2038_vm3, %v10406_v16  ;;  %v8914_v51 = vpop.f32.mrf.mxu1 }
 0x33e   :  { %v10418_v0 = vpop.eup %10417  ;;  %10443 = vrcp.f32 %v5432_v40  ;;  %v7704_v10 = vmul.f32 -1.442695, %v4644_v11  ;;  %v4659_v63 = vadd.f32 %v12711_v45, %v8914_v51 }
 0x33f   :  { %v10420_v48 = vpop.eup %10419  ;;  %10445 = vrcp.f32 %v5435_v20  ;;  %v5434_v44 = vadd.f32 1.0, %v10418_v0  ;;  %v4653_v15 = vpop.f32.mrf.mxu1 }
 0x340   :  { %v10422_v52 = vpop.eup %10421  ;;  %10447 = vpow2.f32 %v7705_v37  ;;  %v7707_v61 = vmul.f32 -1.442695, %v4659_v63  ;;  %9081 = vmatprep.mubr.msk.f32.mxu0 %vm2038_vm3, %v10420_v48  ;;  %v4654_v55 = vadd.f32 %v12711_v45, %v4653_v15 }
 0x341   :  { %v10424_v49 = vpop.eup %10423  ;;  %10449 = vrcp.f32 %v5434_v44  ;;  %v5437_v12 = vadd.f32 1.0, %v10422_v52  ;;  %9082 = vmatmul.mubr.msk.f32.gmra.mxu0 %vm2038_vm3, %v10416_v28  ;;  %v8917_v1 = vpop.f32.mrf.mxu1 }
 0x342   :  { %v10426_v26 = vpop.eup %10425  ;;  %10451 = vpow2.f32 %v7704_v10  ;;  %v7706_v59 = vmul.f32 -1.442695, %v4654_v55  ;;  %v4669_v6 = vadd.f32 %v12711_v45, %v8917_v1 }
 0x343   :  { %v10428_v8 = vpop.eup %10427  ;;  %10453 = vrcp.f32 %v5437_v12  ;;  %v5436_v43 = vadd.f32 1.0, %v10426_v26  ;;  %v4663_v30 = vpop.f32.mrf.mxu1 }
 0x344   :  { %v10430_v31 = vpop.eup %10429  ;;  %10455 = vpow2.f32 %v7707_v61  ;;  %v7709_v32 = vmul.f32 -1.442695, %v4669_v6  ;;  %9084 = vmatprep.mubr.msk.f32.mxu0 %vm2038_vm3, %v10428_v8  ;;  %v4664_v39 = vadd.f32 %v12711_v45, %v4663_v30 }
 0x345   :  { %v10432_v27 = vpop.eup %10431  ;;  %10457 = vrcp.f32 %v5436_v43  ;;  %v5439_v18 = vadd.f32 1.0, %v10430_v31  ;;  %9085 = vmatmul.mubr.msk.f32.gmra.mxu0 %vm2038_vm3, %v10424_v49  ;;  %v8920_v13 = vpop.f32.mrf.mxu1 }
 0x346   :  { %v10434_v53 = vpop.eup %10433  ;;  %10459 = vpow2.f32 %v7706_v59  ;;  %v7708_v24 = vmul.f32 -1.442695, %v4664_v39  ;;  %v4679_v58 = vadd.f32 %v12711_v45, %v8920_v13 }
 0x347   :  { %v10436_v7 = vpop.eup %10435  ;;  %10461 = vrcp.f32 %v5439_v18  ;;  %v5438_v33 = vadd.f32 1.0, %v10434_v53  ;;  %v4673_v35 = vpop.f32.mrf.mxu1 }
 0x348   :  { %v10438_v42 = vpop.eup %10437  ;;  %10463 = vpow2.f32 %v7709_v32  ;;  %v7711_v3 = vmul.f32 -1.442695, %v4679_v58  ;;  %9087 = vmatprep.mubr.msk.f32.mxu0 %vm2038_vm3, %v10436_v7  ;;  %v4674_v25 = vadd.f32 %v12711_v45, %v4673_v35 }
 0x349   :  { %v10440_v19 = vpop.eup %10439  ;;  %10465 = vrcp.f32 %v5438_v33  ;;  %v5441_v56 = vadd.f32 1.0, %v10438_v42  ;;  %9088 = vmatmul.mubr.msk.f32.gmra.mxu0 %vm2038_vm3, %v10432_v27  ;;  %v8923_v17 = vpop.f32.mrf.mxu1 }
 0x34a   :  { %v10442_v46 = vpop.eup %10441  ;;  %10467 = vpow2.f32 %v7708_v24  ;;  %v7710_v14 = vmul.f32 -1.442695, %v4674_v25  ;;  %v4689_v22 = vadd.f32 %v12711_v45, %v8923_v17 }
 0x34b   :  { %v10444_v57 = vpop.eup %10443  ;;  %10469 = vrcp.f32 %v5441_v56  ;;  %v5440_v23 = vadd.f32 1.0, %v10442_v46  ;;  %v4683_v2 = vpop.f32.mrf.mxu1 }
 0x34c   :  { %v10446_v41 = vpop.eup %10445  ;;  %10471 = vpow2.f32 %v7711_v3  ;;  %v7713_v54 = vmul.f32 -1.442695, %v4689_v22  ;;  %9090 = vmatprep.mubr.msk.f32.mxu0 %vm2038_vm3, %v10444_v57  ;;  %v4684_v16 = vadd.f32 %v12711_v45, %v4683_v2 }
 0x34d   :  { %v10448_v21 = vpop.eup %10447  ;;  %10473 = vrcp.f32 %v5440_v23  ;;  %9091 = vmatmul.mubr.msk.f32.gmra.mxu0 %vm2038_vm3, %v10440_v19  ;;  %v8926_v50 = vpop.f32.mrf.mxu1 }
 0x34e   :  { %v10450_v9 = vpop.eup %10449  ;;  %v5443_v29 = vadd.f32 1.0, %v10448_v21  ;;  %10475 = vpow2.f32 %v7710_v14  ;;  %v7712_v47 = vmul.f32 -1.442695, %v4684_v16  ;;  %v4699_v36 = vadd.f32 %v12711_v45, %v8926_v50 }
 0x34f   :  { %v10452_v4 = vpop.eup %10451  ;;  %10477 = vpow2.f32 %v7713_v54  ;;  %9093 = vmatprep.mubr.msk.f32.mxu0 %vm2038_vm3, %v10450_v9  ;;  %v4693_v5 = vpop.f32.mrf.mxu1 }
 0x350   :  { %v10454_v60 = vpop.eup %10453  ;;  %10479 = vrcp.f32 %v5443_v29  ;;  %v5442_v38 = vadd.f32 1.0, %v10452_v4  ;;  %v7715_v34 = vmul.f32 -1.442695, %v4699_v36  ;;  %v4694_v62 = vadd.f32 %v12711_v45, %v4693_v5 }
 0x351   :  { %v10456_v40 = vpop.eup %10455  ;;  %10481 = vpow2.f32 %v7712_v47  ;;  %9094 = vmatmul.mubr.msk.f32.gmra.mxu0 %vm2038_vm3, %v10446_v41  ;;  %v8929_v37 = vpop.f32.mrf.mxu1 }
 0x352   :  { %v10458_v11 = vpop.eup %10457  ;;  %10483 = vrcp.f32 %v5442_v38  ;;  %v5445_v28 = vadd.f32 1.0, %v10456_v40  ;;  %v7714_v20 = vmul.f32 -1.442695, %v4694_v62  ;;  %v4709_v51 = vadd.f32 %v12711_v45, %v8929_v37 }
 0x353   :  { %v10460_v0 = vpop.eup %10459  ;;  %10485 = vpow2.f32 %v7715_v34  ;;  %9096 = vmatprep.mubr.msk.f32.mxu0 %vm2038_vm3, %v10458_v11  ;;  %v4703_v10 = vpop.f32.mrf.mxu1 }
 0x354   :  { %v10462_v63 = vpop.eup %10461  ;;  %10487 = vrcp.f32 %v5445_v28  ;;  %v5444_v48 = vadd.f32 1.0, %v10460_v0  ;;  %v7717_v44 = vmul.f32 -1.442695, %v4709_v51  ;;  %v4704_v15 = vadd.f32 %v12711_v45, %v4703_v10 }
 0x355   :  { %v10464_v52 = vpop.eup %10463  ;;  %10489 = vpow2.f32 %v7714_v20  ;;  %9097 = vmatmul.mubr.msk.f32.gmra.mxu0 %vm2038_vm3, %v10454_v60  ;;  %v8932_v61 = vpop.f32.mrf.mxu1 }
 0x356   :  { %v10466_v55 = vpop.eup %10465  ;;  %10491 = vrcp.f32 %v5444_v48  ;;  %v5447_v49 = vadd.f32 1.0, %v10464_v52  ;;  %v7716_v12 = vmul.f32 -1.442695, %v4704_v15  ;;  %v4719_v1 = vadd.f32 %v12711_v45, %v8932_v61 }
 0x357   :  { %v10468_v26 = vpop.eup %10467  ;;  %10493 = vpow2.f32 %v7717_v44  ;;  %9099 = vmatprep.mubr.msk.f32.mxu0 %vm2038_vm3, %v10466_v55  ;;  %v4713_v59 = vpop.f32.mrf.mxu1 }
 0x358   :  { %v10470_v6 = vpop.eup %10469  ;;  %10495 = vrcp.f32 %v5447_v49  ;;  %v5446_v8 = vadd.f32 1.0, %v10468_v26  ;;  %v7719_v43 = vmul.f32 -1.442695, %v4719_v1  ;;  %v4714_v30 = vadd.f32 %v12711_v45, %v4713_v59 }
 0x359   :  { %v10472_v31 = vpop.eup %10471  ;;  %10497 = vpow2.f32 %v7716_v12  ;;  %9100 = vmatmul.mubr.msk.f32.gmra.mxu0 %vm2038_vm3, %v10462_v63  ;;  %v8935_v32 = vpop.f32.mrf.mxu1 }
 0x35a   :  { %v10474_v39 = vpop.eup %10473  ;;  %10499 = vrcp.f32 %v5446_v8  ;;  %v5449_v27 = vadd.f32 1.0, %v10472_v31  ;;  %v7718_v18 = vmul.f32 -1.442695, %v4714_v30  ;;  %v4729_v13 = vadd.f32 %v12711_v45, %v8935_v32 }
 0x35b   :  { %v10476_v53 = vpop.eup %10475  ;;  %10501 = vpow2.f32 %v7719_v43  ;;  %9102 = vmatprep.mubr.msk.f32.mxu0 %vm2038_vm3, %v10474_v39  ;;  %v4723_v24 = vpop.f32.mrf.mxu1 }
 0x35c   :  { %v10478_v58 = vpop.eup %10477  ;;  %10503 = vrcp.f32 %v5449_v27  ;;  %v5448_v7 = vadd.f32 1.0, %v10476_v53  ;;  %v7721_v33 = vmul.f32 -1.442695, %v4729_v13  ;;  %v4724_v35 = vadd.f32 %v12711_v45, %v4723_v24 }
 0x35d   :  { %v10480_v42 = vpop.eup %10479  ;;  %v5451_v3 = vadd.f32 1.0, %v10478_v58  ;;  %10505 = vpow2.f32 %v7718_v18  ;;  %9103 = vmatmul.mubr.msk.f32.gmra.mxu0 %vm2038_vm3, %v10470_v6  ;;  %v8938_v25 = vpop.f32.mrf.mxu1 }
 0x35e   :  { %v10482_v19 = vpop.eup %10481  ;;  %10507 = vrcp.f32 %v5448_v7  ;;  %v7720_v56 = vmul.f32 -1.442695, %v4724_v35  ;;  %v4739_v17 = vadd.f32 %v12711_v45, %v8938_v25 }
 0x35f   :  { %v10484_v46 = vpop.eup %10483  ;;  %10509 = vrcp.f32 %v5451_v3  ;;  %v5450_v14 = vadd.f32 1.0, %v10482_v19  ;;  %v4733_v22 = vpop.f32.mrf.mxu1 }
 0x360   :  { %v10486_v57 = vpop.eup %10485  ;;  %10511 = vpow2.f32 %v7721_v33  ;;  %v7723_v23 = vmul.f32 -1.442695, %v4739_v17  ;;  %9105 = vmatprep.mubr.msk.f32.mxu0 %vm2038_vm3, %v10484_v46  ;;  %v4734_v2 = vadd.f32 %v12711_v45, %v4733_v22 }
 0x361   :  { %v10488_v41 = vpop.eup %10487  ;;  %10513 = vrcp.f32 %v5450_v14  ;;  %v5453_v54 = vadd.f32 1.0, %v10486_v57  ;;  %9106 = vmatmul.mubr.msk.f32.gmra.mxu0 %vm2038_vm3, %v10480_v42  ;;  %v8941_v16 = vpop.f32.mrf.mxu1 }
 0x362   :  { %v10490_v21 = vpop.eup %10489  ;;  %10515 = vpow2.f32 %v7720_v56  ;;  %v7722_v50 = vmul.f32 -1.442695, %v4734_v2  ;;  %v4749_v9 = vadd.f32 %v12711_v45, %v8941_v16 }
 0x363   :  { %v10492_v29 = vpop.eup %10491  ;;  %10517 = vrcp.f32 %v5453_v54  ;;  %v5452_v47 = vadd.f32 1.0, %v10490_v21  ;;  %v4743_v36 = vpop.f32.mrf.mxu1 }
 0x364   :  { %v10494_v4 = vpop.eup %10493  ;;  %10519 = vpow2.f32 %v7723_v23  ;;  %v7725_v5 = vmul.f32 -1.442695, %v4749_v9  ;;  %9108 = vmatprep.mubr.msk.f32.mxu0 %vm2038_vm3, %v10492_v29  ;;  %v4744_v60 = vadd.f32 %v12711_v45, %v4743_v36 }
 0x365   :  { %v10496_v38 = vpop.eup %10495  ;;  %10521 = vrcp.f32 %v5452_v47  ;;  %v5455_v34 = vadd.f32 1.0, %v10494_v4  ;;  %9109 = vmatmul.mubr.msk.f32.gmra.mxu0 %vm2038_vm3, %v10488_v41  ;;  %v8944_v62 = vpop.f32.mrf.mxu1 }
 0x366   :  { %v10498_v40 = vpop.eup %10497  ;;  %10523 = vpow2.f32 %v7722_v50  ;;  %v7724_v37 = vmul.f32 -1.442695, %v4744_v60  ;;  %v4759_v11 = vadd.f32 %v12711_v45, %v8944_v62 }
 0x367   :  { %v10500_v28 = vpop.eup %10499  ;;  %10525 = vrcp.f32 %v5455_v34  ;;  %v5454_v20 = vadd.f32 1.0, %v10498_v40  ;;  %v4753_v51 = vpop.f32.mrf.mxu1 }
 0x368   :  { %v10502_v0 = vpop.eup %10501  ;;  %10527 = vpow2.f32 %v7725_v5  ;;  %v7727_v10 = vmul.f32 -1.442695, %v4759_v11  ;;  %9111 = vmatprep.mubr.msk.f32.mxu0 %vm2038_vm3, %v10500_v28  ;;  %v4754_v63 = vadd.f32 %v12711_v45, %v4753_v51 }
 0x369   :  { %v10504_v48 = vpop.eup %10503  ;;  %10529 = vrcp.f32 %v5454_v20  ;;  %v5457_v44 = vadd.f32 1.0, %v10502_v0  ;;  %9112 = vmatmul.mubr.msk.f32.gmra.mxu0 %vm2038_vm3, %v10496_v38  ;;  %v8947_v15 = vpop.f32.mrf.mxu1 }
 0x36a   :  { %v10506_v52 = vpop.eup %10505  ;;  %10531 = vpow2.f32 %v7724_v37  ;;  %v7726_v61 = vmul.f32 -1.442695, %v4754_v63  ;;  %v4769_v55 = vadd.f32 %v12711_v45, %v8947_v15 }
 0x36b   :  { %v10508_v49 = vpop.eup %10507  ;;  %10533 = vrcp.f32 %v5457_v44  ;;  %v5456_v12 = vadd.f32 1.0, %v10506_v52  ;;  %v4763_v1 = vpop.f32.mrf.mxu1 }
 0x36c   :  { %v10510_v26 = vpop.eup %10509  ;;  %10535 = vpow2.f32 %v7727_v10  ;;  %v7729_v59 = vmul.f32 -1.442695, %v4769_v55  ;;  %9114 = vmatprep.mubr.msk.f32.mxu0 %vm2038_vm3, %v10508_v49  ;;  %v4764_v6 = vadd.f32 %v12711_v45, %v4763_v1 }
 0x36d   :  { %v10512_v8 = vpop.eup %10511  ;;  %10537 = vrcp.f32 %v5456_v12  ;;  %9115 = vmatmul.mubr.msk.f32.gmra.mxu0 %vm2038_vm3, %v10504_v48  ;;  %v8950_v43 = vpop.f32.mrf.mxu1 }
 0x36e   :  { %v10514_v30 = vpop.eup %10513  ;;  %v5459_v31 = vadd.f32 1.0, %v10512_v8  ;;  %10539 = vpow2.f32 %v7726_v61  ;;  %v7728_v32 = vmul.f32 -1.442695, %v4764_v6  ;;  %v4779_v39 = vadd.f32 %v12711_v45, %v8950_v43 }
 0x36f   :  { %v10516_v27 = vpop.eup %10515  ;;  %10541 = vpow2.f32 %v7729_v59  ;;  %9117 = vmatprep.mubr.msk.f32.mxu0 %vm2038_vm3, %v10514_v30  ;;  %v4773_v18 = vpop.f32.mrf.mxu1 }
 0x370   :  { %v10518_v13 = vpop.eup %10517  ;;  %10543 = vrcp.f32 %v5459_v31  ;;  %v5458_v53 = vadd.f32 1.0, %v10516_v27  ;;  %v7731_v24 = vmul.f32 -1.442695, %v4779_v39  ;;  %v4774_v58 = vadd.f32 %v12711_v45, %v4773_v18 }
 0x371   :  { %v10520_v7 = vpop.eup %10519  ;;  %10545 = vpow2.f32 %v7728_v32  ;;  %9118 = vmatmul.mubr.msk.f32.gmra.mxu0 %vm2038_vm3, %v10510_v26  ;;  %v8953_v33 = vpop.f32.mrf.mxu1 }
 0x372   :  { %v10522_v35 = vpop.eup %10521  ;;  %10547 = vrcp.f32 %v5458_v53  ;;  %v5461_v42 = vadd.f32 1.0, %v10520_v7  ;;  %v7730_v3 = vmul.f32 -1.442695, %v4774_v58  ;;  %v4789_v25 = vadd.f32 %v12711_v45, %v8953_v33 }
 0x373   :  { %v10524_v19 = vpop.eup %10523  ;;  %10549 = vpow2.f32 %v7731_v24  ;;  %9120 = vmatprep.mubr.msk.f32.mxu0 %vm2038_vm3, %v10522_v35  ;;  %v4783_v56 = vpop.f32.mrf.mxu1 }
 0x374   :  { %v10526_v17 = vpop.eup %10525  ;;  %10551 = vrcp.f32 %v5461_v42  ;;  %v5460_v46 = vadd.f32 1.0, %v10524_v19  ;;  %v7733_v14 = vmul.f32 -1.442695, %v4789_v25  ;;  %v4784_v22 = vadd.f32 %v12711_v45, %v4783_v56 }
 0x375   :  { %v10528_v57 = vpop.eup %10527  ;;  %10553 = vpow2.f32 %v7730_v3  ;;  %9121 = vmatmul.mubr.msk.f32.gmra.mxu0 %vm2038_vm3, %v10518_v13  ;;  %v8956_v23 = vpop.f32.mrf.mxu1 }
 0x376   :  { %v10530_v2 = vpop.eup %10529  ;;  %10555 = vrcp.f32 %v5460_v46  ;;  %v5463_v41 = vadd.f32 1.0, %v10528_v57  ;;  %v7732_v54 = vmul.f32 -1.442695, %v4784_v22  ;;  %v4799_v16 = vadd.f32 %v12711_v45, %v8956_v23 }
 0x377   :  { %v10532_v21 = vpop.eup %10531  ;;  %10557 = vpow2.f32 %v7733_v14  ;;  %9123 = vmatprep.mubr.msk.f32.mxu0 %vm2038_vm3, %v10530_v2  ;;  %v4793_v50 = vpop.f32.mrf.mxu1 }
 0x378   :  { %v10534_v9 = vpop.eup %10533  ;;  %10559 = vrcp.f32 %v5463_v41  ;;  %v5462_v29 = vadd.f32 1.0, %v10532_v21  ;;  %v7735_v47 = vmul.f32 -1.442695, %v4799_v16  ;;  %v4794_v36 = vadd.f32 %v12711_v45, %v4793_v50 }
 0x379   :  { %v10536_v4 = vpop.eup %10535  ;;  %10561 = vpow2.f32 %v7732_v54  ;;  %9124 = vmatmul.mubr.msk.f32.gmra.mxu0 %vm2038_vm3, %v10526_v17  ;;  %v8959_v5 = vpop.f32.mrf.mxu1 }
 0x37a   :  { %v10538_v60 = vpop.eup %10537  ;;  %10563 = vrcp.f32 %v5462_v29  ;;  %v5465_v38 = vadd.f32 1.0, %v10536_v4  ;;  %v7734_v34 = vmul.f32 -1.442695, %v4794_v36  ;;  %v4809_v62 = vadd.f32 %v12711_v45, %v8959_v5 }
 0x37b   :  { %v10540_v40 = vpop.eup %10539  ;;  %10565 = vpow2.f32 %v7735_v47  ;;  %9126 = vmatprep.mubr.msk.f32.mxu0 %vm2038_vm3, %v10538_v60  ;;  %v4803_v37 = vpop.f32.mrf.mxu1 }
 0x37c   :  { %v10542_v11 = vpop.eup %10541  ;;  %10567 = vrcp.f32 %v5465_v38  ;;  %v5464_v28 = vadd.f32 1.0, %v10540_v40  ;;  %v7737_v20 = vmul.f32 -1.442695, %v4809_v62  ;;  %v4804_v51 = vadd.f32 %v12711_v45, %v4803_v37 }
 0x37d   :  { %v10544_v0 = vpop.eup %10543  ;;  %v5467_v10 = vadd.f32 1.0, %v10542_v11  ;;  %10569 = vpow2.f32 %v7734_v34  ;;  %9127 = vmatmul.mubr.msk.f32.gmra.mxu0 %vm2038_vm3, %v10534_v9  ;;  %v8962_v63 = vpop.f32.mrf.mxu1 }
 0x37e   :  { %v10546_v48 = vpop.eup %10545  ;;  %10571 = vrcp.f32 %v5464_v28  ;;  %v7736_v44 = vmul.f32 -1.442695, %v4804_v51  ;;  %v4819_v15 = vadd.f32 %v12711_v45, %v8962_v63 }
 0x37f   :  { %v10548_v52 = vpop.eup %10547  ;;  %10573 = vrcp.f32 %v5467_v10  ;;  %v5466_v61 = vadd.f32 1.0, %v10546_v48  ;;  %v4813_v55 = vpop.f32.mrf.mxu1 }
 0x380   :  { %v10550_v49 = vpop.eup %10549  ;;  %10575 = vpow2.f32 %v7737_v20  ;;  %v7739_v12 = vmul.f32 -1.442695, %v4819_v15  ;;  %9129 = vmatprep.mubr.msk.f32.mxu0 %vm2038_vm3, %v10548_v52  ;;  %v4814_v1 = vadd.f32 %v12711_v45, %v4813_v55 }
 0x381   :  { %v10552_v26 = vpop.eup %10551  ;;  %10577 = vrcp.f32 %v5466_v61  ;;  %v5469_v59 = vadd.f32 1.0, %v10550_v49  ;;  %9130 = vmatmul.mubr.msk.f32.gmra.mxu0 %vm2038_vm3, %v10544_v0  ;;  %v8965_v6 = vpop.f32.mrf.mxu1 }
 0x382   :  { %v10554_v8 = vpop.eup %10553  ;;  %10579 = vpow2.f32 %v7736_v44  ;;  %v7738_v43 = vmul.f32 -1.442695, %v4814_v1  ;;  %v4829_v30 = vadd.f32 %v12711_v45, %v8965_v6 }
 0x383   :  { %v10556_v31 = vpop.eup %10555  ;;  %10581 = vrcp.f32 %v5469_v59  ;;  %v5468_v32 = vadd.f32 1.0, %v10554_v8  ;;  %v4823_v39 = vpop.f32.mrf.mxu1 }
 0x384   :  { %v10558_v27 = vpop.eup %10557  ;;  %10583 = vpow2.f32 %v7739_v12  ;;  %v7741_v18 = vmul.f32 -1.442695, %v4829_v30  ;;  %9132 = vmatprep.mubr.msk.f32.mxu0 %vm2038_vm3, %v10556_v31  ;;  %v4824_v13 = vadd.f32 %v12711_v45, %v4823_v39 }
 0x385   :  { %v10560_v53 = vpop.eup %10559  ;;  %10585 = vrcp.f32 %v5468_v32  ;;  %v5471_v24 = vadd.f32 1.0, %v10558_v27  ;;  %9133 = vmatmul.mubr.msk.f32.gmra.mxu0 %vm2038_vm3, %v10552_v26  ;;  %v8968_v58 = vpop.f32.mrf.mxu1 }
 0x386   :  { %v10562_v7 = vpop.eup %10561  ;;  %10587 = vpow2.f32 %v7738_v43  ;;  %v7740_v33 = vmul.f32 -1.442695, %v4824_v13  ;;  %v4839_v35 = vadd.f32 %v12711_v45, %v8968_v58 }
 0x387   :  { %v10564_v42 = vpop.eup %10563  ;;  %10589 = vrcp.f32 %v5471_v24  ;;  %v5470_v3 = vadd.f32 1.0, %v10562_v7  ;;  %v4833_v25 = vpop.f32.mrf.mxu1 }
 0x388   :  { %v10566_v19 = vpop.eup %10565  ;;  %10591 = vpow2.f32 %v7741_v18  ;;  %v7743_v56 = vmul.f32 -1.442695, %v4839_v35  ;;  %9135 = vmatprep.mubr.msk.f32.mxu0 %vm2038_vm3, %v10564_v42  ;;  %v4834_v17 = vadd.f32 %v12711_v45, %v4833_v25 }
 0x389   :  { %v10568_v46 = vpop.eup %10567  ;;  %10593 = vrcp.f32 %v5470_v3  ;;  %v5473_v14 = vadd.f32 1.0, %v10566_v19  ;;  %9136 = vmatmul.mubr.msk.f32.gmra.mxu0 %vm2038_vm3, %v10560_v53  ;;  %v8971_v22 = vpop.f32.mrf.mxu1 }
 0x38a   :  { %v10570_v57 = vpop.eup %10569  ;;  %10595 = vpow2.f32 %v7740_v33  ;;  %v7742_v23 = vmul.f32 -1.442695, %v4834_v17  ;;  %v4849_v2 = vadd.f32 %v12711_v45, %v8971_v22 }
 0x38b   :  { %v10572_v41 = vpop.eup %10571  ;;  %10597 = vrcp.f32 %v5473_v14  ;;  %v5472_v54 = vadd.f32 1.0, %v10570_v57  ;;  %v4843_v16 = vpop.f32.mrf.mxu1 }
 0x38c   :  { %v10574_v21 = vpop.eup %10573  ;;  %10599 = vpow2.f32 %v7743_v56  ;;  %v7745_v50 = vmul.f32 -1.442695, %v4849_v2  ;;  %9138 = vmatprep.mubr.msk.f32.mxu0 %vm2038_vm3, %v10572_v41  ;;  %v4844_v9 = vadd.f32 %v12711_v45, %v4843_v16 }
 0x38d   :  { %v10576_v29 = vpop.eup %10575  ;;  %10601 = vrcp.f32 %v5472_v54  ;;  %9139 = vmatmul.mubr.msk.f32.gmra.mxu0 %vm2038_vm3, %v10568_v46  ;;  %v8974_v47 = vpop.f32.mrf.mxu1 }
 0x38e   :  { %v10578_v36 = vpop.eup %10577  ;;  %v5475_v4 = vadd.f32 1.0, %v10576_v29  ;;  %10603 = vpow2.f32 %v7742_v23  ;;  %v7744_v5 = vmul.f32 -1.442695, %v4844_v9  ;;  %v4859_v60 = vadd.f32 %v12711_v45, %v8974_v47 }
 0x38f   :  { %v10580_v38 = vpop.eup %10579  ;;  %10605 = vpow2.f32 %v7745_v50  ;;  %9141 = vmatprep.mubr.msk.f32.mxu0 %vm2038_vm3, %v10578_v36  ;;  %v4853_v34 = vpop.f32.mrf.mxu1 }
 0x390   :  { %v10582_v62 = vpop.eup %10581  ;;  %10607 = vrcp.f32 %v5475_v4  ;;  %v5474_v40 = vadd.f32 1.0, %v10580_v38  ;;  %v7747_v37 = vmul.f32 -1.442695, %v4859_v60  ;;  %v4854_v11 = vadd.f32 %v12711_v45, %v4853_v34 }
 0x391   :  { %v10584_v28 = vpop.eup %10583  ;;  %10609 = vpow2.f32 %v7744_v5  ;;  %9142 = vmatmul.mubr.msk.f32.gmra.mxu0 %vm2038_vm3, %v10574_v21  ;;  %v8977_v20 = vpop.f32.mrf.mxu1 }
 0x392   :  { %v10586_v51 = vpop.eup %10585  ;;  %10611 = vrcp.f32 %v5474_v40  ;;  %v5477_v0 = vadd.f32 1.0, %v10584_v28  ;;  %v7746_v10 = vmul.f32 -1.442695, %v4854_v11  ;;  %v4869_v63 = vadd.f32 %v12711_v45, %v8977_v20 }
 0x393   :  { %v10588_v48 = vpop.eup %10587  ;;  %10613 = vpow2.f32 %v7747_v37  ;;  %9144 = vmatprep.mubr.msk.f32.mxu0 %vm2038_vm3, %v10586_v51  ;;  %v4863_v44 = vpop.f32.mrf.mxu1 }
 0x394   :  { %v10590_v15 = vpop.eup %10589  ;;  %10615 = vrcp.f32 %v5477_v0  ;;  %v5476_v52 = vadd.f32 1.0, %v10588_v48  ;;  %v7749_v61 = vmul.f32 -1.442695, %v4869_v63  ;;  %v4864_v55 = vadd.f32 %v12711_v45, %v4863_v44 }
 0x395   :  { %v10592_v49 = vpop.eup %10591  ;;  %10617 = vpow2.f32 %v7746_v10  ;;  %9145 = vmatmul.mubr.msk.f32.gmra.mxu0 %vm2038_vm3, %v10582_v62  ;;  %v8980_v12 = vpop.f32.mrf.mxu1 }
 0x396   :  { %v10594_v1 = vpop.eup %10593  ;;  %10619 = vrcp.f32 %v5476_v52  ;;  %v5479_v26 = vadd.f32 1.0, %v10592_v49  ;;  %v7748_v59 = vmul.f32 -1.442695, %v4864_v55  ;;  %v4879_v6 = vadd.f32 %v12711_v45, %v8980_v12 }
 0x397   :  { %v10596_v8 = vpop.eup %10595  ;;  %10621 = vpow2.f32 %v7749_v61  ;;  %9147 = vmatprep.mubr.msk.f32.mxu0 %vm2038_vm3, %v10594_v1  ;;  %v4873_v43 = vpop.f32.mrf.mxu1  ;;  %v12830_v1 = vld [vmem:[%s13516_s6] ss:$0 sm:$0xff] }
 0x398   :  { %v10598_v30 = vpop.eup %10597  ;;  %10623 = vrcp.f32 %v5479_v26  ;;  %v5478_v31 = vadd.f32 1.0, %v10596_v8  ;;  %v7751_v32 = vmul.f32 -1.442695, %v4879_v6  ;;  %v4874_v39 = vadd.f32 %v12711_v45, %v4873_v43 }
 0x399   :  { %v10600_v27 = vpop.eup %10599  ;;  %10625 = vpow2.f32 %v7748_v59  ;;  %9148 = vmatmul.mubr.msk.f32.gmra.mxu0 %vm2038_vm3, %v10590_v15  ;;  %v8983_v18 = vpop.f32.mrf.mxu1 }
 0x39a   :  { %v10602_v13 = vpop.eup %10601  ;;  %10627 = vrcp.f32 %v5478_v31  ;;  %v5481_v53 = vadd.f32 1.0, %v10600_v27  ;;  %v7750_v24 = vmul.f32 -1.442695, %v4874_v39  ;;  %v4889_v58 = vadd.f32 %v12711_v45, %v8983_v18 }
 0x39b   :  { %v10604_v7 = vpop.eup %10603  ;;  %10629 = vpow2.f32 %v7751_v32  ;;  %9150 = vmatprep.mubr.msk.f32.mxu0 %vm2038_vm3, %v10602_v13  ;;  %v4883_v33 = vpop.f32.mrf.mxu1 }
 0x39c   :  { %v10606_v35 = vpop.eup %10605  ;;  %10631 = vrcp.f32 %v5481_v53  ;;  %v5480_v42 = vadd.f32 1.0, %v10604_v7  ;;  %v7753_v3 = vmul.f32 -1.442695, %v4889_v58  ;;  %v4884_v25 = vadd.f32 %v12711_v45, %v4883_v33  ;;  %v12840_v53 = vld [vmem:[%s13517_s8] ss:$0 sm:$0xff] }
 0x39d   :  { %v10608_v19 = vpop.eup %10607  ;;  %v5483_v56 = vadd.f32 1.0, %v10606_v35  ;;  %10633 = vpow2.f32 %v7750_v24  ;;  %9151 = vmatmul.mubr.msk.f32.gmra.mxu0 %vm2038_vm3, %v10598_v30  ;;  %v8986_v17 = vpop.f32.mrf.mxu1 }
 0x39e   :  { %v10610_v46 = vpop.eup %10609  ;;  %10635 = vrcp.f32 %v5480_v42  ;;  %v7752_v14 = vmul.f32 -1.442695, %v4884_v25  ;;  %v4899_v22 = vadd.f32 %v12711_v45, %v8986_v17 }
 0x39f   :  { %v10612_v57 = vpop.eup %10611  ;;  %10637 = vrcp.f32 %v5483_v56  ;;  %v5482_v23 = vadd.f32 1.0, %v10610_v46  ;;  %v4893_v2 = vpop.f32.mrf.mxu1 }
 0x3a0   :  { %v10614_v41 = vpop.eup %10613  ;;  %10639 = vpow2.f32 %v7753_v3  ;;  %v7755_v54 = vmul.f32 -1.442695, %v4899_v22  ;;  %9153 = vmatprep.mubr.msk.f32.mxu0 %vm2038_vm3, %v10612_v57  ;;  %v4894_v16 = vadd.f32 %v12711_v45, %v4893_v2 }
 0x3a1   :  { %v10616_v21 = vpop.eup %10615  ;;  %10641 = vrcp.f32 %v5482_v23  ;;  %v5485_v50 = vadd.f32 1.0, %v10614_v41  ;;  %9154 = vmatmul.mubr.msk.f32.gmra.mxu0 %vm2038_vm3, %v10608_v19  ;;  %v8989_v9 = vpop.f32.mrf.mxu1 }
 0x3a2   :  { %v10618_v29 = vpop.eup %10617  ;;  %10643 = vpow2.f32 %v7752_v14  ;;  %v7754_v47 = vmul.f32 -1.442695, %v4894_v16  ;;  %v4909_v36 = vadd.f32 %v12711_v45, %v8989_v9 }
 0x3a3   :  { %v10620_v4 = vpop.eup %10619  ;;  %10645 = vrcp.f32 %v5485_v50  ;;  %v5484_v5 = vadd.f32 1.0, %v10618_v29  ;;  %v4903_v60 = vpop.f32.mrf.mxu1 }
 0x3a4   :  { %v10622_v38 = vpop.eup %10621  ;;  %10647 = vpow2.f32 %v7755_v54  ;;  %v7757_v34 = vmul.f32 -1.442695, %v4909_v36  ;;  %9156 = vmatprep.mubr.msk.f32.mxu0 %vm2038_vm3, %v10620_v4  ;;  %v4904_v62 = vadd.f32 %v12711_v45, %v4903_v60 }
 0x3a5   :  { %v10624_v40 = vpop.eup %10623  ;;  %10649 = vrcp.f32 %v5484_v5  ;;  %v5487_v37 = vadd.f32 1.0, %v10622_v38  ;;  %9157 = vmatmul.mubr.msk.f32.gmra.mxu0 %vm2038_vm3, %v10616_v21  ;;  %v8992_v11 = vpop.f32.mrf.mxu1 }
 0x3a6   :  { %v10626_v28 = vpop.eup %10625  ;;  %10651 = vpow2.f32 %v7754_v47  ;;  %v7756_v20 = vmul.f32 -1.442695, %v4904_v62  ;;  %v4919_v51 = vadd.f32 %v12711_v45, %v8992_v11 }
 0x3a7   :  { %v10628_v0 = vpop.eup %10627  ;;  %10653 = vrcp.f32 %v5487_v37  ;;  %v5486_v10 = vadd.f32 1.0, %v10626_v28  ;;  %v4913_v63 = vpop.f32.mrf.mxu1 }
 0x3a8   :  { %v10630_v48 = vpop.eup %10629  ;;  %10655 = vpow2.f32 %v7757_v34  ;;  %v7759_v44 = vmul.f32 -1.442695, %v4919_v51  ;;  %9159 = vmatprep.mubr.msk.f32.mxu0 %vm2038_vm3, %v10628_v0  ;;  %v4914_v15 = vadd.f32 %v12711_v45, %v4913_v63 }
 0x3a9   :  { %v10632_v52 = vpop.eup %10631  ;;  %10657 = vrcp.f32 %v5486_v10  ;;  %v5489_v61 = vadd.f32 1.0, %v10630_v48  ;;  %9160 = vmatmul.mubr.msk.f32.gmra.mxu0 %vm2038_vm3, %v10624_v40  ;;  %v8995_v55 = vpop.f32.mrf.mxu1 }
 0x3aa   :  { %v10634_v49 = vpop.eup %10633  ;;  %10659 = vpow2.f32 %v7756_v20  ;;  %v7758_v12 = vmul.f32 -1.442695, %v4914_v15  ;;  %v4929_v26 = vadd.f32 %v12830_v1, %v8995_v55 }
 0x3ab   :  { %v10636_v59 = vpop.eup %10635  ;;  %10661 = vrcp.f32 %v5489_v61  ;;  %v5488_v6 = vadd.f32 1.0, %v10634_v49  ;;  %v4923_v45 = vpop.f32.mrf.mxu1 }
 0x3ac   :  { %v10638_v8 = vpop.eup %10637  ;;  %10663 = vpow2.f32 %v7759_v44  ;;  %v7761_v43 = vmul.f32 -1.442695, %v4929_v26  ;;  %9162 = vmatprep.mubr.msk.f32.mxu0 %vm2038_vm3, %v10636_v59  ;;  %v4924_v30 = vadd.f32 %v12830_v1, %v4923_v45 }
 0x3ad   :  { %v10640_v31 = vpop.eup %10639  ;;  %10665 = vrcp.f32 %v5488_v6  ;;  %9163 = vmatmul.mubr.msk.f32.gmra.mxu0 %vm2038_vm3, %v10632_v52  ;;  %v8998_v32 = vpop.f32.mrf.mxu1 }
 0x3ae   :  { %v10642_v39 = vpop.eup %10641  ;;  %v5491_v27 = vadd.f32 1.0, %v10640_v31  ;;  %10667 = vpow2.f32 %v7758_v12  ;;  %v7760_v18 = vmul.f32 -1.442695, %v4924_v30  ;;  %v4939_v13 = vadd.f32 %v12830_v1, %v8998_v32 }
 0x3af   :  { %v10644_v24 = vpop.eup %10643  ;;  %10669 = vpow2.f32 %v7761_v43  ;;  %9165 = vmatprep.mubr.msk.f32.mxu0 %vm2038_vm3, %v10642_v39  ;;  %v4933_v58 = vpop.f32.mrf.mxu1 }
 0x3b0   :  { %v10646_v7 = vpop.eup %10645  ;;  %10671 = vrcp.f32 %v5491_v27  ;;  %v5490_v33 = vadd.f32 1.0, %v10644_v24  ;;  %v7763_v35 = vmul.f32 -1.442695, %v4939_v13  ;;  %v4934_v42 = vadd.f32 %v12830_v1, %v4933_v58  ;;  %v9023_v3 = vpop.f32.mrf.mxu0 }
 0x3b1   :  { %v10648_v25 = vpop.eup %10647  ;;  %10673 = vpow2.f32 %v7760_v18  ;;  %v6238_v19 = vadd.f32 %v9023_v3, %v12840_v53  ;;  %9166 = vmatmul.mubr.msk.f32.gmra.mxu0 %vm2038_vm3, %v10638_v8  ;;  %v9001_v56 = vpop.f32.mrf.mxu1 }
 0x3b2   :  { %v10650_v17 = vpop.eup %10649  ;;  %10675 = vrcp.f32 %v5490_v33  ;;  %v5493_v46 = vadd.f32 1.0, %v10648_v25  ;;  %v7762_v14 = vmul.f32 -1.442695, %v4934_v42  ;;  %v4949_v22 = vadd.f32 %v12830_v1, %v9001_v56  ;;  %v6232_v57 = vpop.f32.mrf.mxu0 }
 0x3b3   :  { %v10652_v23 = vpop.eup %10651  ;;  %10677 = vpow2.f32 %v7763_v35  ;;  %6872 = vst.msk [vmem:[%s13518_s9 + $0x8] sm:$0xff] %vm171_vm0, %v6238_v19  ;;  %v6233_v2 = vadd.f32 %v12840_v53, %v6232_v57  ;;  %9168 = vmatprep.mubr.msk.f32.mxu0 %vm2038_vm3, %v10650_v17  ;;  %v4943_v41 = vpop.f32.mrf.mxu1 }
 0x3b4   :  { %v10654_v54 = vpop.eup %10653  ;;  %10679 = vrcp.f32 %v5493_v46  ;;  %v5492_v16 = vadd.f32 1.0, %v10652_v23  ;;  %v7765_v21 = vmul.f32 -1.442695, %v4949_v22  ;;  %v4944_v50 = vadd.f32 %v12830_v1, %v4943_v41  ;;  %v9026_v9 = vpop.f32.mrf.mxu0 }
 0x3b5   :  { %v10656_v29 = vpop.eup %10655  ;;  %10681 = vpow2.f32 %v7762_v14  ;;  %6871 = vst.msk [vmem:[%s13518_s9] sm:$0xff] %vm171_vm0, %v6233_v2  ;;  %v6248_v47 = vadd.f32 %v9026_v9, %v12840_v53  ;;  %9169 = vmatmul.mubr.msk.f32.gmra.mxu0 %vm2038_vm3, %v10646_v7  ;;  %v9004_v36 = vpop.f32.mrf.mxu1 }
 0x3b6   :  { %v10658_v4 = vpop.eup %10657  ;;  %10683 = vrcp.f32 %v5492_v16  ;;  %v5495_v5 = vadd.f32 1.0, %v10656_v29  ;;  %v7764_v60 = vmul.f32 -1.442695, %v4944_v50  ;;  %v4959_v38 = vadd.f32 %v12830_v1, %v9004_v36  ;;  %v6242_v34 = vpop.f32.mrf.mxu0 }
 0x3b7   :  { %v10660_v62 = vpop.eup %10659  ;;  %10685 = vpow2.f32 %v7765_v21  ;;  %6874 = vst.msk [vmem:[%s13518_s9 + $0x18] sm:$0xff] %vm171_vm0, %v6248_v47  ;;  %v6243_v40 = vadd.f32 %v12840_v53, %v6242_v34  ;;  %9171 = vmatprep.mubr.msk.f32.mxu0 %vm2038_vm3, %v10658_v4  ;;  %v4953_v37 = vpop.f32.mrf.mxu1 }
 0x3b8   :  { %v10662_v11 = vpop.eup %10661  ;;  %10687 = vrcp.f32 %v5495_v5  ;;  %v5494_v28 = vadd.f32 1.0, %v10660_v62  ;;  %v7767_v20 = vmul.f32 -1.442695, %v4959_v38  ;;  %v4954_v51 = vadd.f32 %v12830_v1, %v4953_v37  ;;  %v9029_v0 = vpop.f32.mrf.mxu0 }
 0x3b9   :  { %v10664_v10 = vpop.eup %10663  ;;  %10689 = vpow2.f32 %v7764_v60  ;;  %6873 = vst.msk [vmem:[%s13518_s9 + $0x10] sm:$0xff] %vm171_vm0, %v6243_v40  ;;  %v6258_v63 = vadd.f32 %v9029_v0, %v12840_v53  ;;  %9172 = vmatmul.mubr.msk.f32.gmra.mxu0 %vm2038_vm3, %v10654_v54  ;;  %v9007_v48 = vpop.f32.mrf.mxu1 }
 0x3ba   :  { %v10666_v44 = vpop.eup %10665  ;;  %10691 = vrcp.f32 %v5494_v28  ;;  %v7766_v15 = vmul.f32 -1.442695, %v4954_v51  ;;  %v4969_v52 = vadd.f32 %v12830_v1, %v9007_v48  ;;  %v6252_v61 = vpop.f32.mrf.mxu0  ;;  %v5497_v49 = vadd.f32 1.0, %v10664_v10 }
 0x3bb   :  { %v10668_v55 = vpop.eup %10667  ;;  %10693 = vpow2.f32 %v7767_v20  ;;  %6876 = vst.msk [vmem:[%s13518_s9 + $0x28] sm:$0xff] %vm171_vm0, %v6258_v63  ;;  %v6253_v12 = vadd.f32 %v12840_v53, %v6252_v61  ;;  %9174 = vmatprep.mubr.msk.f32.mxu0 %vm2038_vm3, %v10666_v44  ;;  %v4963_v26 = vpop.f32.mrf.mxu1 }
 0x3bc   :  { %v10670_v59 = vpop.eup %10669  ;;  %v5496_v6 = vadd.f32 1.0, %v10668_v55  ;;  %v7769_v45 = vmul.f32 -1.442695, %v4969_v52  ;;  %v4964_v8 = vadd.f32 %v12830_v1, %v4963_v26  ;;  %v9032_v43 = vpop.f32.mrf.mxu0  ;;  %10695 = vpow2.f32 %v7766_v15 }
 0x3bd   :  { %v10672_v30 = vpop.eup %10671  ;;  %6875 = vst.msk [vmem:[%s13518_s9 + $0x20] sm:$0xff] %vm171_vm0, %v6253_v12  ;;  %v6268_v31 = vadd.f32 %v9032_v43, %v12840_v53  ;;  %9175 = vmatmul.mubr.msk.f32.gmra.mxu0 %vm2038_vm3, %v10662_v11  ;;  %v9010_v32 = vpop.f32.mrf.mxu1  ;;  %v5499_v58 = vadd.f32 1.0, %v10670_v59 }
 0x3be   :  { %v10674_v39 = vpop.eup %10673  ;;  %10697 = vrcp.f32 %v5496_v6  ;;  %v7768_v27 = vmul.f32 -1.442695, %v4964_v8  ;;  %v4979_v18 = vadd.f32 %v12830_v1, %v9010_v32  ;;  %v6262_v13 = vpop.f32.mrf.mxu0 }
 0x3bf   :  { %v10676_v24 = vpop.eup %10675  ;;  %10699 = vrcp.f32 %v5497_v49  ;;  %v5498_v7 = vadd.f32 1.0, %v10674_v39  ;;  %6878 = vst.msk [vmem:[%s13518_s9 + $0x38] sm:$0xff] %vm171_vm0, %v6268_v31  ;;  %v6263_v33 = vadd.f32 %v12840_v53, %v6262_v13  ;;  %v4973_v35 = vpop.f32.mrf.mxu1 }
 0x3c0   :  { %v10678_v42 = vpop.eup %10677  ;;  %10701 = vpow2.f32 %v7769_v45  ;;  %v7771_v3 = vmul.f32 -1.442695, %v4979_v18  ;;  %9177 = vmatprep.mubr.msk.f32.mxu0 %vm2038_vm3, %v10676_v24  ;;  %v4974_v25 = vadd.f32 %v12830_v1, %v4973_v35 }
 0x3c1   :  { %v10680_v19 = vpop.eup %10679  ;;  %10703 = vrcp.f32 %v5498_v7  ;;  %6877 = vst.msk [vmem:[%s13518_s9 + $0x30] sm:$0xff] %vm171_vm0, %v6263_v33  ;;  %v9035_v56 = vpop.f32.mrf.mxu0  ;;  %9178 = vmatmul.mubr.msk.f32.gmra.mxu0 %vm2038_vm3, %v10672_v30  ;;  %v5501_v2 = vadd.f32 1.0, %v10678_v42 }
 0x3c2   :  { %v9013_v17 = vpop.f32.mrf.mxu1  ;;  %v10682_v46 = vpop.eup %10681  ;;  %10705 = vpow2.f32 %v7768_v27  ;;  %v7770_v14 = vmul.f32 -1.442695, %v4974_v25  ;;  %v6278_v22 = vadd.f32 %v9035_v56, %v12840_v53 }
 0x3c3   :  { %v4989_v57 = vadd.f32 %v12830_v1, %v9013_v17  ;;  %v10684_v23 = vpop.eup %10683  ;;  %10707 = vrcp.f32 %v5499_v58  ;;  %v5500_v41 = vadd.f32 1.0, %v10682_v46  ;;  %v6272_v54 = vpop.f32.mrf.mxu0 }
 0x3c4   :  { %v4983_v16 = vpop.f32.mrf.mxu1  ;;  %v10686_v21 = vpop.eup %10685  ;;  %10709 = vpow2.f32 %v7771_v3  ;;  %6880 = vst.msk [vmem:[%s13518_s9 + $0x48] sm:$0xff] %vm171_vm0, %v6278_v22  ;;  %v6273_v9 = vadd.f32 %v12840_v53, %v6272_v54  ;;  %9180 = vmatprep.mubr.msk.f32.mxu0 %vm2038_vm3, %v10684_v23 }
 0x3c5   :  { %v7773_v50 = vmul.f32 -1.442695, %v4989_v57  ;;  %v4984_v29 = vadd.f32 %v12830_v1, %v4983_v16  ;;  %v10688_v47 = vpop.eup %10687  ;;  %10711 = vrcp.f32 %v5500_v41  ;;  %v9038_v36 = vpop.f32.mrf.mxu0  ;;  %9181 = vmatmul.mubr.msk.f32.gmra.mxu0 %vm2038_vm3, %v10680_v19  ;;  %v5503_v40 = vadd.f32 1.0, %v10686_v21 }
 0x3c6   :  { %v9016_v4 = vpop.f32.mrf.mxu1  ;;  %v10690_v5 = vpop.eup %10689  ;;  %10713 = vpow2.f32 %v7770_v14  ;;  %6879 = vst.msk [vmem:[%s13518_s9 + $0x40] sm:$0xff] %vm171_vm0, %v6273_v9  ;;  %v6288_v38 = vadd.f32 %v9038_v36, %v12840_v53 }
 0x3c7   :  { %v7772_v60 = vmul.f32 -1.442695, %v4984_v29  ;;  %v4999_v34 = vadd.f32 %v12830_v1, %v9016_v4  ;;  %v10692_v62 = vpop.eup %10691  ;;  %10715 = vrcp.f32 %v5501_v2  ;;  %v5502_v37 = vadd.f32 1.0, %v10690_v5  ;;  %v6282_v11 = vpop.f32.mrf.mxu0 }
 0x3c8   :  { %v4993_v28 = vpop.f32.mrf.mxu1  ;;  %v10694_v20 = vpop.eup %10693  ;;  %10717 = vpow2.f32 %v7773_v50  ;;  %6882 = vst.msk [vmem:[%s13518_s9 + $0x58] sm:$0xff] %vm171_vm0, %v6288_v38  ;;  %v6283_v0 = vadd.f32 %v12840_v53, %v6282_v11  ;;  %9183 = vmatprep.mubr.msk.f32.mxu0 %vm2038_vm3, %v10692_v62 }
 0x3c9   :  { %v7775_v51 = vmul.f32 -1.442695, %v4999_v34  ;;  %v4994_v10 = vadd.f32 %v12830_v1, %v4993_v28  ;;  %10719 = vrcp.f32 %v5502_v37  ;;  %v9041_v63 = vpop.f32.mrf.mxu0  ;;  %9184 = vmatmul.mubr.msk.f32.gmra.mxu0 %vm2038_vm3, %v10688_v47  ;;  %v10696_v48 = vpop.eup %10695  ;;  %v5505_v61 = vadd.f32 1.0, %v10694_v20 }
 0x3ca   :  { %10721 = vpow2.f32 %v7772_v60  ;;  %6881 = vst.msk [vmem:[%s13518_s9 + $0x50] sm:$0xff] %vm171_vm0, %v6283_v0  ;;  %v6298_v15 = vadd.f32 %v9041_v63, %v12840_v53  ;;  %v5504_v55 = vadd.f32 1.0, %v10696_v48 }
 0x3cb   :  { %v7774_v44 = vmul.f32 -1.442695, %v4994_v10  ;;  %v10698_v52 = vpop.eup %10697  ;;  %10723 = vrcp.f32 %v5503_v40  ;;  %v6292_v49 = vpop.f32.mrf.mxu0 }
 0x3cc   :  { %v10700_v1 = vpop.eup %10699  ;;  %10725 = vpow2.f32 %v7775_v51  ;;  %6884 = vst.msk [vmem:[%s13518_s9 + $0x68] sm:$0xff] %vm171_vm0, %v6298_v15  ;;  %v6293_v12 = vadd.f32 %v12840_v53, %v6292_v49  ;;  %9186 = vmatprep.mubr.msk.f32.mxu0 %vm2038_vm3, %v10698_v52 }
 0x3cd   :  { %v10702_v26 = vpop.eup %10701  ;;  %10727 = vrcp.f32 %v5504_v55  ;;  %v9044_v59 = vpop.f32.mrf.mxu0  ;;  %9187 = vmatmul.mubr.msk.f32.gmra.mxu0 %vm2038_vm3, %v10700_v1 }
 0x3ce   :  { %v10704_v6 = vpop.eup %10703  ;;  %10729 = vpow2.f32 %v7774_v44  ;;  %6883 = vst.msk [vmem:[%s13518_s9 + $0x60] sm:$0xff] %vm171_vm0, %v6293_v12  ;;  %v6308_v45 = vadd.f32 %v9044_v59, %v12840_v53  ;;  %v5507_v43 = vadd.f32 1.0, %v10702_v26 }
 0x3cf   :  { %v10706_v8 = vpop.eup %10705  ;;  %10731 = vrcp.f32 %v5505_v61  ;;  %v6302_v30 = vpop.f32.mrf.mxu0  ;;  %9189 = vmatprep.mubr.msk.f32.mxu0 %vm2038_vm3, %v10704_v6 }
 0x3d0   :  { %v10708_v31 = vpop.eup %10707  ;;  %v5506_v32 = vadd.f32 1.0, %v10706_v8  ;;  %6886 = vst.msk [vmem:[%s13518_s9 + $0x78] sm:$0xff] %vm171_vm0, %v6308_v45  ;;  %v6303_v39 = vadd.f32 %v12840_v53, %v6302_v30 }
 0x3d1   :  { %v10710_v27 = vpop.eup %10709  ;;  %v9047_v18 = vpop.f32.mrf.mxu0  ;;  %9190 = vmatmul.mubr.msk.f32.gmra.mxu0 %vm2038_vm3, %v10708_v31 }
 0x3d2   :  { %v10712_v13 = vpop.eup %10711  ;;  %10733 = vrcp.f32 %v5506_v32  ;;  %6885 = vst.msk [vmem:[%s13518_s9 + $0x70] sm:$0xff] %vm171_vm0, %v6303_v39  ;;  %v6318_v24 = vadd.f32 %v9047_v18, %v12840_v53  ;;  %v5509_v7 = vadd.f32 1.0, %v10710_v27 }
 0x3d3   :  { %v10714_v58 = vpop.eup %10713  ;;  %10735 = vrcp.f32 %v5507_v43  ;;  %v6312_v33 = vpop.f32.mrf.mxu0  ;;  %9192 = vmatprep.mubr.msk.f32.mxu0 %vm2038_vm3, %v10712_v13 }
 0x3d4   :  { %v10716_v35 = vpop.eup %10715  ;;  %v5508_v42 = vadd.f32 1.0, %v10714_v58  ;;  %6888 = vst.msk [vmem:[%s13518_s9 + $0x88] sm:$0xff] %vm171_vm0, %v6318_v24  ;;  %v6313_v3 = vadd.f32 %v12840_v53, %v6312_v33 }
 0x3d5   :  { %v10718_v25 = vpop.eup %10717  ;;  %v9050_v19 = vpop.f32.mrf.mxu0  ;;  %9193 = vmatmul.mubr.msk.f32.gmra.mxu0 %vm2038_vm3, %v10716_v35 }
 0x3d6   :  { %v10720_v56 = vpop.eup %10719  ;;  %10737 = vrcp.f32 %v5508_v42  ;;  %6887 = vst.msk [vmem:[%s13518_s9 + $0x80] sm:$0xff] %vm171_vm0, %v6313_v3  ;;  %v6328_v17 = vadd.f32 %v9050_v19, %v12840_v53  ;;  %v5511_v14 = vadd.f32 1.0, %v10718_v25 }
 0x3d7   :  { %v10722_v46 = vpop.eup %10721  ;;  %10739 = vrcp.f32 %v5509_v7  ;;  %v6322_v22 = vpop.f32.mrf.mxu0  ;;  %9195 = vmatprep.mubr.msk.f32.mxu0 %vm2038_vm3, %v10720_v56 }
 0x3d8   :  { %v10724_v57 = vpop.eup %10723  ;;  %v5510_v23 = vadd.f32 1.0, %v10722_v46  ;;  %6890 = vst.msk [vmem:[%s13518_s9 + $0x98] sm:$0xff] %vm171_vm0, %v6328_v17  ;;  %v6323_v2 = vadd.f32 %v12840_v53, %v6322_v22 }
 0x3d9   :  { %v10726_v41 = vpop.eup %10725  ;;  %v9053_v54 = vpop.f32.mrf.mxu0  ;;  %9196 = vmatmul.mubr.msk.f32.gmra.mxu0 %vm2038_vm3, %v10724_v57 }
 0x3da   :  { %v10728_v16 = vpop.eup %10727  ;;  %10741 = vrcp.f32 %v5510_v23  ;;  %6889 = vst.msk [vmem:[%s13518_s9 + $0x90] sm:$0xff] %vm171_vm0, %v6323_v2  ;;  %v6338_v21 = vadd.f32 %v9053_v54, %v12840_v53  ;;  %v5513_v9 = vadd.f32 1.0, %v10726_v41 }
 0x3db   :  { %v10730_v50 = vpop.eup %10729  ;;  %10743 = vrcp.f32 %v5511_v14  ;;  %v6332_v29 = vpop.f32.mrf.mxu0  ;;  %9198 = vmatprep.mubr.msk.f32.mxu0 %vm2038_vm3, %v10728_v16 }
 0x3dc   :  { %v10732_v47 = vpop.eup %10731  ;;  %v5512_v36 = vadd.f32 1.0, %v10730_v50  ;;  %6892 = vst.msk [vmem:[%s13518_s9 + $0xa8] sm:$0xff] %vm171_vm0, %v6338_v21  ;;  %v6333_v4 = vadd.f32 %v12840_v53, %v6332_v29 }
 0x3dd   :  { %v9056_v5 = vpop.f32.mrf.mxu0  ;;  %9199 = vmatmul.mubr.msk.f32.gmra.mxu0 %vm2038_vm3, %v10732_v47 }
 0x3de   :  { %10745 = vrcp.f32 %v5512_v36  ;;  %6891 = vst.msk [vmem:[%s13518_s9 + $0xa0] sm:$0xff] %vm171_vm0, %v6333_v4  ;;  %v6348_v60 = vadd.f32 %v9056_v5, %v12840_v53 }
 0x3df   :  { %v10734_v38 = vpop.eup %10733  ;;  %10747 = vrcp.f32 %v5513_v9  ;;  %v6342_v34 = vpop.f32.mrf.mxu0 }
 0x3e0   :  { %v10736_v62 = vpop.eup %10735  ;;  %6894 = vst.msk [vmem:[%s13518_s9 + $0xb8] sm:$0xff] %vm171_vm0, %v6348_v60  ;;  %v6343_v40 = vadd.f32 %v12840_v53, %v6342_v34  ;;  %9201 = vmatprep.mubr.msk.f32.mxu0 %vm2038_vm3, %v10734_v38 }
 0x3e1   :  { %v9059_v37 = vpop.f32.mrf.mxu0  ;;  %9202 = vmatmul.mubr.msk.f32.gmra.mxu0 %vm2038_vm3, %v10736_v62 }
 0x3e2   :  { %6893 = vst.msk [vmem:[%s13518_s9 + $0xb0] sm:$0xff] %vm171_vm0, %v6343_v40  ;;  %v6358_v11 = vadd.f32 %v9059_v37, %v12840_v53 }
 0x3e3   :  { %v10738_v28 = vpop.eup %10737  ;;  %v6352_v20 = vpop.f32.mrf.mxu0 }
 0x3e4   :  { %v10740_v51 = vpop.eup %10739  ;;  %6896 = vst.msk [vmem:[%s13518_s9 + $0xc8] sm:$0xff] %vm171_vm0, %v6358_v11  ;;  %v6353_v0 = vadd.f32 %v12840_v53, %v6352_v20  ;;  %9204 = vmatprep.mubr.msk.f32.mxu0 %vm2038_vm3, %v10738_v28 }
 0x3e5   :  { %v9062_v10 = vpop.f32.mrf.mxu0  ;;  %9205 = vmatmul.mubr.msk.f32.gmra.mxu0 %vm2038_vm3, %v10740_v51 }
 0x3e6   :  { %6895 = vst.msk [vmem:[%s13518_s9 + $0xc0] sm:$0xff] %vm171_vm0, %v6353_v0  ;;  %v6368_v63 = vadd.f32 %v9062_v10, %v12840_v53 }
 0x3e7   :  { %v10742_v48 = vpop.eup %10741  ;;  %v6362_v44 = vpop.f32.mrf.mxu0 }
 0x3e8   :  { %v10744_v15 = vpop.eup %10743  ;;  %6898 = vst.msk [vmem:[%s13518_s9 + $0xd8] sm:$0xff] %vm171_vm0, %v6368_v63  ;;  %v6363_v52 = vadd.f32 %v12840_v53, %v6362_v44  ;;  %9207 = vmatprep.mubr.msk.f32.mxu0 %vm2038_vm3, %v10742_v48 }
 0x3e9   :  { %v9065_v61 = vpop.f32.mrf.mxu0  ;;  %9208 = vmatmul.mubr.msk.f32.gmra.mxu0 %vm2038_vm3, %v10744_v15 }
 0x3ea   :  { %6897 = vst.msk [vmem:[%s13518_s9 + $0xd0] sm:$0xff] %vm171_vm0, %v6363_v52  ;;  %v6378_v55 = vadd.f32 %v9065_v61, %v12840_v53 }
 0x3eb   :  { %v10746_v49 = vpop.eup %10745  ;;  %v6372_v1 = vpop.f32.mrf.mxu0 }
 0x3ec   :  { %v10748_v12 = vpop.eup %10747  ;;  %6900 = vst.msk [vmem:[%s13518_s9 + $0xe8] sm:$0xff] %vm171_vm0, %v6378_v55  ;;  %v6373_v26 = vadd.f32 %v12840_v53, %v6372_v1  ;;  %9210 = vmatprep.mubr.msk.f32.mxu0 %vm2038_vm3, %v10746_v49 }
 0x3ed   :  { %v9068_v59 = vpop.f32.mrf.mxu0  ;;  %9211 = vmatmul.mubr.msk.f32.gmra.mxu0 %vm2038_vm3, %v10748_v12 }
 0x3ee   :  { %6899 = vst.msk [vmem:[%s13518_s9 + $0xe0] sm:$0xff] %vm171_vm0, %v6373_v26  ;;  %v6388_v6 = vadd.f32 %v9068_v59, %v12840_v53 }
 0x3ef   :  { %v6382_v45 = vpop.f32.mrf.mxu0 }
 0x3f0   :  { %6902 = vst.msk [vmem:[%s13518_s9 + $0xf8] sm:$0xff] %vm171_vm0, %v6388_v6  ;;  %v6383_v8 = vadd.f32 %v12840_v53, %v6382_v45 }
 0x3f1   :  { %v9071_v43 = vpop.f32.mrf.mxu0 }
 0x3f2   :  { %6901 = vst.msk [vmem:[%s13518_s9 + $0xf0] sm:$0xff] %vm171_vm0, %v6383_v8  ;;  %v6398_v30 = vadd.f32 %v9071_v43, %v12840_v53 }
 0x3f3   :  { %v6392_v31 = vpop.f32.mrf.mxu0 }
 0x3f4   :  { %6904 = vst.msk [vmem:[%s13518_s9 + $0x108] sm:$0xff] %vm171_vm0, %v6398_v30  ;;  %v6393_v32 = vadd.f32 %v12840_v53, %v6392_v31 }
 0x3f5   :  { %v9074_v39 = vpop.f32.mrf.mxu0 }
 0x3f6   :  { %6903 = vst.msk [vmem:[%s13518_s9 + $0x100] sm:$0xff] %vm171_vm0, %v6393_v32  ;;  %v6408_v27 = vadd.f32 %v9074_v39, %v12840_v53 }
 0x3f7   :  { %v6402_v18 = vpop.f32.mrf.mxu0 }
 0x3f8   :  { %6906 = vst.msk [vmem:[%s13518_s9 + $0x118] sm:$0xff] %vm171_vm0, %v6408_v27  ;;  %v6403_v13 = vadd.f32 %v12840_v53, %v6402_v18 }
 0x3f9   :  { %v9077_v24 = vpop.f32.mrf.mxu0 }
 0x3fa   :  { %6905 = vst.msk [vmem:[%s13518_s9 + $0x110] sm:$0xff] %vm171_vm0, %v6403_v13  ;;  %v6418_v58 = vadd.f32 %v9077_v24, %v12840_v53 }
 0x3fb   :  { %v6412_v7 = vpop.f32.mrf.mxu0 }
 0x3fc   :  { %6908 = vst.msk [vmem:[%s13518_s9 + $0x128] sm:$0xff] %vm171_vm0, %v6418_v58  ;;  %v6413_v33 = vadd.f32 %v12840_v53, %v6412_v7 }
 0x3fd   :  { %v9080_v35 = vpop.f32.mrf.mxu0 }
 0x3fe   :  { %6907 = vst.msk [vmem:[%s13518_s9 + $0x120] sm:$0xff] %vm171_vm0, %v6413_v33  ;;  %v6428_v42 = vadd.f32 %v9080_v35, %v12840_v53 }
 0x3ff   :  { %v6422_v3 = vpop.f32.mrf.mxu0 }
 0x400   :  { %6910 = vst.msk [vmem:[%s13518_s9 + $0x138] sm:$0xff] %vm171_vm0, %v6428_v42  ;;  %v6423_v25 = vadd.f32 %v12840_v53, %v6422_v3 }
 0x401   :  { %v9083_v19 = vpop.f32.mrf.mxu0 }
 0x402   :  { %6909 = vst.msk [vmem:[%s13518_s9 + $0x130] sm:$0xff] %vm171_vm0, %v6423_v25  ;;  %v6438_v56 = vadd.f32 %v9083_v19, %v12840_v53 }
 0x403   :  { %v6432_v17 = vpop.f32.mrf.mxu0 }
 0x404   :  { %6912 = vst.msk [vmem:[%s13518_s9 + $0x148] sm:$0xff] %vm171_vm0, %v6438_v56  ;;  %v6433_v46 = vadd.f32 %v12840_v53, %v6432_v17 }
 0x405   :  { %v9086_v14 = vpop.f32.mrf.mxu0 }
 0x406   :  { %6911 = vst.msk [vmem:[%s13518_s9 + $0x140] sm:$0xff] %vm171_vm0, %v6433_v46  ;;  %v6448_v22 = vadd.f32 %v9086_v14, %v12840_v53 }
 0x407   :  { %v6442_v57 = vpop.f32.mrf.mxu0 }
 0x408   :  { %6914 = vst.msk [vmem:[%s13518_s9 + $0x158] sm:$0xff] %vm171_vm0, %v6448_v22  ;;  %v6443_v23 = vadd.f32 %v12840_v53, %v6442_v57 }
 0x409   :  { %v9089_v2 = vpop.f32.mrf.mxu0 }
 0x40a   :  { %6913 = vst.msk [vmem:[%s13518_s9 + $0x150] sm:$0xff] %vm171_vm0, %v6443_v23  ;;  %v6458_v41 = vadd.f32 %v9089_v2, %v12840_v53 }
 0x40b   :  { %v6452_v54 = vpop.f32.mrf.mxu0 }
 0x40c   :  { %6916 = vst.msk [vmem:[%s13518_s9 + $0x168] sm:$0xff] %vm171_vm0, %v6458_v41  ;;  %v6453_v16 = vadd.f32 %v12840_v53, %v6452_v54 }
 0x40d   :  { %v9092_v21 = vpop.f32.mrf.mxu0 }
 0x40e   :  { %6915 = vst.msk [vmem:[%s13518_s9 + $0x160] sm:$0xff] %vm171_vm0, %v6453_v16  ;;  %v6468_v50 = vadd.f32 %v9092_v21, %v12840_v53 }
 0x40f   :  { %v6462_v9 = vpop.f32.mrf.mxu0 }
 0x410   :  { %6918 = vst.msk [vmem:[%s13518_s9 + $0x178] sm:$0xff] %vm171_vm0, %v6468_v50  ;;  %v6463_v29 = vadd.f32 %v12840_v53, %v6462_v9 }
 0x411   :  { %v9095_v47 = vpop.f32.mrf.mxu0 }
 0x412   :  { %6917 = vst.msk [vmem:[%s13518_s9 + $0x170] sm:$0xff] %vm171_vm0, %v6463_v29  ;;  %v6478_v36 = vadd.f32 %v9095_v47, %v12840_v53 }
 0x413   :  { %v6472_v4 = vpop.f32.mrf.mxu0 }
 0x414   :  { %6920 = vst.msk [vmem:[%s13518_s9 + $0x188] sm:$0xff] %vm171_vm0, %v6478_v36  ;;  %v6473_v5 = vadd.f32 %v12840_v53, %v6472_v4 }
 0x415   :  { %v9098_v60 = vpop.f32.mrf.mxu0 }
 0x416   :  { %6919 = vst.msk [vmem:[%s13518_s9 + $0x180] sm:$0xff] %vm171_vm0, %v6473_v5  ;;  %v6488_v38 = vadd.f32 %v9098_v60, %v12840_v53 }
 0x417   :  { %v6482_v34 = vpop.f32.mrf.mxu0 }
 0x418   :  { %6922 = vst.msk [vmem:[%s13518_s9 + $0x198] sm:$0xff] %vm171_vm0, %v6488_v38  ;;  %v6483_v62 = vadd.f32 %v12840_v53, %v6482_v34 }
 0x419   :  { %v9101_v40 = vpop.f32.mrf.mxu0 }
 0x41a   :  { %6921 = vst.msk [vmem:[%s13518_s9 + $0x190] sm:$0xff] %vm171_vm0, %v6483_v62  ;;  %v6498_v37 = vadd.f32 %v9101_v40, %v12840_v53 }
 0x41b   :  { %v6492_v11 = vpop.f32.mrf.mxu0 }
 0x41c   :  { %6924 = vst.msk [vmem:[%s13518_s9 + $0x1a8] sm:$0xff] %vm171_vm0, %v6498_v37  ;;  %v6493_v28 = vadd.f32 %v12840_v53, %v6492_v11 }
 0x41d   :  { %v9104_v20 = vpop.f32.mrf.mxu0 }
 0x41e   :  { %6923 = vst.msk [vmem:[%s13518_s9 + $0x1a0] sm:$0xff] %vm171_vm0, %v6493_v28  ;;  %v6508_v51 = vadd.f32 %v9104_v20, %v12840_v53 }
 0x41f   :  { %v6502_v0 = vpop.f32.mrf.mxu0 }
 0x420   :  { %6926 = vst.msk [vmem:[%s13518_s9 + $0x1b8] sm:$0xff] %vm171_vm0, %v6508_v51  ;;  %v6503_v10 = vadd.f32 %v12840_v53, %v6502_v0 }
 0x421   :  { %v9107_v63 = vpop.f32.mrf.mxu0 }
 0x422   :  { %6925 = vst.msk [vmem:[%s13518_s9 + $0x1b0] sm:$0xff] %vm171_vm0, %v6503_v10  ;;  %v6518_v48 = vadd.f32 %v9107_v63, %v12840_v53 }
 0x423   :  { %v6512_v44 = vpop.f32.mrf.mxu0 }
 0x424   :  { %6928 = vst.msk [vmem:[%s13518_s9 + $0x1c8] sm:$0xff] %vm171_vm0, %v6518_v48  ;;  %v6513_v15 = vadd.f32 %v12840_v53, %v6512_v44 }
 0x425   :  { %v9110_v52 = vpop.f32.mrf.mxu0 }
 0x426   :  { %6927 = vst.msk [vmem:[%s13518_s9 + $0x1c0] sm:$0xff] %vm171_vm0, %v6513_v15  ;;  %v6528_v61 = vadd.f32 %v9110_v52, %v12840_v53 }
 0x427   :  { %v6522_v55 = vpop.f32.mrf.mxu0 }
 0x428   :  { %6930 = vst.msk [vmem:[%s13518_s9 + $0x1d8] sm:$0xff] %vm171_vm0, %v6528_v61  ;;  %v6523_v49 = vadd.f32 %v12840_v53, %v6522_v55 }
 0x429   :  { %v9113_v1 = vpop.f32.mrf.mxu0 }
 0x42a   :  { %6929 = vst.msk [vmem:[%s13518_s9 + $0x1d0] sm:$0xff] %vm171_vm0, %v6523_v49  ;;  %v6538_v12 = vadd.f32 %v9113_v1, %v12840_v53 }
 0x42b   :  { %v6532_v26 = vpop.f32.mrf.mxu0 }
 0x42c   :  { %6932 = vst.msk [vmem:[%s13518_s9 + $0x1e8] sm:$0xff] %vm171_vm0, %v6538_v12  ;;  %v6533_v59 = vadd.f32 %v12840_v53, %v6532_v26 }
 0x42d   :  { %v9116_v6 = vpop.f32.mrf.mxu0 }
 0x42e   :  { %6931 = vst.msk [vmem:[%s13518_s9 + $0x1e0] sm:$0xff] %vm171_vm0, %v6533_v59  ;;  %v6548_v45 = vadd.f32 %v9116_v6, %v12840_v53 }
 0x42f   :  { %v6542_v8 = vpop.f32.mrf.mxu0 }
 0x430   :  { %6934 = vst.msk [vmem:[%s13518_s9 + $0x1f8] sm:$0xff] %vm171_vm0, %v6548_v45  ;;  %v6543_v43 = vadd.f32 %v12840_v53, %v6542_v8 }
 0x431   :  { %v9119_v30 = vpop.f32.mrf.mxu0 }
 0x432   :  { %6933 = vst.msk [vmem:[%s13518_s9 + $0x1f0] sm:$0xff] %vm171_vm0, %v6543_v43  ;;  %v6558_v31 = vadd.f32 %v9119_v30, %v12840_v53 }
 0x433   :  { %v6552_v32 = vpop.f32.mrf.mxu0 }
 0x434   :  { %6936 = vst.msk [vmem:[%s13518_s9 + $0x208] sm:$0xff] %vm171_vm0, %v6558_v31  ;;  %v6553_v39 = vadd.f32 %v12840_v53, %v6552_v32 }
 0x435   :  { %v9122_v27 = vpop.f32.mrf.mxu0 }
 0x436   :  { %6935 = vst.msk [vmem:[%s13518_s9 + $0x200] sm:$0xff] %vm171_vm0, %v6553_v39  ;;  %v6568_v18 = vadd.f32 %v9122_v27, %v12840_v53 }
 0x437   :  { %v6562_v13 = vpop.f32.mrf.mxu0 }
 0x438   :  { %6938 = vst.msk [vmem:[%s13518_s9 + $0x218] sm:$0xff] %vm171_vm0, %v6568_v18  ;;  %v6563_v24 = vadd.f32 %v12840_v53, %v6562_v13 }
 0x439   :  { %v9125_v58 = vpop.f32.mrf.mxu0 }
 0x43a   :  { %6937 = vst.msk [vmem:[%s13518_s9 + $0x210] sm:$0xff] %vm171_vm0, %v6563_v24  ;;  %v6578_v7 = vadd.f32 %v9125_v58, %v12840_v53 }
 0x43b   :  { %v6572_v33 = vpop.f32.mrf.mxu0 }
 0x43c   :  { %6940 = vst.msk [vmem:[%s13518_s9 + $0x228] sm:$0xff] %vm171_vm0, %v6578_v7  ;;  %v6573_v35 = vadd.f32 %v12840_v53, %v6572_v33 }
 0x43d   :  { %v9128_v42 = vpop.f32.mrf.mxu0 }
 0x43e   :  { %6939 = vst.msk [vmem:[%s13518_s9 + $0x220] sm:$0xff] %vm171_vm0, %v6573_v35  ;;  %v6588_v3 = vadd.f32 %v9128_v42, %v12840_v53 }
 0x43f   :  { %v6582_v25 = vpop.f32.mrf.mxu0 }
 0x440   :  { %6942 = vst.msk [vmem:[%s13518_s9 + $0x238] sm:$0xff] %vm171_vm0, %v6588_v3  ;;  %v6583_v19 = vadd.f32 %v12840_v53, %v6582_v25 }
 0x441   :  { %v9131_v56 = vpop.f32.mrf.mxu0 }
 0x442   :  { %6941 = vst.msk [vmem:[%s13518_s9 + $0x230] sm:$0xff] %vm171_vm0, %v6583_v19  ;;  %v6598_v17 = vadd.f32 %v9131_v56, %v12840_v53 }
 0x443   :  { %v6592_v46 = vpop.f32.mrf.mxu0 }
 0x444   :  { %6944 = vst.msk [vmem:[%s13518_s9 + $0x248] sm:$0xff] %vm171_vm0, %v6598_v17  ;;  %v6593_v14 = vadd.f32 %v12840_v53, %v6592_v46 }
 0x445   :  { %v9134_v22 = vpop.f32.mrf.mxu0 }
 0x446   :  { %6943 = vst.msk [vmem:[%s13518_s9 + $0x240] sm:$0xff] %vm171_vm0, %v6593_v14  ;;  %v6608_v57 = vadd.f32 %v9134_v22, %v12840_v53 }
 0x447   :  { %v6602_v23 = vpop.f32.mrf.mxu0 }
 0x448   :  { %6946 = vst.msk [vmem:[%s13518_s9 + $0x258] sm:$0xff] %vm171_vm0, %v6608_v57  ;;  %v6603_v2 = vadd.f32 %v12840_v53, %v6602_v23 }
 0x449   :  { %v9137_v41 = vpop.f32.mrf.mxu0 }
 0x44a   :  { %6945 = vst.msk [vmem:[%s13518_s9 + $0x250] sm:$0xff] %vm171_vm0, %v6603_v2  ;;  %v6618_v54 = vadd.f32 %v9137_v41, %v12840_v53  ;;  %v10755_v41 = vld [vmem:[%s13517_s8] ss:$0 sm:$0xff] }
 0x44b   :  { %v6612_v16 = vpop.f32.mrf.mxu0 }
 0x44c   :  { %6948 = vst.msk [vmem:[%s13518_s9 + $0x268] sm:$0xff] %vm171_vm0, %v6618_v54  ;;  %v6613_v21 = vadd.f32 %v12840_v53, %v6612_v16 }
 0x44d   :  { %v9140_v50 = vpop.f32.mrf.mxu0 }
 0x44e   :  { %6947 = vst.msk [vmem:[%s13518_s9 + $0x260] sm:$0xff] %vm171_vm0, %v6613_v21  ;;  %v6628_v9 = vadd.f32 %v9140_v50, %v12840_v53 }
 0x44f   :  { %v6622_v29 = vpop.f32.mrf.mxu0 }
 0x450   :  { %6950 = vst.msk [vmem:[%s13518_s9 + $0x278] sm:$0xff] %vm171_vm0, %v6628_v9  ;;  %v6623_v47 = vadd.f32 %v12840_v53, %v6622_v29 }
 0x451   :  { %v9143_v36 = vpop.f32.mrf.mxu0 }
 0x452   :  { %6949 = vst.msk [vmem:[%s13518_s9 + $0x270] sm:$0xff] %vm171_vm0, %v6623_v47  ;;  %v6638_v4 = vadd.f32 %v9143_v36, %v12840_v53 }
 0x453   :  { %v6632_v5 = vpop.f32.mrf.mxu0 }
 0x454   :  { %6952 = vst.msk [vmem:[%s13518_s9 + $0x288] sm:$0xff] %vm171_vm0, %v6638_v4  ;;  %v6633_v60 = vadd.f32 %v12840_v53, %v6632_v5 }
 0x455   :  { %v9146_v38 = vpop.f32.mrf.mxu0 }
 0x456   :  { %6951 = vst.msk [vmem:[%s13518_s9 + $0x280] sm:$0xff] %vm171_vm0, %v6633_v60  ;;  %v6648_v34 = vadd.f32 %v9146_v38, %v12840_v53 }
 0x457   :  { %v6642_v62 = vpop.f32.mrf.mxu0 }
 0x458   :  { %6954 = vst.msk [vmem:[%s13518_s9 + $0x298] sm:$0xff] %vm171_vm0, %v6648_v34  ;;  %v6643_v40 = vadd.f32 %v12840_v53, %v6642_v62 }
 0x459   :  { %v9149_v37 = vpop.f32.mrf.mxu0 }
 0x45a   :  { %6953 = vst.msk [vmem:[%s13518_s9 + $0x290] sm:$0xff] %vm171_vm0, %v6643_v40  ;;  %v6658_v11 = vadd.f32 %v9149_v37, %v12840_v53 }
 0x45b   :  { %v6652_v28 = vpop.f32.mrf.mxu0 }
 0x45c   :  { %6956 = vst.msk [vmem:[%s13518_s9 + $0x2a8] sm:$0xff] %vm171_vm0, %v6658_v11  ;;  %v6653_v20 = vadd.f32 %v12840_v53, %v6652_v28 }
 0x45d   :  { %v9152_v51 = vpop.f32.mrf.mxu0 }
 0x45e   :  { %6955 = vst.msk [vmem:[%s13518_s9 + $0x2a0] sm:$0xff] %vm171_vm0, %v6653_v20  ;;  %v6668_v0 = vadd.f32 %v9152_v51, %v12840_v53 }
 0x45f   :  { %v6662_v10 = vpop.f32.mrf.mxu0 }
 0x460   :  { %6958 = vst.msk [vmem:[%s13518_s9 + $0x2b8] sm:$0xff] %vm171_vm0, %v6668_v0  ;;  %v6663_v63 = vadd.f32 %v12840_v53, %v6662_v10 }
 0x461   :  { %v9155_v48 = vpop.f32.mrf.mxu0 }
 0x462   :  { %6957 = vst.msk [vmem:[%s13518_s9 + $0x2b0] sm:$0xff] %vm171_vm0, %v6663_v63  ;;  %v6678_v44 = vadd.f32 %v9155_v48, %v12840_v53 }
 0x463   :  { %v6672_v15 = vpop.f32.mrf.mxu0 }
 0x464   :  { %6960 = vst.msk [vmem:[%s13518_s9 + $0x2c8] sm:$0xff] %vm171_vm0, %v6678_v44  ;;  %v6673_v52 = vadd.f32 %v12840_v53, %v6672_v15 }
 0x465   :  { %v9158_v61 = vpop.f32.mrf.mxu0 }
 0x466   :  { %6959 = vst.msk [vmem:[%s13518_s9 + $0x2c0] sm:$0xff] %vm171_vm0, %v6673_v52  ;;  %v6688_v55 = vadd.f32 %v9158_v61, %v12840_v53 }
 0x467   :  { %v6682_v49 = vpop.f32.mrf.mxu0 }
 0x468   :  { %6962 = vst.msk [vmem:[%s13518_s9 + $0x2d8] sm:$0xff] %vm171_vm0, %v6688_v55  ;;  %v6683_v1 = vadd.f32 %v12840_v53, %v6682_v49 }
 0x469   :  { %v9161_v12 = vpop.f32.mrf.mxu0 }
 0x46a   :  { %6961 = vst.msk [vmem:[%s13518_s9 + $0x2d0] sm:$0xff] %vm171_vm0, %v6683_v1  ;;  %v6698_v26 = vadd.f32 %v9161_v12, %v12840_v53 }
 0x46b   :  { %v6692_v59 = vpop.f32.mrf.mxu0 }
 0x46c   :  { %6964 = vst.msk [vmem:[%s13518_s9 + $0x2e8] sm:$0xff] %vm171_vm0, %v6698_v26  ;;  %v6693_v6 = vadd.f32 %v12840_v53, %v6692_v59 }
 0x46d   :  { %v9164_v45 = vpop.f32.mrf.mxu0 }
 0x46e   :  { %6963 = vst.msk [vmem:[%s13518_s9 + $0x2e0] sm:$0xff] %vm171_vm0, %v6693_v6  ;;  %v6708_v8 = vadd.f32 %v9164_v45, %v12840_v53 }
 0x46f   :  { %v6702_v43 = vpop.f32.mrf.mxu0 }
 0x470   :  { %6966 = vst.msk [vmem:[%s13518_s9 + $0x2f8] sm:$0xff] %vm171_vm0, %v6708_v8  ;;  %v6703_v30 = vadd.f32 %v12840_v53, %v6702_v43 }
 0x471   :  { %v9167_v31 = vpop.f32.mrf.mxu0 }
 0x472   :  { %6965 = vst.msk [vmem:[%s13518_s9 + $0x2f0] sm:$0xff] %vm171_vm0, %v6703_v30  ;;  %v6718_v32 = vadd.f32 %v9167_v31, %v12840_v53 }
 0x473   :  { %v6712_v39 = vpop.f32.mrf.mxu0 }
 0x474   :  { %6968 = vst.msk [vmem:[%s13518_s9 + $0x308] sm:$0xff] %vm171_vm0, %v6718_v32  ;;  %v6713_v27 = vadd.f32 %v12840_v53, %v6712_v39 }
 0x475   :  { %v9170_v18 = vpop.f32.mrf.mxu0 }
 0x476   :  { %6967 = vst.msk [vmem:[%s13518_s9 + $0x300] sm:$0xff] %vm171_vm0, %v6713_v27  ;;  %v6728_v13 = vadd.f32 %v9170_v18, %v12840_v53 }
 0x477   :  { %v6722_v24 = vpop.f32.mrf.mxu0 }
 0x478   :  { %6970 = vst.msk [vmem:[%s13518_s9 + $0x318] sm:$0xff] %vm171_vm0, %v6728_v13  ;;  %v6723_v58 = vadd.f32 %v12840_v53, %v6722_v24 }
 0x479   :  { %v9173_v7 = vpop.f32.mrf.mxu0 }
 0x47a   :  { %6969 = vst.msk [vmem:[%s13518_s9 + $0x310] sm:$0xff] %vm171_vm0, %v6723_v58  ;;  %v6738_v33 = vadd.f32 %v9173_v7, %v12840_v53 }
 0x47b   :  { %v6732_v35 = vpop.f32.mrf.mxu0 }
 0x47c   :  { %6972 = vst.msk [vmem:[%s13518_s9 + $0x328] sm:$0xff] %vm171_vm0, %v6738_v33  ;;  %v6733_v42 = vadd.f32 %v12840_v53, %v6732_v35 }
 0x47d   :  { %v9176_v3 = vpop.f32.mrf.mxu0 }
 0x47e   :  { %6971 = vst.msk [vmem:[%s13518_s9 + $0x320] sm:$0xff] %vm171_vm0, %v6733_v42  ;;  %v6748_v25 = vadd.f32 %v9176_v3, %v12840_v53 }
 0x47f   :  { %v6742_v19 = vpop.f32.mrf.mxu0 }
 0x480   :  { %6974 = vst.msk [vmem:[%s13518_s9 + $0x338] sm:$0xff] %vm171_vm0, %v6748_v25  ;;  %v6743_v56 = vadd.f32 %v12840_v53, %v6742_v19 }
 0x481   :  { %v9179_v17 = vpop.f32.mrf.mxu0 }
 0x482   :  { %6973 = vst.msk [vmem:[%s13518_s9 + $0x330] sm:$0xff] %vm171_vm0, %v6743_v56  ;;  %v6758_v46 = vadd.f32 %v9179_v17, %v12840_v53 }
 0x483   :  { %v6752_v14 = vpop.f32.mrf.mxu0 }
 0x484   :  { %6976 = vst.msk [vmem:[%s13518_s9 + $0x348] sm:$0xff] %vm171_vm0, %v6758_v46  ;;  %v6753_v22 = vadd.f32 %v12840_v53, %v6752_v14 }
 0x485   :  { %v9182_v57 = vpop.f32.mrf.mxu0 }
 0x486   :  { %6975 = vst.msk [vmem:[%s13518_s9 + $0x340] sm:$0xff] %vm171_vm0, %v6753_v22  ;;  %v6768_v23 = vadd.f32 %v9182_v57, %v12840_v53 }
 0x487   :  { %v6762_v2 = vpop.f32.mrf.mxu0 }
 0x488   :  { %6978 = vst.msk [vmem:[%s13518_s9 + $0x358] sm:$0xff] %vm171_vm0, %v6768_v23  ;;  %v6763_v54 = vadd.f32 %v10755_v41, %v6762_v2 }
 0x489   :  { %v9185_v16 = vpop.f32.mrf.mxu0 }
 0x48a   :  { %6977 = vst.msk [vmem:[%s13518_s9 + $0x350] sm:$0xff] %vm171_vm0, %v6763_v54  ;;  %v6778_v21 = vadd.f32 %v10755_v41, %v9185_v16 }
 0x48b   :  { %v6772_v50 = vpop.f32.mrf.mxu0 }
 0x48c   :  { %6980 = vst.msk [vmem:[%s13518_s9 + $0x368] sm:$0xff] %vm171_vm0, %v6778_v21  ;;  %v6773_v53 = vadd.f32 %v10755_v41, %v6772_v50 }
 0x48d   :  { %v9188_v9 = vpop.f32.mrf.mxu0 }
 0x48e   :  { %6979 = vst.msk [vmem:[%s13518_s9 + $0x360] sm:$0xff] %vm171_vm0, %v6773_v53  ;;  %v6788_v29 = vadd.f32 %v10755_v41, %v9188_v9 }
 0x48f   :  { %v6782_v47 = vpop.f32.mrf.mxu0 }
 0x490   :  { %6982 = vst.msk [vmem:[%s13518_s9 + $0x378] sm:$0xff] %vm171_vm0, %v6788_v29  ;;  %v6783_v36 = vadd.f32 %v10755_v41, %v6782_v47 }
 0x491   :  { %v9191_v4 = vpop.f32.mrf.mxu0 }
 0x492   :  { %6981 = vst.msk [vmem:[%s13518_s9 + $0x370] sm:$0xff] %vm171_vm0, %v6783_v36  ;;  %v6798_v5 = vadd.f32 %v10755_v41, %v9191_v4 }
 0x493   :  { %v6792_v60 = vpop.f32.mrf.mxu0 }
 0x494   :  { %6984 = vst.msk [vmem:[%s13518_s9 + $0x388] sm:$0xff] %vm171_vm0, %v6798_v5  ;;  %v6793_v38 = vadd.f32 %v10755_v41, %v6792_v60 }
 0x495   :  { %v9194_v34 = vpop.f32.mrf.mxu0 }
 0x496   :  { %6983 = vst.msk [vmem:[%s13518_s9 + $0x380] sm:$0xff] %vm171_vm0, %v6793_v38  ;;  %v6808_v62 = vadd.f32 %v10755_v41, %v9194_v34 }
 0x497   :  { %v6802_v40 = vpop.f32.mrf.mxu0 }
 0x498   :  { %6986 = vst.msk [vmem:[%s13518_s9 + $0x398] sm:$0xff] %vm171_vm0, %v6808_v62  ;;  %v6803_v37 = vadd.f32 %v10755_v41, %v6802_v40 }
 0x499   :  { %v9197_v11 = vpop.f32.mrf.mxu0 }
 0x49a   :  { %6985 = vst.msk [vmem:[%s13518_s9 + $0x390] sm:$0xff] %vm171_vm0, %v6803_v37  ;;  %v6818_v28 = vadd.f32 %v10755_v41, %v9197_v11 }
 0x49b   :  { %v6812_v20 = vpop.f32.mrf.mxu0 }
 0x49c   :  { %6988 = vst.msk [vmem:[%s13518_s9 + $0x3a8] sm:$0xff] %vm171_vm0, %v6818_v28  ;;  %v6813_v51 = vadd.f32 %v10755_v41, %v6812_v20 }
 0x49d   :  { %v9200_v0 = vpop.f32.mrf.mxu0 }
 0x49e   :  { %6987 = vst.msk [vmem:[%s13518_s9 + $0x3a0] sm:$0xff] %vm171_vm0, %v6813_v51  ;;  %v6828_v10 = vadd.f32 %v10755_v41, %v9200_v0 }
 0x49f   :  { %v6822_v63 = vpop.f32.mrf.mxu0 }
 0x4a0   :  { %6990 = vst.msk [vmem:[%s13518_s9 + $0x3b8] sm:$0xff] %vm171_vm0, %v6828_v10  ;;  %v6823_v48 = vadd.f32 %v10755_v41, %v6822_v63 }
 0x4a1   :  { %v9203_v44 = vpop.f32.mrf.mxu0 }
 0x4a2   :  { %6989 = vst.msk [vmem:[%s13518_s9 + $0x3b0] sm:$0xff] %vm171_vm0, %v6823_v48  ;;  %v6838_v15 = vadd.f32 %v10755_v41, %v9203_v44 }
 0x4a3   :  { %v6832_v52 = vpop.f32.mrf.mxu0 }
 0x4a4   :  { %6992 = vst.msk [vmem:[%s13518_s9 + $0x3c8] sm:$0xff] %vm171_vm0, %v6838_v15  ;;  %v6833_v61 = vadd.f32 %v10755_v41, %v6832_v52 }
 0x4a5   :  { %v9206_v55 = vpop.f32.mrf.mxu0 }
 0x4a6   :  { %6991 = vst.msk [vmem:[%s13518_s9 + $0x3c0] sm:$0xff] %vm171_vm0, %v6833_v61  ;;  %v6848_v49 = vadd.f32 %v10755_v41, %v9206_v55 }
 0x4a7   :  { %v6842_v1 = vpop.f32.mrf.mxu0 }
 0x4a8   :  { %6994 = vst.msk [vmem:[%s13518_s9 + $0x3d8] sm:$0xff] %vm171_vm0, %v6848_v49  ;;  %v6843_v12 = vadd.f32 %v10755_v41, %v6842_v1 }
 0x4a9   :  { %v9209_v26 = vpop.f32.mrf.mxu0 }
 0x4aa   :  { %6993 = vst.msk [vmem:[%s13518_s9 + $0x3d0] sm:$0xff] %vm171_vm0, %v6843_v12  ;;  %v6858_v59 = vadd.f32 %v10755_v41, %v9209_v26 }
 0x4ab   :  { %v6852_v6 = vpop.f32.mrf.mxu0 }
 0x4ac   :  { %6996 = vst.msk [vmem:[%s13518_s9 + $0x3e8] sm:$0xff] %vm171_vm0, %v6858_v59  ;;  %v6853_v45 = vadd.f32 %v10755_v41, %v6852_v6 }
 0x4ad   :  { %v9212_v8 = vpop.f32.mrf.mxu0 }
 0x4ae   :  { %6995 = vst.msk [vmem:[%s13518_s9 + $0x3e0] sm:$0xff] %vm171_vm0, %v6853_v45  ;;  %v6868_v43 = vadd.f32 %v10755_v41, %v9212_v8 }
 0x4af   :  { %v6862_v30 = vpop.f32.mrf.mxu0 }
 0x4b0   :  { %6998 = vst.msk [vmem:[%s13518_s9 + $0x3f8] sm:$0xff] %vm171_vm0, %v6868_v43  ;;  %v6863_v31 = vadd.f32 %v10755_v41, %v6862_v30 }
 0x4b2   :  { %6997 = vst.msk [vmem:[%s13518_s9 + $0x3f0] sm:$0xff] %vm171_vm0, %v6863_v31 }

</bundles_post_ra>
